<compile_context>
chip_gen: v7x
topology: tpu7x:2x2x1
jax: 0.10.0
libtpu: 0.0.40
codegen_flags: <defaults>
</compile_context>

<pallas_src>
import jax
import jax.numpy as jnp
from jax import lax
from jax.experimental import pallas as pl
from jax.experimental.pallas import tpu as pltpu
import numpy as np

EXPANSION = 4
BN_EPS = 1e-5


def _bottleneck_kernel(x_ref, w1_ref, s1_ref, b1_ref,
                       w2_ref, s2_ref, b2_ref,
                       w3_ref, s3_ref, b3_ref,
                       o_ref, col_ref):
    # x_ref: (1, H*W, Cin) bf16 block for one batch image.
    # col_ref: (H, W, 9*planes) bf16 im2col scratch (unpadded).
    H, W, K9 = col_ref.shape
    planes = w1_ref.shape[1]
    cdt = col_ref.dtype                       # bf16 compute dtype for the MXU

    # ---- conv1 (1x1) + bn1 + relu  (bf16 x bf16 -> f32 accumulate) ----------
    t = jnp.dot(x_ref[0], w1_ref[...], preferred_element_type=jnp.float32)
    t = jnp.maximum(t * s1_ref[...] + b1_ref[...], 0.0)       # f32 FMA + relu
    t3 = t.reshape(H, W, planes).astype(cdt)                   # (H, W, planes)

    # ---- conv2 (3x3, stride 1, pad 1) + bn2 + relu --------------------------
    # Zero only the 1-px edge strips: exactly the cells whose 3x3 tap source
    # lies outside the image.  The 9 shifted interior rectangles scattered
    # below overwrite everything else, so no halo ring and no full clear.
    col_ref[pl.ds(0, 1), :, :] = jnp.zeros((1, W, K9), cdt)
    col_ref[pl.ds(H - 1, 1), :, :] = jnp.zeros((1, W, K9), cdt)
    col_ref[:, pl.ds(0, 1), :] = jnp.zeros((H, 1, K9), cdt)
    col_ref[:, pl.ds(W - 1, 1), :] = jnp.zeros((H, 1, K9), cdt)
    for dh in range(3):
        h0, hn, sh0 = max(0, 1 - dh), H - abs(dh - 1), max(0, dh - 1)
        for dw in range(3):
            k = dh * 3 + dw
            w0, wn, sw0 = max(0, 1 - dw), W - abs(dw - 1), max(0, dw - 1)
            # col[h, w, k*p:(k+1)*p] == t3[h+dh-1, w+dw-1, :]  (zero if OOB)
            col_ref[pl.ds(h0, hn), pl.ds(w0, wn),
                    pl.ds(k * planes, planes)] = t3[sh0:sh0 + hn,
                                                    sw0:sw0 + wn, :]

    # Single deep-K matmul over all 9 taps; whole-scratch read -> no strided
    # interior slice and no materialized patches copy.
    patches = col_ref[...].reshape(H * W, K9)
    t = jnp.dot(patches, w2_ref[...], preferred_element_type=jnp.float32)
    t = jnp.maximum(t * s2_ref[...] + b2_ref[...], 0.0)

    # ---- conv3 (1x1) + bn3 ---------------------------------------------------
    t = jnp.dot(t.astype(cdt), w3_ref[...], preferred_element_type=jnp.float32)
    t = t * s3_ref[...] + b3_ref[...]                           # (H*W, 4*planes)

    # ---- residual add (re-read VMEM-resident input block) + relu ------------
    # bf16 + f32 promotes per-vreg; downsample=None so residual is x itself.
    o_ref[0] = jnp.maximum(t + x_ref[0], 0.0).astype(o_ref.dtype)


def bottleneck_pallas(x, w1, w2, w3, bn1, bn2, bn3, *, out_dtype=jnp.bfloat16):
    """x: (N, H, W, Cin) NHWC.  w1:(Cin,planes)  w2:(3,3,planes,planes) HWIO
    w3:(planes, planes*4).  bn*: dict with 'weight','bias','mean','var'.
    Returns (N, H, W, planes*4) in `out_dtype` (bf16 by default to halve HBM
    writeback -- cast outside if f32 is required)."""
    N, H, W, Cin = x.shape
    planes = w1.shape[1]
    Cout = planes * EXPANSION
    HW = H * W
    assert Cout == Cin, "downsample=None requires inplanes == planes*expansion"

    def fold_bn(bn):
        scale = bn["weight"] / jnp.sqrt(bn["var"] + BN_EPS)
        bias = bn["bias"] - bn["mean"] * scale
        return (scale.reshape(1, -1).astype(jnp.float32),
                bias.reshape(1, -1).astype(jnp.float32))

    s1, b1 = fold_bn(bn1)
    s2, b2 = fold_bn(bn2)
    s3, b3 = fold_bn(bn3)

    # bf16 operands for the MXU; BN math stays f32.  Flatten spatial dims at
    # the boundary so the kernel never reshapes the x / out slabs.
    cdt = jnp.bfloat16
    xf = x.astype(cdt).reshape(N, HW, Cin)
    w1b = w1.astype(cdt)                                   # (Cin, planes)
    w2b = w2.astype(cdt).reshape(9 * planes, planes)       # rows = k*planes+ci
    w3b = w3.astype(cdt)                                   # (planes, planes*4)

    # Explicit, shape-derived scoped-VMEM budget (clamped to 64 MiB: valid on
    # v5e/v6e/v7x).  in/out blocks double-buffered + scratch + weights +
    # headroom for f32 intermediates.
    est = (2 * HW * (Cin + Cout) * 2
           + HW * 9 * planes * 2
           + (Cin * planes + 9 * planes * planes + planes * Cout) * 2
           + 3 * HW * max(planes, Cout) * 4)
    vmem_limit = int(min(max(2 * est, 32 * 1024 * 1024), 64 * 1024 * 1024))

    def build(single_buffer_consts):
        if single_buffer_consts:
            # Constants never change across grid steps: single-buffer them so
            # they are not allocated twice in VMEM.
            const = lambda a: pl.BlockSpec(a.shape, lambda n: (0,) * a.ndim,
                                           pipeline_mode=pl.Buffered(1))
        else:
            const = lambda a: pl.BlockSpec(a.shape, lambda n: (0,) * a.ndim)
        return pl.pallas_call(
            _bottleneck_kernel,
            out_shape=jax.ShapeDtypeStruct((N, HW, Cout), out_dtype),
            grid=(N,),
            in_specs=[
                pl.BlockSpec((1, HW, Cin), lambda n: (n, 0, 0)),     # x
                const(w1b), const(s1), const(b1),                    # conv1/bn1
                const(w2b), const(s2), const(b2),                    # conv2/bn2
                const(w3b), const(s3), const(b3),                    # conv3/bn3
            ],
            out_specs=pl.BlockSpec((1, HW, Cout), lambda n: (n, 0, 0)),
            scratch_shapes=[pltpu.VMEM((H, W, 9 * planes), cdt)],
            compiler_params=pltpu.CompilerParams(
                dimension_semantics=("parallel",),
                vmem_limit_bytes=vmem_limit),
        )

    args = (xf, w1b, s1, b1, w2b, s2, b2, w3b, s3, b3)
    try:
        out = build(True)(*args)
    except Exception:
        # Graceful degradation for jax builds that reject single-buffer
        # pipeline_mode on the grid pipeline; falls back to default buffering.
        out = build(False)(*args)
    return out.reshape(N, H, W, Cout)


# ------------------------- pure-JAX reference --------------------------------
# Mirrors the kernel's dtype plan (bf16 operands, f32 accumulation / BN) so the
# comparison only measures structural correctness.
def bottleneck_ref(x, w1, w2, w3, bn1, bn2, bn3):
    dn = ("NHWC", "HWIO", "NHWC")
    cdt = jnp.bfloat16

    def fbn(y, bn):
        scale = bn["weight"] / jnp.sqrt(bn["var"] + BN_EPS)
        bias = bn["bias"] - bn["mean"] * scale
        return y * scale + bias

    xb = x.astype(cdt)
    out = lax.conv_general_dilated(xb, w1.astype(cdt).reshape(1, 1, *w1.shape),
                                   (1, 1), "VALID", dimension_numbers=dn,
                                   preferred_element_type=jnp.float32)
    out = jax.nn.relu(fbn(out, bn1)).astype(cdt)
    out = lax.conv_general_dilated(out, w2.astype(cdt), (1, 1),
                                   ((1, 1), (1, 1)), dimension_numbers=dn,
                                   preferred_element_type=jnp.float32)
    out = jax.nn.relu(fbn(out, bn2)).astype(cdt)
    out = lax.conv_general_dilated(out, w3.astype(cdt).reshape(1, 1, *w3.shape),
                                   (1, 1), "VALID", dimension_numbers=dn,
                                   preferred_element_type=jnp.float32)
    out = fbn(out, bn3)
    return jax.nn.relu(out + xb.astype(jnp.float32))


if __name__ == "__main__":
    key = jax.random.PRNGKey(0)
    N, H, W = 2, 16, 16
    planes = 4
    inplanes = planes * EXPANSION          # 16, so the identity residual is valid

    ks = jax.random.split(key, 8)
    x = jax.random.normal(ks[0], (N, H, W, inplanes), jnp.float32)

    # Conv weights generated in PyTorch OIHW layout then transposed to the
    # kernel-friendly layouts (documents the mapping to nn.Conv2d shapes).
    w1_oihw = 0.1 * jax.random.normal(ks[1], (planes, inplanes, 1, 1), jnp.float32)
    w2_oihw = 0.1 * jax.random.normal(ks[2], (planes, planes, 3, 3), jnp.float32)
    w3_oihw = 0.1 * jax.random.normal(ks[3], (planes * EXPANSION, planes, 1, 1),
                                      jnp.float32)
    w1 = jnp.transpose(w1_oihw[:, :, 0, 0], (1, 0))           # (Cin, planes)
    w2 = jnp.transpose(w2_oihw, (2, 3, 1, 0))                  # (3,3,Cin,Cout) HWIO
    w3 = jnp.transpose(w3_oihw[:, :, 0, 0], (1, 0))            # (planes, planes*4)

    def make_bn(k, c):
        k0, k1, k2, k3 = jax.random.split(k, 4)
        return dict(
            weight=1.0 + 0.1 * jax.random.normal(k0, (c,), jnp.float32),
            bias=0.1 * jax.random.normal(k1, (c,), jnp.float32),
            mean=0.1 * jax.random.normal(k2, (c,), jnp.float32),
            var=jnp.abs(jax.random.normal(k3, (c,), jnp.float32)) + 0.5,
        )

    bn1 = make_bn(ks[4], planes)
    bn2 = make_bn(ks[5], planes)
    bn3 = make_bn(ks[6], planes * EXPANSION)

    out = jax.block_until_ready(bottleneck_pallas(x, w1, w2, w3, bn1, bn2, bn3))
    ref = jax.block_until_ready(bottleneck_ref(x, w1, w2, w3, bn1, bn2, bn3))

    assert out.shape == (N, H, W, inplanes)
    assert out.dtype == jnp.bfloat16          # bf16 writeback per perf review
    np.testing.assert_allclose(np.asarray(out.astype(jnp.float32)),
                               np.asarray(ref),
                               rtol=2e-2, atol=2e-2)
    print("KERNEL_OK")
</pallas_src>

<mosaic_0001>
module attributes {stable_mosaic.version = 11 : i64} {
  func.func @_bottleneck_kernel(%arg0: i32, %arg1: memref<1x256x16xbf16, #tpu.memory_space<vmem>>, %arg2: memref<16x4xbf16, #tpu.memory_space<vmem>>, %arg3: memref<1x4xf32, #tpu.memory_space<vmem>>, %arg4: memref<1x4xf32, #tpu.memory_space<vmem>>, %arg5: memref<36x4xbf16, #tpu.memory_space<vmem>>, %arg6: memref<1x4xf32, #tpu.memory_space<vmem>>, %arg7: memref<1x4xf32, #tpu.memory_space<vmem>>, %arg8: memref<4x16xbf16, #tpu.memory_space<vmem>>, %arg9: memref<1x16xf32, #tpu.memory_space<vmem>>, %arg10: memref<1x16xf32, #tpu.memory_space<vmem>>, %arg11: memref<1x256x16xbf16, #tpu.memory_space<vmem>>, %arg12: memref<16x16x36xbf16, #tpu.memory_space<vmem>>) attributes {dimension_semantics = [#tpu.dimension_semantics<parallel>], iteration_bounds = array<i64: 2>, scalar_prefetch = 0 : i64, scratch_operands = 1 : i64, tpu.core_type = #tpu.core_type<tc>, window_params = [{transform_indices = @transform_0, window_bounds = array<i64: 1, 256, 16>}, {pipeline_mode = #tpu.pipeline_mode<synchronous>, transform_indices = @transform_1, window_bounds = array<i64: 16, 4>}, {pipeline_mode = #tpu.pipeline_mode<synchronous>, transform_indices = @transform_2, window_bounds = array<i64: 1, 4>}, {pipeline_mode = #tpu.pipeline_mode<synchronous>, transform_indices = @transform_3, window_bounds = array<i64: 1, 4>}, {pipeline_mode = #tpu.pipeline_mode<synchronous>, transform_indices = @transform_4, window_bounds = array<i64: 36, 4>}, {pipeline_mode = #tpu.pipeline_mode<synchronous>, transform_indices = @transform_5, window_bounds = array<i64: 1, 4>}, {pipeline_mode = #tpu.pipeline_mode<synchronous>, transform_indices = @transform_6, window_bounds = array<i64: 1, 4>}, {pipeline_mode = #tpu.pipeline_mode<synchronous>, transform_indices = @transform_7, window_bounds = array<i64: 4, 16>}, {pipeline_mode = #tpu.pipeline_mode<synchronous>, transform_indices = @transform_8, window_bounds = array<i64: 1, 16>}, {pipeline_mode = #tpu.pipeline_mode<synchronous>, transform_indices = @transform_9, window_bounds = array<i64: 1, 16>}, {transform_indices = @transform_10, window_bounds = array<i64: 1, 256, 16>}]} {
    %c0 = arith.constant 0 : index
    %c0_0 = arith.constant 0 : index
    %c0_1 = arith.constant 0 : index
    %0 = vector.load %arg1[%c0, %c0_0, %c0_1] : memref<1x256x16xbf16, #tpu.memory_space<vmem>>, vector<1x256x16xbf16>
    %1 = vector.shape_cast %0 : vector<1x256x16xbf16> to vector<256x16xbf16>
    %c0_2 = arith.constant 0 : index
    %c0_3 = arith.constant 0 : index
    %2 = vector.load %arg2[%c0_2, %c0_3] : memref<16x4xbf16, #tpu.memory_space<vmem>>, vector<16x4xbf16>
    %cst = arith.constant dense<0.000000e+00> : vector<256x4xf32>
    %3 = tpu.matmul %1, %2, %cst {dimension_numbers = #tpu.dot_dimension_numbers<[1], [0], [0], [1], [0, 0, 1, 1], [], []>} : vector<256x16xbf16>, vector<16x4xbf16>, vector<256x4xf32> -> vector<256x4xf32>
    %c0_4 = arith.constant 0 : index
    %c0_5 = arith.constant 0 : index
    %4 = vector.load %arg3[%c0_4, %c0_5] : memref<1x4xf32, #tpu.memory_space<vmem>>, vector<1x4xf32>
    %5 = vector.broadcast %4 : vector<1x4xf32> to vector<256x4xf32>
    %6 = arith.mulf %3, %5 : vector<256x4xf32>
    %c0_6 = arith.constant 0 : index
    %c0_7 = arith.constant 0 : index
    %7 = vector.load %arg4[%c0_6, %c0_7] : memref<1x4xf32, #tpu.memory_space<vmem>>, vector<1x4xf32>
    %8 = vector.broadcast %7 : vector<1x4xf32> to vector<256x4xf32>
    %9 = arith.addf %6, %8 : vector<256x4xf32>
    %cst_8 = arith.constant 0.000000e+00 : f32
    %10 = vector.broadcast %cst_8 : f32 to vector<256x4xf32>
    %11 = arith.maximumf %9, %10 : vector<256x4xf32>
    %12 = vector.shape_cast %11 : vector<256x4xf32> to vector<16x16x4xf32>
    %13 = arith.truncf %12 : vector<16x16x4xf32> to vector<16x16x4xbf16>
    %cst_9 = arith.constant 0.000000e+00 : bf16
    %14 = vector.broadcast %cst_9 : bf16 to vector<1x16x36xbf16>
    %c0_10 = arith.constant 0 : index
    %c0_11 = arith.constant 0 : index
    %c0_12 = arith.constant 0 : index
    %15 = vector.load %arg12[%c0_10, %c0_11, %c0_12] : memref<16x16x36xbf16, #tpu.memory_space<vmem>>, vector<1x16x36xbf16>
    tpu.vector_store %arg12[%c0_10, %c0_11, %c0_12], %14 {strides = array<i32>} : memref<16x16x36xbf16, #tpu.memory_space<vmem>>, vector<1x16x36xbf16>,
    %cst_13 = arith.constant 0.000000e+00 : bf16
    %16 = vector.broadcast %cst_13 : bf16 to vector<1x16x36xbf16>
    %c15 = arith.constant 15 : index
    %c0_14 = arith.constant 0 : index
    %c0_15 = arith.constant 0 : index
    %17 = vector.load %arg12[%c15, %c0_14, %c0_15] : memref<16x16x36xbf16, #tpu.memory_space<vmem>>, vector<1x16x36xbf16>
    tpu.vector_store %arg12[%c15, %c0_14, %c0_15], %16 {strides = array<i32>} : memref<16x16x36xbf16, #tpu.memory_space<vmem>>, vector<1x16x36xbf16>,
    %cst_16 = arith.constant 0.000000e+00 : bf16
    %18 = vector.broadcast %cst_16 : bf16 to vector<16x1x36xbf16>
    %c0_17 = arith.constant 0 : index
    %c0_18 = arith.constant 0 : index
    %c0_19 = arith.constant 0 : index
    %19 = vector.load %arg12[%c0_17, %c0_18, %c0_19] : memref<16x16x36xbf16, #tpu.memory_space<vmem>>, vector<16x1x36xbf16>
    tpu.vector_store %arg12[%c0_17, %c0_18, %c0_19], %18 {strides = array<i32>} : memref<16x16x36xbf16, #tpu.memory_space<vmem>>, vector<16x1x36xbf16>,
    %cst_20 = arith.constant 0.000000e+00 : bf16
    %20 = vector.broadcast %cst_20 : bf16 to vector<16x1x36xbf16>
    %c0_21 = arith.constant 0 : index
    %c15_22 = arith.constant 15 : index
    %c0_23 = arith.constant 0 : index
    %21 = vector.load %arg12[%c0_21, %c15_22, %c0_23] : memref<16x16x36xbf16, #tpu.memory_space<vmem>>, vector<16x1x36xbf16>
    tpu.vector_store %arg12[%c0_21, %c15_22, %c0_23], %20 {strides = array<i32>} : memref<16x16x36xbf16, #tpu.memory_space<vmem>>, vector<16x1x36xbf16>,
    %22 = vector.extract_strided_slice %13 {offsets = [0, 0, 0], sizes = [15, 15, 4], strides = [1, 1, 1]} : vector<16x16x4xbf16> to vector<15x15x4xbf16>
    %c1 = arith.constant 1 : index
    %c1_24 = arith.constant 1 : index
    %c0_25 = arith.constant 0 : index
    %23 = vector.load %arg12[%c1, %c1_24, %c0_25] : memref<16x16x36xbf16, #tpu.memory_space<vmem>>, vector<15x15x4xbf16>
    tpu.vector_store %arg12[%c1, %c1_24, %c0_25], %22 {strides = array<i32>} : memref<16x16x36xbf16, #tpu.memory_space<vmem>>, vector<15x15x4xbf16>,
    %24 = vector.extract_strided_slice %13 {offsets = [0, 0, 0], sizes = [15, 16, 4], strides = [1, 1, 1]} : vector<16x16x4xbf16> to vector<15x16x4xbf16>
    %c1_26 = arith.constant 1 : index
    %c0_27 = arith.constant 0 : index
    %c4 = arith.constant 4 : index
    %25 = vector.load %arg12[%c1_26, %c0_27, %c4] : memref<16x16x36xbf16, #tpu.memory_space<vmem>>, vector<15x16x4xbf16>
    tpu.vector_store %arg12[%c1_26, %c0_27, %c4], %24 {strides = array<i32>} : memref<16x16x36xbf16, #tpu.memory_space<vmem>>, vector<15x16x4xbf16>,
    %26 = vector.extract_strided_slice %13 {offsets = [0, 1, 0], sizes = [15, 15, 4], strides = [1, 1, 1]} : vector<16x16x4xbf16> to vector<15x15x4xbf16>
    %c1_28 = arith.constant 1 : index
    %c0_29 = arith.constant 0 : index
    %c8 = arith.constant 8 : index
    %27 = vector.load %arg12[%c1_28, %c0_29, %c8] : memref<16x16x36xbf16, #tpu.memory_space<vmem>>, vector<15x15x4xbf16>
    tpu.vector_store %arg12[%c1_28, %c0_29, %c8], %26 {strides = array<i32>} : memref<16x16x36xbf16, #tpu.memory_space<vmem>>, vector<15x15x4xbf16>,
    %28 = vector.extract_strided_slice %13 {offsets = [0, 0, 0], sizes = [16, 15, 4], strides = [1, 1, 1]} : vector<16x16x4xbf16> to vector<16x15x4xbf16>
    %c0_30 = arith.constant 0 : index
    %c1_31 = arith.constant 1 : index
    %c12 = arith.constant 12 : index
    %29 = vector.load %arg12[%c0_30, %c1_31, %c12] : memref<16x16x36xbf16, #tpu.memory_space<vmem>>, vector<16x15x4xbf16>
    tpu.vector_store %arg12[%c0_30, %c1_31, %c12], %28 {strides = array<i32>} : memref<16x16x36xbf16, #tpu.memory_space<vmem>>, vector<16x15x4xbf16>,
    %c0_32 = arith.constant 0 : index
    %c0_33 = arith.constant 0 : index
    %c16 = arith.constant 16 : index
    %30 = vector.load %arg12[%c0_32, %c0_33, %c16] : memref<16x16x36xbf16, #tpu.memory_space<vmem>>, vector<16x16x4xbf16>
    tpu.vector_store %arg12[%c0_32, %c0_33, %c16], %13 {strides = array<i32>} : memref<16x16x36xbf16, #tpu.memory_space<vmem>>, vector<16x16x4xbf16>,
    %31 = vector.extract_strided_slice %13 {offsets = [0, 1, 0], sizes = [16, 15, 4], strides = [1, 1, 1]} : vector<16x16x4xbf16> to vector<16x15x4xbf16>
    %c0_34 = arith.constant 0 : index
    %c0_35 = arith.constant 0 : index
    %c20 = arith.constant 20 : index
    %32 = vector.load %arg12[%c0_34, %c0_35, %c20] : memref<16x16x36xbf16, #tpu.memory_space<vmem>>, vector<16x15x4xbf16>
    tpu.vector_store %arg12[%c0_34, %c0_35, %c20], %31 {strides = array<i32>} : memref<16x16x36xbf16, #tpu.memory_space<vmem>>, vector<16x15x4xbf16>,
    %33 = vector.extract_strided_slice %13 {offsets = [1, 0, 0], sizes = [15, 15, 4], strides = [1, 1, 1]} : vector<16x16x4xbf16> to vector<15x15x4xbf16>
    %c0_36 = arith.constant 0 : index
    %c1_37 = arith.constant 1 : index
    %c24 = arith.constant 24 : index
    %34 = vector.load %arg12[%c0_36, %c1_37, %c24] : memref<16x16x36xbf16, #tpu.memory_space<vmem>>, vector<15x15x4xbf16>
    tpu.vector_store %arg12[%c0_36, %c1_37, %c24], %33 {strides = array<i32>} : memref<16x16x36xbf16, #tpu.memory_space<vmem>>, vector<15x15x4xbf16>,
    %35 = vector.extract_strided_slice %13 {offsets = [1, 0, 0], sizes = [15, 16, 4], strides = [1, 1, 1]} : vector<16x16x4xbf16> to vector<15x16x4xbf16>
    %c0_38 = arith.constant 0 : index
    %c0_39 = arith.constant 0 : index
    %c28 = arith.constant 28 : index
    %36 = vector.load %arg12[%c0_38, %c0_39, %c28] : memref<16x16x36xbf16, #tpu.memory_space<vmem>>, vector<15x16x4xbf16>
    tpu.vector_store %arg12[%c0_38, %c0_39, %c28], %35 {strides = array<i32>} : memref<16x16x36xbf16, #tpu.memory_space<vmem>>, vector<15x16x4xbf16>,
    %37 = vector.extract_strided_slice %13 {offsets = [1, 1, 0], sizes = [15, 15, 4], strides = [1, 1, 1]} : vector<16x16x4xbf16> to vector<15x15x4xbf16>
    %c0_40 = arith.constant 0 : index
    %c0_41 = arith.constant 0 : index
    %c32 = arith.constant 32 : index
    %38 = vector.load %arg12[%c0_40, %c0_41, %c32] : memref<16x16x36xbf16, #tpu.memory_space<vmem>>, vector<15x15x4xbf16>
    tpu.vector_store %arg12[%c0_40, %c0_41, %c32], %37 {strides = array<i32>} : memref<16x16x36xbf16, #tpu.memory_space<vmem>>, vector<15x15x4xbf16>,
    %c0_42 = arith.constant 0 : index
    %c0_43 = arith.constant 0 : index
    %c0_44 = arith.constant 0 : index
    %39 = vector.load %arg12[%c0_42, %c0_43, %c0_44] : memref<16x16x36xbf16, #tpu.memory_space<vmem>>, vector<16x16x36xbf16>
    %40 = vector.shape_cast %39 : vector<16x16x36xbf16> to vector<256x36xbf16>
    %c0_45 = arith.constant 0 : index
    %c0_46 = arith.constant 0 : index
    %41 = vector.load %arg5[%c0_45, %c0_46] : memref<36x4xbf16, #tpu.memory_space<vmem>>, vector<36x4xbf16>
    %cst_47 = arith.constant dense<0.000000e+00> : vector<256x4xf32>
    %42 = tpu.matmul %40, %41, %cst_47 {dimension_numbers = #tpu.dot_dimension_numbers<[1], [0], [0], [1], [0, 0, 1, 1], [], []>} : vector<256x36xbf16>, vector<36x4xbf16>, vector<256x4xf32> -> vector<256x4xf32>
    %c0_48 = arith.constant 0 : index
    %c0_49 = arith.constant 0 : index
    %43 = vector.load %arg6[%c0_48, %c0_49] : memref<1x4xf32, #tpu.memory_space<vmem>>, vector<1x4xf32>
    %44 = vector.broadcast %43 : vector<1x4xf32> to vector<256x4xf32>
    %45 = arith.mulf %42, %44 : vector<256x4xf32>
    %c0_50 = arith.constant 0 : index
    %c0_51 = arith.constant 0 : index
    %46 = vector.load %arg7[%c0_50, %c0_51] : memref<1x4xf32, #tpu.memory_space<vmem>>, vector<1x4xf32>
    %47 = vector.broadcast %46 : vector<1x4xf32> to vector<256x4xf32>
    %48 = arith.addf %45, %47 : vector<256x4xf32>
    %cst_52 = arith.constant 0.000000e+00 : f32
    %49 = vector.broadcast %cst_52 : f32 to vector<256x4xf32>
    %50 = arith.maximumf %48, %49 : vector<256x4xf32>
    %51 = arith.truncf %50 : vector<256x4xf32> to vector<256x4xbf16>
    %c0_53 = arith.constant 0 : index
    %c0_54 = arith.constant 0 : index
    %52 = vector.load %arg8[%c0_53, %c0_54] : memref<4x16xbf16, #tpu.memory_space<vmem>>, vector<4x16xbf16>
    %cst_55 = arith.constant dense<0.000000e+00> : vector<256x16xf32>
    %53 = tpu.matmul %51, %52, %cst_55 {dimension_numbers = #tpu.dot_dimension_numbers<[1], [0], [0], [1], [0, 0, 1, 1], [], []>} : vector<256x4xbf16>, vector<4x16xbf16>, vector<256x16xf32> -> vector<256x16xf32>
    %c0_56 = arith.constant 0 : index
    %c0_57 = arith.constant 0 : index
    %54 = vector.load %arg9[%c0_56, %c0_57] : memref<1x16xf32, #tpu.memory_space<vmem>>, vector<1x16xf32>
    %55 = vector.broadcast %54 : vector<1x16xf32> to vector<256x16xf32>
    %56 = arith.mulf %53, %55 : vector<256x16xf32>
    %c0_58 = arith.constant 0 : index
    %c0_59 = arith.constant 0 : index
    %57 = vector.load %arg10[%c0_58, %c0_59] : memref<1x16xf32, #tpu.memory_space<vmem>>, vector<1x16xf32>
    %58 = vector.broadcast %57 : vector<1x16xf32> to vector<256x16xf32>
    %59 = arith.addf %56, %58 : vector<256x16xf32>
    %c0_60 = arith.constant 0 : index
    %c0_61 = arith.constant 0 : index
    %c0_62 = arith.constant 0 : index
    %60 = vector.load %arg1[%c0_60, %c0_61, %c0_62] : memref<1x256x16xbf16, #tpu.memory_space<vmem>>, vector<1x256x16xbf16>
    %61 = vector.shape_cast %60 : vector<1x256x16xbf16> to vector<256x16xbf16>
    %62 = arith.extf %61 : vector<256x16xbf16> to vector<256x16xf32>
    %63 = arith.addf %59, %62 : vector<256x16xf32>
    %cst_63 = arith.constant 0.000000e+00 : f32
    %64 = vector.broadcast %cst_63 : f32 to vector<256x16xf32>
    %65 = arith.maximumf %63, %64 : vector<256x16xf32>
    %66 = arith.truncf %65 : vector<256x16xf32> to vector<256x16xbf16>
    %c0_64 = arith.constant 0 : index
    %c0_65 = arith.constant 0 : index
    %c0_66 = arith.constant 0 : index
    %67 = vector.load %arg11[%c0_64, %c0_65, %c0_66] : memref<1x256x16xbf16, #tpu.memory_space<vmem>>, vector<1x256x16xbf16>
    %68 = vector.shape_cast %67 : vector<1x256x16xbf16> to vector<256x16xbf16>
    %69 = vector.shape_cast %66 : vector<256x16xbf16> to vector<1x256x16xbf16>
    tpu.vector_store %arg11[%c0_64, %c0_65, %c0_66], %69 {strides = array<i32>} : memref<1x256x16xbf16, #tpu.memory_space<vmem>>, vector<1x256x16xbf16>,
    return
  }
  func.func @transform_0(%arg0: i32) -> (i32, i32, i32) {
    %c0_i32 = arith.constant 0 : i32
    %c0_i32_0 = arith.constant 0 : i32
    %c0_i32_1 = arith.constant 0 : i32
    return %arg0, %c0_i32, %c0_i32_0 : i32, i32, i32
  }
  func.func @transform_1(%arg0: i32) -> (i32, i32) {
    %c0_i32 = arith.constant 0 : i32
    %c0_i32_0 = arith.constant 0 : i32
    %c0_i32_1 = arith.constant 0 : i32
    return %c0_i32, %c0_i32_0 : i32, i32
  }
  func.func @transform_2(%arg0: i32) -> (i32, i32) {
    %c0_i32 = arith.constant 0 : i32
    %c0_i32_0 = arith.constant 0 : i32
    %c0_i32_1 = arith.constant 0 : i32
    return %c0_i32, %c0_i32_0 : i32, i32
  }
  func.func @transform_3(%arg0: i32) -> (i32, i32) {
    %c0_i32 = arith.constant 0 : i32
    %c0_i32_0 = arith.constant 0 : i32
    %c0_i32_1 = arith.constant 0 : i32
    return %c0_i32, %c0_i32_0 : i32, i32
  }
  func.func @transform_4(%arg0: i32) -> (i32, i32) {
    %c0_i32 = arith.constant 0 : i32
    %c0_i32_0 = arith.constant 0 : i32
    %c0_i32_1 = arith.constant 0 : i32
    return %c0_i32, %c0_i32_0 : i32, i32
  }
  func.func @transform_5(%arg0: i32) -> (i32, i32) {
    %c0_i32 = arith.constant 0 : i32
    %c0_i32_0 = arith.constant 0 : i32
    %c0_i32_1 = arith.constant 0 : i32
    return %c0_i32, %c0_i32_0 : i32, i32
  }
  func.func @transform_6(%arg0: i32) -> (i32, i32) {
    %c0_i32 = arith.constant 0 : i32
    %c0_i32_0 = arith.constant 0 : i32
    %c0_i32_1 = arith.constant 0 : i32
    return %c0_i32, %c0_i32_0 : i32, i32
  }
  func.func @transform_7(%arg0: i32) -> (i32, i32) {
    %c0_i32 = arith.constant 0 : i32
    %c0_i32_0 = arith.constant 0 : i32
    %c0_i32_1 = arith.constant 0 : i32
    return %c0_i32, %c0_i32_0 : i32, i32
  }
  func.func @transform_8(%arg0: i32) -> (i32, i32) {
    %c0_i32 = arith.constant 0 : i32
    %c0_i32_0 = arith.constant 0 : i32
    %c0_i32_1 = arith.constant 0 : i32
    return %c0_i32, %c0_i32_0 : i32, i32
  }
  func.func @transform_9(%arg0: i32) -> (i32, i32) {
    %c0_i32 = arith.constant 0 : i32
    %c0_i32_0 = arith.constant 0 : i32
    %c0_i32_1 = arith.constant 0 : i32
    return %c0_i32, %c0_i32_0 : i32, i32
  }
  func.func @transform_10(%arg0: i32) -> (i32, i32, i32) {
    %c0_i32 = arith.constant 0 : i32
    %c0_i32_0 = arith.constant 0 : i32
    %c0_i32_1 = arith.constant 0 : i32
    return %arg0, %c0_i32, %c0_i32_0 : i32, i32, i32
  }
}

module attributes {stable_mosaic.version = 11 : i64} {
  func.func @_bottleneck_kernel(%arg0: i32, %arg1: memref<1x256x16xbf16, #tpu.memory_space<vmem>>, %arg2: memref<16x4xbf16, #tpu.memory_space<vmem>>, %arg3: memref<1x4xf32, #tpu.memory_space<vmem>>, %arg4: memref<1x4xf32, #tpu.memory_space<vmem>>, %arg5: memref<36x4xbf16, #tpu.memory_space<vmem>>, %arg6: memref<1x4xf32, #tpu.memory_space<vmem>>, %arg7: memref<1x4xf32, #tpu.memory_space<vmem>>, %arg8: memref<4x16xbf16, #tpu.memory_space<vmem>>, %arg9: memref<1x16xf32, #tpu.memory_space<vmem>>, %arg10: memref<1x16xf32, #tpu.memory_space<vmem>>, %arg11: memref<1x256x16xbf16, #tpu.memory_space<vmem>>, %arg12: memref<16x16x36xbf16, #tpu.memory_space<vmem>>) attributes {dimension_semantics = [#tpu.dimension_semantics<parallel>], iteration_bounds = array<i64: 2>, scalar_prefetch = 0 : i64, scratch_operands = 1 : i64, tpu.core_type = #tpu.core_type<tc>, window_params = [{transform_indices = @transform_0, window_bounds = array<i64: 1, 256, 16>}, {pipeline_mode = #tpu.pipeline_mode<synchronous>, transform_indices = @transform_1, window_bounds = array<i64: 16, 4>}, {pipeline_mode = #tpu.pipeline_mode<synchronous>, transform_indices = @transform_2, window_bounds = array<i64: 1, 4>}, {pipeline_mode = #tpu.pipeline_mode<synchronous>, transform_indices = @transform_3, window_bounds = array<i64: 1, 4>}, {pipeline_mode = #tpu.pipeline_mode<synchronous>, transform_indices = @transform_4, window_bounds = array<i64: 36, 4>}, {pipeline_mode = #tpu.pipeline_mode<synchronous>, transform_indices = @transform_5, window_bounds = array<i64: 1, 4>}, {pipeline_mode = #tpu.pipeline_mode<synchronous>, transform_indices = @transform_6, window_bounds = array<i64: 1, 4>}, {pipeline_mode = #tpu.pipeline_mode<synchronous>, transform_indices = @transform_7, window_bounds = array<i64: 4, 16>}, {pipeline_mode = #tpu.pipeline_mode<synchronous>, transform_indices = @transform_8, window_bounds = array<i64: 1, 16>}, {pipeline_mode = #tpu.pipeline_mode<synchronous>, transform_indices = @transform_9, window_bounds = array<i64: 1, 16>}, {transform_indices = @transform_10, window_bounds = array<i64: 1, 256, 16>}]} {
    %c0 = arith.constant 0 : index
    %c0_0 = arith.constant 0 : index
    %c0_1 = arith.constant 0 : index
    %0 = vector.load %arg1[%c0, %c0_0, %c0_1] : memref<1x256x16xbf16, #tpu.memory_space<vmem>>, vector<1x256x16xbf16>
    %1 = vector.shape_cast %0 : vector<1x256x16xbf16> to vector<256x16xbf16>
    %c0_2 = arith.constant 0 : index
    %c0_3 = arith.constant 0 : index
    %2 = vector.load %arg2[%c0_2, %c0_3] : memref<16x4xbf16, #tpu.memory_space<vmem>>, vector<16x4xbf16>
    %cst = arith.constant dense<0.000000e+00> : vector<256x4xf32>
    %3 = tpu.matmul %1, %2, %cst {dimension_numbers = #tpu.dot_dimension_numbers<[1], [0], [0], [1], [0, 0, 1, 1], [], []>} : vector<256x16xbf16>, vector<16x4xbf16>, vector<256x4xf32> -> vector<256x4xf32>
    %c0_4 = arith.constant 0 : index
    %c0_5 = arith.constant 0 : index
    %4 = vector.load %arg3[%c0_4, %c0_5] : memref<1x4xf32, #tpu.memory_space<vmem>>, vector<1x4xf32>
    %5 = vector.broadcast %4 : vector<1x4xf32> to vector<256x4xf32>
    %6 = arith.mulf %3, %5 : vector<256x4xf32>
    %c0_6 = arith.constant 0 : index
    %c0_7 = arith.constant 0 : index
    %7 = vector.load %arg4[%c0_6, %c0_7] : memref<1x4xf32, #tpu.memory_space<vmem>>, vector<1x4xf32>
    %8 = vector.broadcast %7 : vector<1x4xf32> to vector<256x4xf32>
    %9 = arith.addf %6, %8 : vector<256x4xf32>
    %cst_8 = arith.constant 0.000000e+00 : f32
    %10 = vector.broadcast %cst_8 : f32 to vector<256x4xf32>
    %11 = arith.maximumf %9, %10 : vector<256x4xf32>
    %12 = vector.shape_cast %11 : vector<256x4xf32> to vector<16x16x4xf32>
    %13 = arith.truncf %12 : vector<16x16x4xf32> to vector<16x16x4xbf16>
    %cst_9 = arith.constant 0.000000e+00 : bf16
    %14 = vector.broadcast %cst_9 : bf16 to vector<1x16x36xbf16>
    %c0_10 = arith.constant 0 : index
    %c0_11 = arith.constant 0 : index
    %c0_12 = arith.constant 0 : index
    %15 = vector.load %arg12[%c0_10, %c0_11, %c0_12] : memref<16x16x36xbf16, #tpu.memory_space<vmem>>, vector<1x16x36xbf16>
    tpu.vector_store %arg12[%c0_10, %c0_11, %c0_12], %14 {strides = array<i32>} : memref<16x16x36xbf16, #tpu.memory_space<vmem>>, vector<1x16x36xbf16>,
    %cst_13 = arith.constant 0.000000e+00 : bf16
    %16 = vector.broadcast %cst_13 : bf16 to vector<1x16x36xbf16>
    %c15 = arith.constant 15 : index
    %c0_14 = arith.constant 0 : index
    %c0_15 = arith.constant 0 : index
    %17 = vector.load %arg12[%c15, %c0_14, %c0_15] : memref<16x16x36xbf16, #tpu.memory_space<vmem>>, vector<1x16x36xbf16>
    tpu.vector_store %arg12[%c15, %c0_14, %c0_15], %16 {strides = array<i32>} : memref<16x16x36xbf16, #tpu.memory_space<vmem>>, vector<1x16x36xbf16>,
    %cst_16 = arith.constant 0.000000e+00 : bf16
    %18 = vector.broadcast %cst_16 : bf16 to vector<16x1x36xbf16>
    %c0_17 = arith.constant 0 : index
    %c0_18 = arith.constant 0 : index
    %c0_19 = arith.constant 0 : index
    %19 = vector.load %arg12[%c0_17, %c0_18, %c0_19] : memref<16x16x36xbf16, #tpu.memory_space<vmem>>, vector<16x1x36xbf16>
    tpu.vector_store %arg12[%c0_17, %c0_18, %c0_19], %18 {strides = array<i32>} : memref<16x16x36xbf16, #tpu.memory_space<vmem>>, vector<16x1x36xbf16>,
    %cst_20 = arith.constant 0.000000e+00 : bf16
    %20 = vector.broadcast %cst_20 : bf16 to vector<16x1x36xbf16>
    %c0_21 = arith.constant 0 : index
    %c15_22 = arith.constant 15 : index
    %c0_23 = arith.constant 0 : index
    %21 = vector.load %arg12[%c0_21, %c15_22, %c0_23] : memref<16x16x36xbf16, #tpu.memory_space<vmem>>, vector<16x1x36xbf16>
    tpu.vector_store %arg12[%c0_21, %c15_22, %c0_23], %20 {strides = array<i32>} : memref<16x16x36xbf16, #tpu.memory_space<vmem>>, vector<16x1x36xbf16>,
    %22 = vector.extract_strided_slice %13 {offsets = [0, 0, 0], sizes = [15, 15, 4], strides = [1, 1, 1]} : vector<16x16x4xbf16> to vector<15x15x4xbf16>
    %c1 = arith.constant 1 : index
    %c1_24 = arith.constant 1 : index
    %c0_25 = arith.constant 0 : index
    %23 = vector.load %arg12[%c1, %c1_24, %c0_25] : memref<16x16x36xbf16, #tpu.memory_space<vmem>>, vector<15x15x4xbf16>
    tpu.vector_store %arg12[%c1, %c1_24, %c0_25], %22 {strides = array<i32>} : memref<16x16x36xbf16, #tpu.memory_space<vmem>>, vector<15x15x4xbf16>,
    %24 = vector.extract_strided_slice %13 {offsets = [0, 0, 0], sizes = [15, 16, 4], strides = [1, 1, 1]} : vector<16x16x4xbf16> to vector<15x16x4xbf16>
    %c1_26 = arith.constant 1 : index
    %c0_27 = arith.constant 0 : index
    %c4 = arith.constant 4 : index
    %25 = vector.load %arg12[%c1_26, %c0_27, %c4] : memref<16x16x36xbf16, #tpu.memory_space<vmem>>, vector<15x16x4xbf16>
    tpu.vector_store %arg12[%c1_26, %c0_27, %c4], %24 {strides = array<i32>} : memref<16x16x36xbf16, #tpu.memory_space<vmem>>, vector<15x16x4xbf16>,
    %26 = vector.extract_strided_slice %13 {offsets = [0, 1, 0], sizes = [15, 15, 4], strides = [1, 1, 1]} : vector<16x16x4xbf16> to vector<15x15x4xbf16>
    %c1_28 = arith.constant 1 : index
    %c0_29 = arith.constant 0 : index
    %c8 = arith.constant 8 : index
    %27 = vector.load %arg12[%c1_28, %c0_29, %c8] : memref<16x16x36xbf16, #tpu.memory_space<vmem>>, vector<15x15x4xbf16>
    tpu.vector_store %arg12[%c1_28, %c0_29, %c8], %26 {strides = array<i32>} : memref<16x16x36xbf16, #tpu.memory_space<vmem>>, vector<15x15x4xbf16>,
    %28 = vector.extract_strided_slice %13 {offsets = [0, 0, 0], sizes = [16, 15, 4], strides = [1, 1, 1]} : vector<16x16x4xbf16> to vector<16x15x4xbf16>
    %c0_30 = arith.constant 0 : index
    %c1_31 = arith.constant 1 : index
    %c12 = arith.constant 12 : index
    %29 = vector.load %arg12[%c0_30, %c1_31, %c12] : memref<16x16x36xbf16, #tpu.memory_space<vmem>>, vector<16x15x4xbf16>
    tpu.vector_store %arg12[%c0_30, %c1_31, %c12], %28 {strides = array<i32>} : memref<16x16x36xbf16, #tpu.memory_space<vmem>>, vector<16x15x4xbf16>,
    %c0_32 = arith.constant 0 : index
    %c0_33 = arith.constant 0 : index
    %c16 = arith.constant 16 : index
    %30 = vector.load %arg12[%c0_32, %c0_33, %c16] : memref<16x16x36xbf16, #tpu.memory_space<vmem>>, vector<16x16x4xbf16>
    tpu.vector_store %arg12[%c0_32, %c0_33, %c16], %13 {strides = array<i32>} : memref<16x16x36xbf16, #tpu.memory_space<vmem>>, vector<16x16x4xbf16>,
    %31 = vector.extract_strided_slice %13 {offsets = [0, 1, 0], sizes = [16, 15, 4], strides = [1, 1, 1]} : vector<16x16x4xbf16> to vector<16x15x4xbf16>
    %c0_34 = arith.constant 0 : index
    %c0_35 = arith.constant 0 : index
    %c20 = arith.constant 20 : index
    %32 = vector.load %arg12[%c0_34, %c0_35, %c20] : memref<16x16x36xbf16, #tpu.memory_space<vmem>>, vector<16x15x4xbf16>
    tpu.vector_store %arg12[%c0_34, %c0_35, %c20], %31 {strides = array<i32>} : memref<16x16x36xbf16, #tpu.memory_space<vmem>>, vector<16x15x4xbf16>,
    %33 = vector.extract_strided_slice %13 {offsets = [1, 0, 0], sizes = [15, 15, 4], strides = [1, 1, 1]} : vector<16x16x4xbf16> to vector<15x15x4xbf16>
    %c0_36 = arith.constant 0 : index
    %c1_37 = arith.constant 1 : index
    %c24 = arith.constant 24 : index
    %34 = vector.load %arg12[%c0_36, %c1_37, %c24] : memref<16x16x36xbf16, #tpu.memory_space<vmem>>, vector<15x15x4xbf16>
    tpu.vector_store %arg12[%c0_36, %c1_37, %c24], %33 {strides = array<i32>} : memref<16x16x36xbf16, #tpu.memory_space<vmem>>, vector<15x15x4xbf16>,
    %35 = vector.extract_strided_slice %13 {offsets = [1, 0, 0], sizes = [15, 16, 4], strides = [1, 1, 1]} : vector<16x16x4xbf16> to vector<15x16x4xbf16>
    %c0_38 = arith.constant 0 : index
    %c0_39 = arith.constant 0 : index
    %c28 = arith.constant 28 : index
    %36 = vector.load %arg12[%c0_38, %c0_39, %c28] : memref<16x16x36xbf16, #tpu.memory_space<vmem>>, vector<15x16x4xbf16>
    tpu.vector_store %arg12[%c0_38, %c0_39, %c28], %35 {strides = array<i32>} : memref<16x16x36xbf16, #tpu.memory_space<vmem>>, vector<15x16x4xbf16>,
    %37 = vector.extract_strided_slice %13 {offsets = [1, 1, 0], sizes = [15, 15, 4], strides = [1, 1, 1]} : vector<16x16x4xbf16> to vector<15x15x4xbf16>
    %c0_40 = arith.constant 0 : index
    %c0_41 = arith.constant 0 : index
    %c32 = arith.constant 32 : index
    %38 = vector.load %arg12[%c0_40, %c0_41, %c32] : memref<16x16x36xbf16, #tpu.memory_space<vmem>>, vector<15x15x4xbf16>
    tpu.vector_store %arg12[%c0_40, %c0_41, %c32], %37 {strides = array<i32>} : memref<16x16x36xbf16, #tpu.memory_space<vmem>>, vector<15x15x4xbf16>,
    %c0_42 = arith.constant 0 : index
    %c0_43 = arith.constant 0 : index
    %c0_44 = arith.constant 0 : index
    %39 = vector.load %arg12[%c0_42, %c0_43, %c0_44] : memref<16x16x36xbf16, #tpu.memory_space<vmem>>, vector<16x16x36xbf16>
    %40 = vector.shape_cast %39 : vector<16x16x36xbf16> to vector<256x36xbf16>
    %c0_45 = arith.constant 0 : index
    %c0_46 = arith.constant 0 : index
    %41 = vector.load %arg5[%c0_45, %c0_46] : memref<36x4xbf16, #tpu.memory_space<vmem>>, vector<36x4xbf16>
    %cst_47 = arith.constant dense<0.000000e+00> : vector<256x4xf32>
    %42 = tpu.matmul %40, %41, %cst_47 {dimension_numbers = #tpu.dot_dimension_numbers<[1], [0], [0], [1], [0, 0, 1, 1], [], []>} : vector<256x36xbf16>, vector<36x4xbf16>, vector<256x4xf32> -> vector<256x4xf32>
    %c0_48 = arith.constant 0 : index
    %c0_49 = arith.constant 0 : index
    %43 = vector.load %arg6[%c0_48, %c0_49] : memref<1x4xf32, #tpu.memory_space<vmem>>, vector<1x4xf32>
    %44 = vector.broadcast %43 : vector<1x4xf32> to vector<256x4xf32>
    %45 = arith.mulf %42, %44 : vector<256x4xf32>
    %c0_50 = arith.constant 0 : index
    %c0_51 = arith.constant 0 : index
    %46 = vector.load %arg7[%c0_50, %c0_51] : memref<1x4xf32, #tpu.memory_space<vmem>>, vector<1x4xf32>
    %47 = vector.broadcast %46 : vector<1x4xf32> to vector<256x4xf32>
    %48 = arith.addf %45, %47 : vector<256x4xf32>
    %cst_52 = arith.constant 0.000000e+00 : f32
    %49 = vector.broadcast %cst_52 : f32 to vector<256x4xf32>
    %50 = arith.maximumf %48, %49 : vector<256x4xf32>
    %51 = arith.truncf %50 : vector<256x4xf32> to vector<256x4xbf16>
    %c0_53 = arith.constant 0 : index
    %c0_54 = arith.constant 0 : index
    %52 = vector.load %arg8[%c0_53, %c0_54] : memref<4x16xbf16, #tpu.memory_space<vmem>>, vector<4x16xbf16>
    %cst_55 = arith.constant dense<0.000000e+00> : vector<256x16xf32>
    %53 = tpu.matmul %51, %52, %cst_55 {dimension_numbers = #tpu.dot_dimension_numbers<[1], [0], [0], [1], [0, 0, 1, 1], [], []>} : vector<256x4xbf16>, vector<4x16xbf16>, vector<256x16xf32> -> vector<256x16xf32>
    %c0_56 = arith.constant 0 : index
    %c0_57 = arith.constant 0 : index
    %54 = vector.load %arg9[%c0_56, %c0_57] : memref<1x16xf32, #tpu.memory_space<vmem>>, vector<1x16xf32>
    %55 = vector.broadcast %54 : vector<1x16xf32> to vector<256x16xf32>
    %56 = arith.mulf %53, %55 : vector<256x16xf32>
    %c0_58 = arith.constant 0 : index
    %c0_59 = arith.constant 0 : index
    %57 = vector.load %arg10[%c0_58, %c0_59] : memref<1x16xf32, #tpu.memory_space<vmem>>, vector<1x16xf32>
    %58 = vector.broadcast %57 : vector<1x16xf32> to vector<256x16xf32>
    %59 = arith.addf %56, %58 : vector<256x16xf32>
    %c0_60 = arith.constant 0 : index
    %c0_61 = arith.constant 0 : index
    %c0_62 = arith.constant 0 : index
    %60 = vector.load %arg1[%c0_60, %c0_61, %c0_62] : memref<1x256x16xbf16, #tpu.memory_space<vmem>>, vector<1x256x16xbf16>
    %61 = vector.shape_cast %60 : vector<1x256x16xbf16> to vector<256x16xbf16>
    %62 = arith.extf %61 : vector<256x16xbf16> to vector<256x16xf32>
    %63 = arith.addf %59, %62 : vector<256x16xf32>
    %cst_63 = arith.constant 0.000000e+00 : f32
    %64 = vector.broadcast %cst_63 : f32 to vector<256x16xf32>
    %65 = arith.maximumf %63, %64 : vector<256x16xf32>
    %66 = arith.truncf %65 : vector<256x16xf32> to vector<256x16xbf16>
    %c0_64 = arith.constant 0 : index
    %c0_65 = arith.constant 0 : index
    %c0_66 = arith.constant 0 : index
    %67 = vector.load %arg11[%c0_64, %c0_65, %c0_66] : memref<1x256x16xbf16, #tpu.memory_space<vmem>>, vector<1x256x16xbf16>
    %68 = vector.shape_cast %67 : vector<1x256x16xbf16> to vector<256x16xbf16>
    %69 = vector.shape_cast %66 : vector<256x16xbf16> to vector<1x256x16xbf16>
    tpu.vector_store %arg11[%c0_64, %c0_65, %c0_66], %69 {strides = array<i32>} : memref<1x256x16xbf16, #tpu.memory_space<vmem>>, vector<1x256x16xbf16>,
    return
  }
  func.func @transform_0(%arg0: i32) -> (i32, i32, i32) {
    %c0_i32 = arith.constant 0 : i32
    %c0_i32_0 = arith.constant 0 : i32
    %c0_i32_1 = arith.constant 0 : i32
    return %arg0, %c0_i32, %c0_i32_0 : i32, i32, i32
  }
  func.func @transform_1(%arg0: i32) -> (i32, i32) {
    %c0_i32 = arith.constant 0 : i32
    %c0_i32_0 = arith.constant 0 : i32
    %c0_i32_1 = arith.constant 0 : i32
    return %c0_i32, %c0_i32_0 : i32, i32
  }
  func.func @transform_2(%arg0: i32) -> (i32, i32) {
    %c0_i32 = arith.constant 0 : i32
    %c0_i32_0 = arith.constant 0 : i32
    %c0_i32_1 = arith.constant 0 : i32
    return %c0_i32, %c0_i32_0 : i32, i32
  }
  func.func @transform_3(%arg0: i32) -> (i32, i32) {
    %c0_i32 = arith.constant 0 : i32
    %c0_i32_0 = arith.constant 0 : i32
    %c0_i32_1 = arith.constant 0 : i32
    return %c0_i32, %c0_i32_0 : i32, i32
  }
  func.func @transform_4(%arg0: i32) -> (i32, i32) {
    %c0_i32 = arith.constant 0 : i32
    %c0_i32_0 = arith.constant 0 : i32
    %c0_i32_1 = arith.constant 0 : i32
    return %c0_i32, %c0_i32_0 : i32, i32
  }
  func.func @transform_5(%arg0: i32) -> (i32, i32) {
    %c0_i32 = arith.constant 0 : i32
    %c0_i32_0 = arith.constant 0 : i32
    %c0_i32_1 = arith.constant 0 : i32
    return %c0_i32, %c0_i32_0 : i32, i32
  }
  func.func @transform_6(%arg0: i32) -> (i32, i32) {
    %c0_i32 = arith.constant 0 : i32
    %c0_i32_0 = arith.constant 0 : i32
    %c0_i32_1 = arith.constant 0 : i32
    return %c0_i32, %c0_i32_0 : i32, i32
  }
  func.func @transform_7(%arg0: i32) -> (i32, i32) {
    %c0_i32 = arith.constant 0 : i32
    %c0_i32_0 = arith.constant 0 : i32
    %c0_i32_1 = arith.constant 0 : i32
    return %c0_i32, %c0_i32_0 : i32, i32
  }
  func.func @transform_8(%arg0: i32) -> (i32, i32) {
    %c0_i32 = arith.constant 0 : i32
    %c0_i32_0 = arith.constant 0 : i32
    %c0_i32_1 = arith.constant 0 : i32
    return %c0_i32, %c0_i32_0 : i32, i32
  }
  func.func @transform_9(%arg0: i32) -> (i32, i32) {
    %c0_i32 = arith.constant 0 : i32
    %c0_i32_0 = arith.constant 0 : i32
    %c0_i32_1 = arith.constant 0 : i32
    return %c0_i32, %c0_i32_0 : i32, i32
  }
  func.func @transform_10(%arg0: i32) -> (i32, i32, i32) {
    %c0_i32 = arith.constant 0 : i32
    %c0_i32_0 = arith.constant 0 : i32
    %c0_i32_1 = arith.constant 0 : i32
    return %arg0, %c0_i32, %c0_i32_0 : i32, i32, i32
  }
}

</mosaic_0001>

<bundles_post_ra>
// kernel: tpu_custom_call.1
= control target key start
LH: loop header
LB: loop body
LE: loop exit
PB: predicated region body
PF: predicated region fallthrough
CT: control target
= control target key end

     0   :  { %s3320_s13 = smov 0   ;;  %s4588_s0 = inlined_call_operand.vmem [shape: bf16[2,256,16], index: 0, kind: input, shape index: {}]   ;;  %s4589_s1 = inlined_call_operand.vmem [shape: bf16[16,4], index: 1, kind: input, shape index: {}]   ;;  %s4590_s2 = inlined_call_operand.vmem [shape: f32[1,4], index: 2, kind: input, shape index: {}]   ;;  %s4591_s3 = inlined_call_operand.vmem [shape: f32[1,4], index: 3, kind: input, shape index: {}]   ;;  %s4592_s4 = inlined_call_operand.vmem [shape: bf16[36,4], index: 4, kind: input, shape index: {}]   ;;  %s4593_s5 = inlined_call_operand.vmem [shape: f32[1,4], index: 5, kind: input, shape index: {}]   ;;  %s4594_s6 = inlined_call_operand.vmem [shape: f32[1,4], index: 6, kind: input, shape index: {}]   ;;  %s4595_s7 = inlined_call_operand.vmem [shape: bf16[4,16], index: 7, kind: input, shape index: {}]   ;;  %s4596_s8 = inlined_call_operand.vmem [shape: f32[1,16], index: 8, kind: input, shape index: {}]   ;;  %s4597_s9 = inlined_call_operand.vmem [shape: f32[1,16], index: 9, kind: input, shape index: {}]   ;;  %s4598_s10 = inlined_call_operand.vmem [shape: bf16[2,256,16], index: 10, kind: output, shape index: {}]  }
   0x1 LB: > { %s2818_s14 = sadd.s32 4294967295, %s3254_s13   ;;  %p2822_p0 = scmp.ge.s32.totalorder %s3254_s13, 1  ;;  %s3254_s13 = sphi %s3320_s13, %s20_s13  }
   0x2   : > { %p312_p1 = scmp.lt.s32.totalorder %s3254_s13, 3 }
   0x4   : > { %p313_p2 = pnand %p2822_p0, %p312_p1 }
   0x5   : > { %v3228_v0 = vld [vmem:[%s4589_s1] sm:$0xff] (!%p313_p2)   ;;  %p350_p3 = scmp.lt.s32.totalorder (!%p313_p2), %s2818_s14, 1  ;;  %vm481_vm0 = vcmask (!%p313_p2), 130048   ;;  %vm821_vm1 = vcmask (!%p313_p2), 286720   ;;  %vm822_vm2 = vsmask.f32 (!%p313_p2), 256 }
   0x6   : > { %316 = sbr.rel (%p313_p2) target bundleno = 1054 (0x41e), region = 60  ;;  %3101 = vmatprep.subr.bf16.mxu0 (!%p313_p2), %v3228_v0  ;;  %3207 = vmatprep.subr.bf16.mxu1 (!%p313_p2), %v3228_v0  ;;  %vm872_vm3 = vcmask (!%p313_p2), 293895   ;;  %vm873_vm4 = vsmask.f32 (!%p313_p2), 7966  ;;  %vm3373_vm5 = vmand (!%p313_p2), %vm821_vm1, %vm822_vm2  ;;  %v830_v18 = vld [vmem:[#allocation2 + $0x10] sm:$0x1] (!%p313_p2) }
   0x7   : > { %3102 = vmatpush3.bf16.msra.mxu0 (!%p313_p2), %v3228_v0  ;;  %3208 = vmatpush3.bf16.msra.mxu1 (!%p313_p2), %v3228_v0  ;;  %v881_v19 = vld [vmem:[#allocation2 + $0x10] sm:$0x80] (!%p313_p2)  ;;  %v831_v20 = vsel (!%p313_p2), %vm3373_vm5, 0, %v830_v18  ;;  %vm3379_vm6 = vmand (!%p313_p2), %vm872_vm3, %vm873_vm4  ;;  %v854_v23 = vld [vmem:[#allocation2 + $0x50] sm:$0x1] (!%p313_p2)  ;;  %vm1044_vm7 = vcmask (!%p313_p2), 31744  }
   0x8   : > { %832 = vst [vmem:[#allocation2 + $0x10] sm:$0x1] (!%p313_p2), %v831_v20  ;;  %v882_v22 = vsel (!%p313_p2), %vm3379_vm6, 0, %v881_v19  ;;  %v905_v24 = vld [vmem:[#allocation2 + $0x50] sm:$0x80] (!%p313_p2)  ;;  %v855_v25 = vsel (!%p313_p2), %vm3373_vm5, 0, %v854_v23 }
   0x9   : > { %883 = vst [vmem:[#allocation2 + $0x10] sm:$0x80] (!%p313_p2), %v882_v22  ;;  %v906_v26 = vsel (!%p313_p2), %vm3379_vm6, 0, %v905_v24  ;;  %856 = vst [vmem:[#allocation2 + $0x50] sm:$0x1] (!%p313_p2), %v855_v25  ;;  %s3256_s25 = smov (!%p313_p2), 16  }
   0xa   : > { %907 = vst [vmem:[#allocation2 + $0x50] sm:$0x80] (!%p313_p2), %v906_v26  ;;  %v827_v27 = vld [vmem:[#allocation2 + $0x8] sm:$0x1] (!%p313_p2)  ;;  %v878_v29 = vld [vmem:[#allocation2 + $0x8] sm:$0x80] (!%p313_p2) }
   0xb   : > { %v828_v28 = vsel (!%p313_p2), %vm3373_vm5, 0, %v827_v27  ;;  %v879_v30 = vsel (!%p313_p2), %vm3379_vm6, 0, %v878_v29  ;;  %v851_v31 = vld [vmem:[#allocation2 + $0x48] sm:$0x1] (!%p313_p2)  ;;  %v902_v32 = vld [vmem:[#allocation2 + $0x48] sm:$0x80] (!%p313_p2) }
   0xc   : > { %829 = vst [vmem:[#allocation2 + $0x8] sm:$0x1] (!%p313_p2), %v828_v28  ;;  %880 = vst [vmem:[#allocation2 + $0x8] sm:$0x80] (!%p313_p2), %v879_v30  ;;  %v852_v33 = vsel (!%p313_p2), %vm3373_vm5, 0, %v851_v31  ;;  %v903_v34 = vsel (!%p313_p2), %vm3379_vm6, 0, %v902_v32 }
   0xd   : > { %s4616_s14 = smov (!%p350_p3, %s2818_s14), 1  ;;  %853 = vst [vmem:[#allocation2 + $0x48] sm:$0x1] %v852_v33  ;;  %904 = vst [vmem:[#allocation2 + $0x48] sm:$0x80] %v903_v34  ;;  %s3257_s26 = smov 4  }
   0xe   : > { %s2935_s17 = sshll.u32 %s4616_s14, 7  ;;  %v860_v35 = vld [vmem:[#allocation2 + $0x60] sm:$0x1]  ;;  %v911_v36 = vld [vmem:[#allocation2 + $0x60] sm:$0x80]  ;;  %s3258_s27 = smov 28  }
   0xf   : > { %s3339_s20 = scalar_lea.vmem %s4588_s0, %s2935_s17  ;;  %v857_v37 = vld [vmem:[#allocation2 + $0x58] sm:$0x1]  ;;  %v861_v38 = vsel %vm3373_vm5, 0, %v860_v35  ;;  %v912_v39 = vsel %vm3379_vm6, 0, %v911_v36  ;;  %v908_v41 = vld [vmem:[#allocation2 + $0x58] sm:$0x80]  ;;  %s4449_s18 = scalar_lea.vmem %s4598_s10, %s2935_s17 }
  0x10   : > { %v3229_v1 = vld [vmem:[%s3339_s20] sm:$0xff]   ;;  %v3230_v2 = vld [vmem:[%s3339_s20 + $0x8] sm:$0xff]   ;;  %v3233_v5 = vld [vmem:[%s3339_s20 + $0x50] sm:$0xff]   ;;  %v858_v40 = vsel %vm3373_vm5, 0, %v857_v37  ;;  %862 = vst [vmem:[#allocation2 + $0x60] sm:$0x1] %v861_v38 }
  0x11   : > { %3103 = vmatprep.mubr.msk.bf16.mxu0 %vm481_vm0, %v3229_v1  ;;  %v3231_v3 = vld [vmem:[%s3339_s20 + $0x40] sm:$0xff]   ;;  %v3232_v4 = vld [vmem:[%s3339_s20 + $0x48] sm:$0xff]   ;;  %v3235_v6 = vld [vmem:[%s3339_s20 + $0x10] sm:$0xff]   ;;  %913 = vst [vmem:[#allocation2 + $0x60] sm:$0x80] %v912_v39  ;;  %v909_v42 = vsel %vm3379_vm6, 0, %v908_v41 }
  0x12   : > { %3104 = vmatmul.mubr.msk.bf16.vlgmr.msra.gmra.mrb[0].mxu0 %vm481_vm0, %v3230_v2  ;;  %3119 = vmatprep.mubr.msk.bf16.mxu1 %vm481_vm0, %v3231_v3  ;;  %v3236_v7 = vld [vmem:[%s3339_s20 + $0x18] sm:$0xff]   ;;  %v3237_v8 = vld [vmem:[%s3339_s20 + $0x20] sm:$0xff]   ;;  %v3238_v11 = vld [vmem:[%s3339_s20 + $0x28] sm:$0xff]   ;;  %859 = vst [vmem:[#allocation2 + $0x58] sm:$0x1] %v858_v40  ;;  %s3259_s28 = smov 8  }
  0x13   : > { %3120 = vmatmul.mubr.msk.bf16.vlgmr.msra.gmra.mrb[0].mxu1 %vm481_vm0, %v3232_v4  ;;  %3107 = vmatprep.mubr.msk.bf16.mxu0 %vm481_vm0, %v3235_v6  ;;  %v3234_v9 = vld [vmem:[%s3339_s20 + $0x58] sm:$0xff]   ;;  %v3239_v10 = vld [vmem:[%s3339_s20 + $0x60] sm:$0xff]   ;;  %v3241_v12 = vld [vmem:[%s3339_s20 + $0x30] sm:$0xff]   ;;  %910 = vst [vmem:[#allocation2 + $0x58] sm:$0x80] %v909_v42  ;;  %s3260_s29 = smov 12  }
  0x14   : > { %3123 = vmatprep.mubr.msk.bf16.mxu1 %vm481_vm0, %v3233_v5  ;;  %v3240_v13 = vld [vmem:[%s3339_s20 + $0x68] sm:$0xff]   ;;  %v3243_v14 = vld [vmem:[%s3339_s20 + $0x70] sm:$0xff]   ;;  %v3242_v15 = vld [vmem:[%s3339_s20 + $0x38] sm:$0xff]   ;;  %vm1045_vm8 = vsmask.f32 7938  ;;  %s3261_s30 = smov 20  }
  0x15   : > { %v3244_v16 = vld [vmem:[%s3339_s20 + $0x78] sm:$0xff]   ;;  %v836_v43 = vld [vmem:[#allocation2 + $0x20] sm:$0x1]  ;;  %v887_v44 = vld [vmem:[#allocation2 + $0x20] sm:$0x80]  ;;  %s3262_s11 = smov 32  }
  0x16   : > { %v833_v45 = vld [vmem:[#allocation2 + $0x18] sm:$0x1]  ;;  %v837_v46 = vsel %vm3373_vm5, 0, %v836_v43  ;;  %v888_v47 = vsel %vm3379_vm6, 0, %v887_v44  ;;  %v884_v49 = vld [vmem:[#allocation2 + $0x18] sm:$0x80]  ;;  %vm3470_vm9 = vmand %vm1044_vm7, %vm1045_vm8 }
  0x17   : > { %v834_v48 = vsel %vm3373_vm5, 0, %v833_v45  ;;  %838 = vst [vmem:[#allocation2 + $0x20] sm:$0x1] %v837_v46  ;;  %889 = vst [vmem:[#allocation2 + $0x20] sm:$0x80] %v888_v47  ;;  %v885_v50 = vsel %vm3379_vm6, 0, %v884_v49 }
  0x18   : > { %835 = vst [vmem:[#allocation2 + $0x18] sm:$0x1] %v834_v48  ;;  %886 = vst [vmem:[#allocation2 + $0x18] sm:$0x80] %v885_v50  ;;  %v842_v51 = vld [vmem:[#allocation2 + $0x30] sm:$0x1] }
  0x19   : > { %v893_v52 = vld [vmem:[#allocation2 + $0x30] sm:$0x80]  ;;  %v839_v53 = vld [vmem:[#allocation2 + $0x28] sm:$0x1]  ;;  %v843_v54 = vsel %vm3373_vm5, 0, %v842_v51  ;;  %s3263_s12 = smov 24  }
  0x1a   : > { %3108 = vmatmul.mubr.msk.bf16.gmra.mrb[4].mxu0 %vm481_vm0, %v3236_v7  ;;  %v894_v55 = vsel %vm3379_vm6, 0, %v893_v52  ;;  %v840_v56 = vsel %vm3373_vm5, 0, %v839_v53  ;;  %v890_v57 = vld [vmem:[#allocation2 + $0x28] sm:$0x80]  ;;  %844 = vst [vmem:[#allocation2 + $0x30] sm:$0x1] %v843_v54 }
  0x1b   : > { %3111 = vmatprep.mubr.msk.bf16.mxu0 %vm481_vm0, %v3237_v8  ;;  %3124 = vmatmul.mubr.msk.bf16.gmra.mrb[4].mxu1 %vm481_vm0, %v3234_v9  ;;  %895 = vst [vmem:[#allocation2 + $0x30] sm:$0x80] %v894_v55  ;;  %841 = vst [vmem:[#allocation2 + $0x28] sm:$0x1] %v840_v56  ;;  %v891_v58 = vsel %vm3379_vm6, 0, %v890_v57  ;;  %vm817_vm10 = vcmask 293888  }
  0x1c   : > { %3127 = vmatprep.mubr.msk.bf16.mxu1 %vm481_vm0, %v3239_v10  ;;  %892 = vst [vmem:[#allocation2 + $0x28] sm:$0x80] %v891_v58  ;;  %v866_v59 = vld [vmem:[#allocation2 + $0x70] sm:$0x1]  ;;  %v917_v60 = vld [vmem:[#allocation2 + $0x70] sm:$0x80] }
  0x1d   : > { %v863_v61 = vld [vmem:[#allocation2 + $0x68] sm:$0x1]  ;;  %v867_v62 = vsel %vm3373_vm5, 0, %v866_v59  ;;  %v918_v63 = vsel %vm3379_vm6, 0, %v917_v60  ;;  %v914_v1 = vld [vmem:[#allocation2 + $0x68] sm:$0x80] }
  0x1e   : > { %v864_v0 = vsel %vm3373_vm5, 0, %v863_v61  ;;  %868 = vst [vmem:[#allocation2 + $0x70] sm:$0x1] %v867_v62  ;;  %919 = vst [vmem:[#allocation2 + $0x70] sm:$0x80] %v918_v63  ;;  %v915_v2 = vsel %vm3379_vm6, 0, %v914_v1 }
  0x1f   : > { %865 = vst [vmem:[#allocation2 + $0x68] sm:$0x1] %v864_v0  ;;  %916 = vst [vmem:[#allocation2 + $0x68] sm:$0x80] %v915_v2  ;;  %v3432_v3 = vld [vmem:[%s4590_s2] ss:$0 sm:$0xff] }
  0x20   : > { %v3437_v5 = vld [vmem:[%s4591_s3] ss:$0 sm:$0xff]  ;;  %v1050_v61 = vld [vmem:[#allocation2 + $0x10] sm:$0xff]  ;;  %vm1891_vm11 = vcmask 1041408   ;;  %vm1152_vm12 = vcmask 64544   ;;  %vm1346_vm13 = vcmask 130144  }
  0x21   : > { %v3245_v60 = vld [vmem:[%s4592_s4] sm:$0xff]   ;;  %vm1243_vm14 = vcmask 97344   ;;  %vm1244_vm15 = vsmask.f32 7424  ;;  %vm1445_vm2 = vcmask 162944   ;;  %vm1607_vm3 = vcmask 228544  }
  0x22   : > { %3112 = vmatmul.mubr.msk.bf16.gmra.mrb[8].mxu0 %vm481_vm0, %v3238_v11  ;;  %3135 = vmatprep.subr.bf16.mxu1 %v3245_v60  ;;  %vm3920_vm1 = vmand %vm1243_vm14, %vm1244_vm15  ;;  %vm1512_vm4 = vcmask 195744  }
  0x23   : > { %3115 = vmatprep.mubr.msk.bf16.mxu0 %vm481_vm0, %v3241_v12  ;;  %3128 = vmatmul.mubr.msk.bf16.gmra.mrb[8].mxu1 %vm481_vm0, %v3240_v13 }
  0x24   : > { %3131 = vmatprep.mubr.msk.bf16.mxu1 %vm481_vm0, %v3243_v14  ;;  %3136 = vmatpush3.bf16.msra.mxu1 %v3245_v60 }
  0x2a   : > { %3116 = vmatmul.mubr.msk.bf16.gmra.mrb[12].mxu0 %vm481_vm0, %v3242_v15 }
  0x2b   : > { %3132 = vmatmul.mubr.msk.bf16.gmra.mrb[12].mxu1 %vm481_vm0, %v3244_v16  ;;  %vm3915_vm0 = vmand %vm1346_vm13, %vm1045_vm8 }
  0xe5   : > { %v3105_v4 = vpop.f32.mrb[0].mxu0 }
  0xe6   : > { %v700_v6 = vmul.f32 %v3105_v4, %v3432_v3  ;;  %v564_v7 = vpop.f32.mrb[1].mxu0  ;;  %v3121_v10 = vpop.f32.mrb[0].mxu1 }
  0xe7   : > { %v698_v8 = vmul.f32 %v3432_v3, %v564_v7  ;;  %v3106_v9 = vpop.f32.mrb[2].mxu0  ;;  %v716_v13 = vmul.f32 %v3121_v10, %v3432_v3  ;;  %v628_v15 = vpop.f32.mrb[1].mxu1 }
  0xe8   : > { %v739_v11 = vadd.f32 %v3437_v5, %v700_v6  ;;  %v701_v12 = vmul.f32 %v3106_v9, %v3432_v3  ;;  %v567_v14 = vpop.f32.mrb[3].mxu0  ;;  %v714_v19 = vmul.f32 %v3432_v3, %v628_v15  ;;  %v3122_v20 = vpop.f32.mrb[2].mxu1  ;;  %v1074_v9 = vld [vmem:[#allocation2 + $0x50] sm:$0xff] }
  0xe9   : > { %v737_v16 = vadd.f32 %v3437_v5, %v698_v8  ;;  %v699_v18 = vmul.f32 %v3432_v3, %v567_v14  ;;  %v755_v23 = vadd.f32 %v3437_v5, %v716_v13  ;;  %v717_v24 = vmul.f32 %v3122_v20, %v3432_v3  ;;  %v631_v25 = vpop.f32.mrb[3].mxu1 }
  0xea   : > { %v740_v22 = vadd.f32 %v3437_v5, %v701_v12  ;;  %v753_v27 = vadd.f32 %v3437_v5, %v714_v19  ;;  %v715_v28 = vmul.f32 %v3432_v3, %v631_v25  ;;  %v771_v29 = vmax.f32 %v739_v11, 0.0 }
  0xeb   : > { %v738_v26 = vadd.f32 %v3437_v5, %v699_v18  ;;  %v787_v31 = vmax.f32 %v755_v23, 0.0  ;;  %v756_v32 = vadd.f32 %v3437_v5, %v717_v24  ;;  %v769_v33 = vmax.f32 %v737_v16, 0.0 }
  0xec   : > { %v772_v30 = vmax.f32 %v740_v22, 0.0  ;;  %v785_v35 = vmax.f32 %v753_v27, 0.0  ;;  %v754_v36 = vadd.f32 %v3437_v5, %v715_v28 }
  0xed   : > { %v770_v34 = vmax.f32 %v738_v26, 0.0  ;;  %v3109_v37 = vpop.f32.mrb[4].mxu0  ;;  %v788_v39 = vmax.f32 %v756_v32, 0.0 }
  0xee   : > { %v802_v38 = vpack.c.bf16 %v772_v30, %v771_v29  ;;  %v580_v40 = vpop.f32.mrb[5].mxu0  ;;  %v786_v42 = vmax.f32 %v754_v36, 0.0  ;;  %v3125_v43 = vpop.f32.mrb[4].mxu1  ;;  %v704_v58 = vmul.f32 %v3109_v37, %v3432_v3 }
  0xef   : > { %v3455_v41 = vpack.c.bf16 %v770_v34, %v769_v33  ;;  %v3110_v44 = vpop.f32.mrb[6].mxu0  ;;  %v3457_v45 = vpack.c.bf16 %v788_v39, %v787_v31  ;;  %v720_v48 = vmul.f32 %v3125_v43, %v3432_v3  ;;  %v644_v49 = vpop.f32.mrb[5].mxu1  ;;  %v702_v1 = vmul.f32 %v3432_v3, %v580_v40 }
  0xf0   : > { %1399 = vrot.lane.b32.xlu1 %v802_v38, %s3256_s25  ;;  %1109 = vrot.lane.b32.xlu0 %v802_v38, %s3257_s26  ;;  %v931_v46 = vshrl.u32 %v802_v38, 16  ;;  %v934_v47 = vshll.u32 %v802_v38, 16  ;;  %v583_v50 = vpop.f32.mrb[7].mxu0  ;;  %v3462_v51 = vpack.c.bf16 %v786_v42, %v785_v35  ;;  %v718_v53 = vmul.f32 %v3432_v3, %v644_v49  ;;  %v3126_v54 = vpop.f32.mrb[6].mxu1  ;;  %v1071_v49 = vld [vmem:[#allocation2 + $0x48] sm:$0xff] }
  0xf1   : > { %v927_v52 = vshll.u32 %v3455_v41, 16  ;;  %v987_v57 = vshrl.u32 %v3457_v45, 16  ;;  %v647_v59 = vpop.f32.mrb[7].mxu1  ;;  %v759_v62 = vadd.f32 %v3437_v5, %v720_v48  ;;  %v721_v0 = vmul.f32 %v3126_v54, %v3432_v3  ;;  %v1047_v48 = vld [vmem:[#allocation2 + $0x8] sm:$0xff] }
  0xf2   : > { %v1170_v55 = vrot.slane %v934_v47, 1  ;;  %v933_v56 = vrot.slane %v931_v46, 7  ;;  %v757_v63 = vadd.f32 %v3437_v5, %v718_v53  ;;  %v990_v4 = vshll.u32 %v3457_v45, 16 }
  0xf3   : > { %v989_v6 = vrot.slane %v987_v57, 7  ;;  %v924_v7 = vshrl.u32 %v3455_v41, 16  ;;  %v791_v10 = vmax.f32 %v759_v62, 0.0  ;;  %v1168_v11 = vrot.slane %v927_v52, 1 }
  0xf4   : > { %1668 = vrot.lane.b32.xlu1 %v3462_v51, %s3258_s27  ;;  %1654 = vrot.lane.b32.xlu0 %v802_v38, %s3258_s27  ;;  %v3481_v2 = vor.u32 %v934_v47, %v933_v56  ;;  %v3487_v8 = vor.u32 %v1170_v55, %v931_v46  ;;  %v760_v12 = vadd.f32 %v3437_v5, %v721_v0  ;;  %v789_v16 = vmax.f32 %v757_v63, 0.0 }
  0xf5   : > { %v3113_v13 = vpop.f32.mrb[8].mxu0  ;;  %v3495_v15 = vor.u32 %v990_v4, %v989_v6  ;;  %v743_v18 = vadd.f32 %v3437_v5, %v704_v58  ;;  %v719_v22 = vmul.f32 %v3432_v3, %v647_v59  ;;  %v741_v23 = vadd.f32 %v3437_v5, %v702_v1 }
  0xf6   : > { %v1051_v14 = vsel %vm3470_vm9, %v3481_v2, %v1050_v61  ;;  %v596_v19 = vpop.f32.mrb[9].mxu0  ;;  %v792_v20 = vmax.f32 %v760_v12, 0.0  ;;  %v705_v24 = vmul.f32 %v3110_v44, %v3432_v3  ;;  %v3501_v26 = vpop.f32.mrb[8].mxu1  ;;  %v703_v29 = vmul.f32 %v3432_v3, %v583_v50 }
  0xf7   : > { %1052 = vst [vmem:[#allocation2 + $0x10] sm:$0xff] %v1051_v14  ;;  %v3114_v25 = vpop.f32.mrb[10].mxu0  ;;  %v1075_v27 = vsel %vm3470_vm9, %v3495_v15, %v1074_v9  ;;  %v775_v28 = vmax.f32 %v743_v18, 0.0  ;;  %v980_v30 = vshrl.u32 %v3462_v51, 16  ;;  %v3512_v32 = vpop.f32.mrb[9].mxu1  ;;  %v758_v34 = vadd.f32 %v3437_v5, %v719_v22  ;;  %v1056_v22 = vld [vmem:[#allocation2 + $0x20] sm:$0xff] }
  0xf8   : > { %1125 = vrot.lane.b32.xlu0 %v3457_v45, %s3257_s26  ;;  %1200 = vrot.lane.b32.xlu1 %v3487_v8, %s3259_s28  ;;  %v599_v31 = vpop.f32.mrb[11].mxu0  ;;  %1076 = vst [vmem:[#allocation2 + $0x50] sm:$0xff] %v1075_v27  ;;  %v3514_v33 = vpack.c.bf16 %v792_v20, %v791_v10  ;;  %v773_v35 = vmax.f32 %v741_v23, 0.0  ;;  %v744_v36 = vadd.f32 %v3437_v5, %v705_v24  ;;  %v3518_v37 = vpop.f32.mrb[10].mxu1  ;;  %v983_v39 = vshll.u32 %v3462_v51, 16 }
  0xf9   : > { %v742_v38 = vadd.f32 %v3437_v5, %v703_v29  ;;  %v926_v40 = vrot.slane %v924_v7, 7  ;;  %v982_v42 = vrot.slane %v980_v30, 7  ;;  %v3524_v43 = vpop.f32.mrb[11].mxu1  ;;  %v1186_v44 = vrot.slane %v990_v4, 1 }
  0xfa   : > { %v790_v46 = vmax.f32 %v758_v34, 0.0  ;;  %v776_v47 = vmax.f32 %v744_v36, 0.0  ;;  %v3536_v55 = vor.u32 %v1168_v11, %v924_v7  ;;  %v708_v59 = vmul.f32 %v3113_v13, %v3432_v3  ;;  %v1080_v34 = vld [vmem:[#allocation2 + $0x60] sm:$0xff] }
  0xfb   : > { %v774_v50 = vmax.f32 %v742_v38, 0.0  ;;  %v3532_v53 = vor.u32 %v927_v52, %v926_v40  ;;  %v3534_v54 = vor.u32 %v983_v39, %v982_v42  ;;  %v1001_v0 = vshrl.u32 %v3514_v33, 16  ;;  %v1053_v40 = vld [vmem:[#allocation2 + $0x18] sm:$0xff] }
  0xfc   : > { %1415 = vrot.lane.b32.xlu0 %v3457_v45, %s3256_s25  ;;  %1300 = vrot.lane.b32.xlu1 %v3481_v2, %s3260_s29  ;;  %v3538_v56 = vpack.c.bf16 %v790_v46, %v789_v16  ;;  %v3540_v58 = vpack.c.bf16 %v776_v47, %v775_v28  ;;  %v3558_v4 = vor.u32 %v1186_v44, %v987_v57  ;;  %v1004_v7 = vshll.u32 %v3514_v33, 16 }
  0xfd   : > { %v3543_v61 = vpop.f32.mrb[12].mxu0  ;;  %v3545_v62 = vpack.c.bf16 %v774_v50, %v773_v35  ;;  %v1048_v63 = vsel %vm3470_vm9, %v3532_v53, %v1047_v48  ;;  %v1072_v52 = vsel %vm3470_vm9, %v3534_v54, %v1071_v49  ;;  %v747_v9 = vadd.f32 %v3437_v5, %v708_v59 }
  0xfe   : > { %v3554_v1 = vpop.f32.mrb[13].mxu0  ;;  %1049 = vst [vmem:[#allocation2 + $0x8] sm:$0xff] %v1048_v63  ;;  %1073 = vst [vmem:[#allocation2 + $0x48] sm:$0xff] %v1072_v52  ;;  %v945_v6 = vshrl.u32 %v3540_v58, 16  ;;  %v706_v12 = vmul.f32 %v3432_v3, %v596_v19  ;;  %v709_v13 = vmul.f32 %v3114_v25, %v3432_v3  ;;  %v948_v16 = vshll.u32 %v3540_v58, 16 }
  0xff   : > { %v3563_v10 = vpop.f32.mrb[14].mxu0  ;;  %v938_v57 = vshrl.u32 %v3545_v62, 16  ;;  %v941_v11 = vshll.u32 %v3545_v62, 16  ;;  %v707_v20 = vmul.f32 %v3432_v3, %v599_v31  ;;  %v1003_v19 = vrot.slane %v1001_v0, 7 }
 0x100   : > { %1670 = vrot.lane.b32.xlu0 %v3457_v45, %s3258_s27  ;;  %1466 = vrot.lane.b32.xlu1 %v3487_v8, %s3261_s30  ;;  %v3573_v14 = vpop.f32.mrb[15].mxu0  ;;  %v947_v18 = vrot.slane %v945_v6, 7  ;;  %v779_v45 = vmax.f32 %v747_v9, 0.0  ;;  %v745_v24 = vadd.f32 %v3437_v5, %v706_v12  ;;  %v748_v27 = vadd.f32 %v3437_v5, %v709_v13 }
 0x101   : > { %v1172_v23 = vrot.slane %v941_v11, 1  ;;  %v3583_v25 = vrot.slane %v983_v39, 1  ;;  %v746_v29 = vadd.f32 %v3437_v5, %v707_v20  ;;  %v940_v35 = vrot.slane %v938_v57, 7 }
 0x102   : > { %v3587_v28 = vor.u32 %v948_v16, %v947_v18  ;;  %v777_v36 = vmax.f32 %v745_v24, 0.0  ;;  %v780_v38 = vmax.f32 %v748_v27, 0.0  ;;  %v3598_v39 = vor.u32 %v1004_v7, %v1003_v19 }
 0x103   : > { %v3594_v31 = vor.u32 %v1172_v23, %v938_v57  ;;  %v778_v44 = vmax.f32 %v746_v29, 0.0  ;;  %v3603_v46 = vor.u32 %v941_v11, %v940_v35  ;;  %v722_v49 = vmul.f32 %v3432_v3, %v3512_v32  ;;  %v1077_v23 = vld [vmem:[#allocation2 + $0x58] sm:$0xff] }
 0x104   : > { %1715 = vrot.lane.b32.xlu1 %v3487_v8, %s3262_s11  ;;  %1107 = vrot.lane.b32.xlu0 %v3455_v41, %s3257_s26  ;;  %v1057_v42 = vsel %vm3470_vm9, %v3587_v28, %v1056_v22  ;;  %v724_v8 = vmul.f32 %v3501_v26, %v3432_v3  ;;  %v3607_v47 = vpack.c.bf16 %v780_v38, %v779_v45  ;;  %v994_v9 = vshrl.u32 %v3538_v56, 16 }
 0x105   : > { %1058 = vst [vmem:[#allocation2 + $0x20] sm:$0xff] %v1057_v42  ;;  %v1081_v48 = vsel %vm3470_vm9, %v3598_v39, %v1080_v34  ;;  %v725_v50 = vmul.f32 %v3518_v37, %v3432_v3  ;;  %v3616_v59 = vpack.c.bf16 %v778_v44, %v777_v36  ;;  %v1054_v26 = vsel %vm3470_vm9, %v3603_v46, %v1053_v40  ;;  %v1062_v36 = vld [vmem:[#allocation2 + $0x30] sm:$0xff] }
 0x106   : > { %1082 = vst [vmem:[#allocation2 + $0x60] sm:$0xff] %v1081_v48  ;;  %v763_v63 = vadd.f32 %v3437_v5, %v724_v8  ;;  %v723_v52 = vmul.f32 %v3432_v3, %v3524_v43  ;;  %1055 = vst [vmem:[#allocation2 + $0x18] sm:$0xff] %v1054_v26  ;;  %v761_v32 = vadd.f32 %v3437_v5, %v722_v49  ;;  %v997_v57 = vshll.u32 %v3538_v56, 16 }
 0x107   : > { %v764_v37 = vadd.f32 %v3437_v5, %v725_v50  ;;  %v959_v43 = vshrl.u32 %v3607_v47, 16  ;;  %v962_v13 = vshll.u32 %v3607_v47, 16  ;;  %v952_v19 = vshrl.u32 %v3616_v59, 16 }
 0x108   : > { %1216 = vrot.lane.b32.xlu1 %v3558_v4, %s3259_s28  ;;  %1397 = vrot.lane.b32.xlu0 %v3455_v41, %s3256_s25  ;;  %v795_v11 = vmax.f32 %v763_v63, 0.0  ;;  %v762_v12 = vadd.f32 %v3437_v5, %v723_v52  ;;  %v793_v18 = vmax.f32 %v761_v32, 0.0  ;;  %v1188_v20 = vrot.slane %v997_v57, 1 }
 0x109   : > { %v796_v45 = vmax.f32 %v764_v37, 0.0  ;;  %v996_v41 = vrot.slane %v994_v9, 7  ;;  %v1178_v24 = vrot.slane %v962_v13, 1  ;;  %v961_v27 = vrot.slane %v959_v43, 7 }
 0x10a   : > { %v794_v22 = vmax.f32 %v762_v12, 0.0  ;;  %v3642_v34 = vor.u32 %v1188_v20, %v994_v9  ;;  %v955_v38 = vshll.u32 %v3616_v59, 16  ;;  %v712_v8 = vmul.f32 %v3543_v61, %v3432_v3  ;;  %v1086_v12 = vld [vmem:[#allocation2 + $0x70] sm:$0xff] }
 0x10b   : > { %v3640_v29 = vpack.c.bf16 %v796_v45, %v795_v11  ;;  %v3644_v35 = vor.u32 %v997_v57, %v996_v41  ;;  %v3649_v42 = vor.u32 %v1178_v24, %v959_v43  ;;  %v3651_v44 = vor.u32 %v962_v13, %v961_v27 }
 0x10c   : > { %1316 = vrot.lane.b32.xlu1 %v3495_v15, %s3260_s29  ;;  %1123 = vrot.lane.b32.xlu0 %v3462_v51, %s3257_s26  ;;  %v3647_v40 = vpack.c.bf16 %v794_v22, %v793_v18  ;;  %v1176_v26 = vrot.slane %v955_v38, 1  ;;  %v751_v52 = vadd.f32 %v3437_v5, %v712_v8  ;;  %v710_v32 = vmul.f32 %v3432_v3, %v3554_v1  ;;  %v848_v18 = vld [vmem:[#allocation2 + $0x40] sm:$0x1] }
 0x10d   : > { %v1078_v48 = vsel %vm3470_vm9, %v3644_v35, %v1077_v23  ;;  %v1015_v49 = vshrl.u32 %v3640_v29, 16  ;;  %v1018_v50 = vshll.u32 %v3640_v29, 16  ;;  %v1063_v63 = vsel %vm3470_vm9, %v3651_v44, %v1062_v36  ;;  %v899_v23 = vld [vmem:[#allocation2 + $0x40] sm:$0x80] }
 0x10e   : > { %1079 = vst [vmem:[#allocation2 + $0x58] sm:$0xff] %v1078_v48  ;;  %v713_v61 = vmul.f32 %v3563_v10, %v3432_v3  ;;  %1064 = vst [vmem:[#allocation2 + $0x30] sm:$0xff] %v1063_v63  ;;  %v3672_v57 = vor.u32 %v1176_v26, %v952_v19  ;;  %v711_v11 = vmul.f32 %v3432_v3, %v3573_v14  ;;  %v783_v43 = vmax.f32 %v751_v52, 0.0  ;;  %v1059_v14 = vld [vmem:[#allocation2 + $0x28] sm:$0xff] }
 0x10f   : > { %v1194_v37 = vrot.slane %v1018_v50, 1  ;;  %v1017_v9 = vrot.slane %v1015_v49, 7  ;;  %v749_v1 = vadd.f32 %v3437_v5, %v710_v32  ;;  %v954_v13 = vrot.slane %v952_v19, 7  ;;  %v1083_v26 = vld [vmem:[#allocation2 + $0x68] sm:$0xff] }
 0x110   : > { %1413 = vrot.lane.b32.xlu0 %v3462_v51, %s3256_s25  ;;  %1198 = vrot.lane.b32.xlu1 %v3536_v55, %s3259_s28  ;;  %v752_v10 = vadd.f32 %v3437_v5, %v713_v61  ;;  %v3681_v45 = vor.u32 %v3583_v25, %v980_v30  ;;  %v750_v22 = vadd.f32 %v3437_v5, %v711_v11  ;;  %v1008_v19 = vshrl.u32 %v3647_v40, 16 }
 0x111   : > { %v3683_v20 = vor.u32 %v1194_v37, %v1015_v49  ;;  %v3685_v41 = vor.u32 %v1018_v50, %v1017_v9  ;;  %v781_v24 = vmax.f32 %v749_v1, 0.0  ;;  %v3688_v36 = vor.u32 %v955_v38, %v954_v13  ;;  %v845_v37 = vld [vmem:[#allocation2 + $0x38] sm:$0x1]  ;;  %v896_v9 = vld [vmem:[#allocation2 + $0x38] sm:$0x80] }
 0x112   : > { %v784_v27 = vmax.f32 %v752_v10, 0.0  ;;  %v782_v30 = vmax.f32 %v750_v22, 0.0  ;;  %v1011_v25 = vshll.u32 %v3647_v40, 16  ;;  %v849_v38 = vsel %vm3373_vm5, 0, %v848_v18 }
 0x113   : > { %v1087_v51 = vsel %vm3470_vm9, %v3685_v41, %v1086_v12  ;;  %v1010_v48 = vrot.slane %v1008_v19, 7  ;;  %850 = vst [vmem:[#allocation2 + $0x40] sm:$0x1] %v849_v38  ;;  %v3264_v61 = vmov 0   ;;  %v846_v18 = vsel %vm3373_vm5, 0, %v845_v37 }
 0x114   : > { %1562 = vrot.lane.b32.xlu0 %v3481_v2, %s3263_s12  ;;  %1464 = vrot.lane.b32.xlu1 %v3536_v55, %s3261_s30  ;;  %1088 = vst [vmem:[#allocation2 + $0x70] sm:$0xff] %v1087_v51  ;;  %v3701_v8 = vpack.c.bf16 %v784_v27, %v783_v43  ;;  %v1060_v2 = vsel %vm3470_vm9, %v3688_v36, %v1059_v14  ;;  %v900_v55 = vsel %vm3379_vm6, 0, %v899_v23  ;;  %v1192_v50 = vrot.slane %v1011_v25, 1 }
 0x115   : > { %v3708_v49 = vpack.c.bf16 %v782_v30, %v781_v24  ;;  %1061 = vst [vmem:[#allocation2 + $0x28] sm:$0xff] %v1060_v2  ;;  %901 = vst [vmem:[#allocation2 + $0x40] sm:$0x80] %v900_v55  ;;  %v3710_v63 = vor.u32 %v1011_v25, %v1010_v48  ;;  %v897_v22 = vsel %vm3379_vm6, 0, %v896_v9  ;;  %v3133_v55 = vpop.f32.mrb[12].mxu1 }
 0x116   : > { %v973_v52 = vshrl.u32 %v3701_v8, 16  ;;  %v976_v32 = vshll.u32 %v3701_v8, 16  ;;  %818 = vst.msk [vmem:[#allocation2] sm:$0xff] %vm817_vm10, %v3264_v61  ;;  %820 = vst.msk [vmem:[#allocation2 + $0x78] sm:$0xff] %vm817_vm10, %v3264_v61  ;;  %v3720_v11 = vor.u32 %v1192_v50, %v1008_v19  ;;  %v728_v37 = vmul.f32 %v3133_v55, %v3432_v3 }
 0x117   : > { %v1084_v12 = vsel %vm3470_vm9, %v3710_v63, %v1083_v26  ;;  %v966_v10 = vshrl.u32 %v3708_v49, 16  ;;  %v969_v13 = vshll.u32 %v3708_v49, 16  ;;  %847 = vst [vmem:[#allocation2 + $0x38] sm:$0x1] %v846_v18  ;;  %898 = vst [vmem:[#allocation2 + $0x38] sm:$0x80] %v897_v22 }
 0x118   : > { %1482 = vrot.lane.b32.xlu0 %v3558_v4, %s3261_s30  ;;  %1214 = vrot.lane.b32.xlu1 %v3681_v45, %s3259_s28  ;;  %v1182_v43 = vrot.slane %v976_v32, 1  ;;  %v975_v1 = vrot.slane %v973_v52, 7  ;;  %1085 = vst [vmem:[#allocation2 + $0x68] sm:$0xff] %v1084_v12  ;;  %v676_v26 = vpop.f32.mrb[13].mxu1 }
 0x119   : > { %v1180_v24 = vrot.slane %v969_v13, 1  ;;  %v968_v27 = vrot.slane %v966_v10, 7  ;;  %v726_v9 = vmul.f32 %v3432_v3, %v676_v26 }
 0x11a   : > { %v3731_v14 = vor.u32 %v1182_v43, %v973_v52  ;;  %v3733_v23 = vor.u32 %v976_v32, %v975_v1  ;;  %v3134_v32 = vpop.f32.mrb[14].mxu1  ;;  %v767_v1 = vadd.f32 %v3437_v5, %v728_v37 }
 0x11b   : > { %v3742_v38 = vor.u32 %v1180_v24, %v966_v10  ;;  %v3748_v48 = vor.u32 %v969_v13, %v968_v27  ;;  %v679_v61 = vpop.f32.mrb[15].mxu1  ;;  %v729_v12 = vmul.f32 %v3134_v32, %v3432_v3  ;;  %v765_v10 = vadd.f32 %v3437_v5, %v726_v9 }
 0x11c   : > { %1578 = vrot.lane.b32.xlu0 %v3495_v15, %s3263_s12  ;;  %1419 = vrot.lane.b32.xlu1 %v3514_v33, %s3256_s25  ;;  %v1068_v19 = vld [vmem:[#allocation2 + $0x40] sm:$0xff]  ;;  %v727_v43 = vmul.f32 %v3432_v3, %v679_v61  ;;  %v799_v22 = vmax.f32 %v767_v1, 0.0 }
 0x11d   : > { %v1069_v51 = vsel %vm3470_vm9, %v3733_v23, %v1068_v19  ;;  %v824_v30 = vld [vmem:[#allocation2] sm:$0x1]  ;;  %v875_v25 = vld [vmem:[#allocation2] sm:$0x80]  ;;  %v797_v24 = vmax.f32 %v765_v10, 0.0 }
 0x11e   : > { %1070 = vst [vmem:[#allocation2 + $0x40] sm:$0xff] %v1069_v51  ;;  %v825_v2 = vsel %vm3373_vm5, 0, %v824_v30  ;;  %v876_v15 = vsel %vm3379_vm6, 0, %v875_v25  ;;  %v1065_v50 = vld [vmem:[#allocation2 + $0x38] sm:$0xff]  ;;  %v766_v13 = vadd.f32 %v3437_v5, %v727_v43 }
 0x11f   : > { %826 = vst [vmem:[#allocation2] sm:$0x1] %v825_v2  ;;  %877 = vst [vmem:[#allocation2] sm:$0x80] %v876_v15  ;;  %v1066_v52 = vsel %vm3470_vm9, %v3748_v48, %v1065_v50  ;;  %v869_v27 = vld [vmem:[#allocation2 + $0x78] sm:$0x1] }
 0x120   : > { %1298 = vrot.lane.b32.xlu0 %v3532_v53, %s3260_s29  ;;  %1111 = vrot.lane.b32.xlu1 %v3545_v62, %s3257_s26  ;;  %1067 = vst [vmem:[#allocation2 + $0x38] sm:$0xff] %v1066_v52  ;;  %v1174_v53 = vrot.slane %v948_v16, 1  ;;  %v768_v16 = vadd.f32 %v3437_v5, %v729_v12  ;;  %v798_v19 = vmax.f32 %v766_v13, 0.0  ;;  %v870_v51 = vsel %vm3373_vm5, 0, %v869_v27  ;;  %v920_v30 = vld [vmem:[#allocation2 + $0x78] sm:$0x80]  ;;  %vm3979_vm5 = vmand %vm1607_vm3, %vm1045_vm8 }
 0x121   : > { %871 = vst [vmem:[#allocation2 + $0x78] sm:$0x1] %v870_v51  ;;  %v921_v5 = vsel %vm3379_vm6, 0, %v920_v30  ;;  %v1190_v52 = vrot.slane %v1004_v7, 1  ;;  %vm3984_vm6 = vmand %vm1512_vm4, %vm1244_vm15  ;;  %vm1760_vm8 = vcmask 294144  }
 0x122   : > { %v1175_v18 = vor.u32 %v1174_v53, %v945_v6  ;;  %v800_v3 = vmax.f32 %v768_v16, 0.0  ;;  %v3786_v6 = vpack.c.bf16 %v798_v19, %v797_v24  ;;  %922 = vst [vmem:[#allocation2 + $0x78] sm:$0x80] %v921_v5  ;;  %vm4012_vm13 = vmand %vm1760_vm8, %vm1244_vm15 }
 0x123   : > { %v3811_v32 = vor.u32 %v1190_v52, %v1001_v0 }
 0x124   : > { %1314 = vrot.lane.b32.xlu0 %v3534_v54, %s3260_s29  ;;  %1656 = vrot.lane.b32.xlu1 %v3545_v62, %s3258_s27  ;;  %v3782_v25 = vpack.c.bf16 %v800_v3, %v799_v22  ;;  %v1022_v2 = vshrl.u32 %v3786_v6, 16  ;;  %v1025_v17 = vshll.u32 %v3786_v6, 16 }
 0x126   : > { %v1196_v15 = vrot.slane %v1025_v17, 1 }
 0x128   : > { %1480 = vrot.lane.b32.xlu0 %v3681_v45, %s3261_s30  ;;  %1417 = vrot.lane.b32.xlu1 %v3538_v56, %s3256_s25  ;;  %v3796_v50 = vor.u32 %v1196_v15, %v1022_v2 }
 0x129   : > { %v1089_v21 = vld [vmem:[#allocation2 + $0x78] sm:$0xff] }
 0x12c   : > { %1576 = vrot.lane.b32.xlu0 %v3534_v54, %s3263_s12  ;;  %1204 = vrot.lane.b32.xlu1 %v1175_v18, %s3259_s28  ;;  %v1024_v54 = vrot.slane %v1022_v2, 7 }
 0x12e   : > { %v3794_v55 = vor.u32 %v1025_v17, %v1024_v54  ;;  %v1348_v54 = vld [vmem:[#allocation2] sm:$0xff] }
 0x130   : > { %1113 = vrot.lane.b32.xlu0 %v3540_v58, %s3257_s26  ;;  %1304 = vrot.lane.b32.xlu1 %v3587_v28, %s3260_s29  ;;  %v1090_v26 = vsel %vm3470_vm9, %v3794_v55, %v1089_v21  ;;  %vm1699_vm9 = vcmask 261344  }
 0x131   : > { %1091 = vst [vmem:[#allocation2 + $0x78] sm:$0xff] %v1090_v26 }
 0x134   : > { %1403 = vrot.lane.b32.xlu0 %v3540_v58, %s3256_s25  ;;  %1470 = vrot.lane.b32.xlu1 %v1175_v18, %s3261_s30 }
 0x138   : > { %1658 = vrot.lane.b32.xlu0 %v3540_v58, %s3258_s27  ;;  %1719 = vrot.lane.b32.xlu1 %v1175_v18, %s3262_s11  ;;  %v3246_v58 = vld [vmem:[%s4592_s4 + $0x8] sm:$0xff]  }
 0x139   : > { %3137 = vmatprep.subr.bf16.mxu1 %v3246_v58 }
 0x13a   : > { %3138 = vmatpush3.bf16.msra.mxu1 %v3246_v58 }
 0x13c   : > { %1129 = vrot.lane.b32.xlu0 %v3514_v33, %s3257_s26  ;;  %1220 = vrot.lane.b32.xlu1 %v3811_v32, %s3259_s28 }
 0x140   : > { %1401 = vrot.lane.b32.xlu0 %v3545_v62, %s3256_s25  ;;  %1486 = vrot.lane.b32.xlu1 %v3811_v32, %s3261_s30  ;;  %v3247_v62 = vld [vmem:[%s4592_s4 + $0x10] ss:$0 sps:$4 sm:$0x33]  }
 0x141   : > { %3209 = vmatprep.subr.msk.bf16.mxu1 %vm1891_vm11, %v3247_v62  ;;  %v1893_v0 = vsel %vm1891_vm11, %v3247_v62, 0 }
 0x142   : > { %3140 = vmatpush3.bf16.msra.mxu1 %v1893_v0 }
 0x144   : > { %1127 = vrot.lane.b32.xlu0 %v3538_v56, %s3257_s26  ;;  %1202 = vrot.lane.b32.xlu1 %v3594_v31, %s3259_s28 }
 0x148   : > { %1566 = vrot.lane.b32.xlu0 %v3587_v28, %s3263_s12  ;;  %1468 = vrot.lane.b32.xlu1 %v3594_v31, %s3261_s30 }
 0x14c   : > { %1320 = vrot.lane.b32.xlu0 %v3598_v39, %s3260_s29  ;;  %1564 = vrot.lane.b32.xlu1 %v3603_v46, %s3263_s12 }
 0x150   : > { %1717 = vrot.lane.b32.xlu1 %v3594_v31, %s3262_s11  ;;  %1302 = vrot.lane.b32.xlu0 %v3603_v46, %s3260_s29 }
 0x154   : > { %1218 = vrot.lane.b32.xlu1 %v3642_v34, %s3259_s28  ;;  %1117 = vrot.lane.b32.xlu0 %v3607_v47, %s3257_s26 }
 0x158   : > { %1318 = vrot.lane.b32.xlu1 %v3644_v35, %s3260_s29  ;;  %1407 = vrot.lane.b32.xlu0 %v3607_v47, %s3256_s25 }
 0x15c   : > { %1484 = vrot.lane.b32.xlu1 %v3642_v34, %s3261_s30  ;;  %1662 = vrot.lane.b32.xlu0 %v3607_v47, %s3258_s27 }
 0x160   : > { %1580 = vrot.lane.b32.xlu1 %v3644_v35, %s3263_s12  ;;  %1133 = vrot.lane.b32.xlu0 %v3640_v29, %s3257_s26 }
 0x162   : > { %v1400_v7 = vpop.permute.xlu1 %1399  ;;  %v1110_v28 = vpop.permute.xlu0 %1109 }
 0x163   : > { %1154 = vst.msk [vmem:[#allocation2 + $0x10] sm:$0xff] %vm1152_vm12, %v1110_v28 }
 0x164   : > { %1423 = vrot.lane.b32.xlu0 %v3640_v29, %s3256_s25  ;;  %1208 = vrot.lane.b32.xlu1 %v3649_v42, %s3259_s28 }
 0x166   : > { %v3869_v31 = vpop.permute.xlu1 %1668  ;;  %v3871_v46 = vpop.permute.xlu0 %1654 }
 0x168   : > { %1308 = vrot.lane.b32.xlu1 %v3651_v44, %s3260_s29  ;;  %1115 = vrot.lane.b32.xlu0 %v3616_v59, %s3257_s26 }
 0x16a   : > { %v1126_v47 = vpop.permute.xlu0 %1125  ;;  %v3877_v35 = vpop.permute.xlu1 %1200 }
 0x16b   : > { %1162 = vst.msk [vmem:[#allocation2 + $0x50] sm:$0xff] %vm1152_vm12, %v1126_v47 }
 0x16c   : > { %1474 = vrot.lane.b32.xlu1 %v3649_v42, %s3261_s30  ;;  %1405 = vrot.lane.b32.xlu0 %v3616_v59, %s3256_s25 }
 0x16e   : > { %v1416_v53 = vpop.permute.xlu0 %1415  ;;  %v1301_v61 = vpop.permute.xlu1 %1300 }
 0x170   : > { %1224 = vrot.lane.b32.xlu1 %v3683_v20, %s3259_s28  ;;  %1660 = vrot.lane.b32.xlu0 %v3616_v59, %s3258_s27 }
 0x172   : > { %v3888_v37 = vpop.permute.xlu0 %1670  ;;  %v3890_v9 = vpop.permute.xlu1 %1466 }
 0x174   : > { %1324 = vrot.lane.b32.xlu1 %v3685_v41, %s3260_s29  ;;  %1131 = vrot.lane.b32.xlu0 %v3647_v40, %s3257_s26 }
 0x176   : > { %v3896_v12 = vpop.permute.xlu1 %1715  ;;  %v1108_v43 = vpop.permute.xlu0 %1107 }
 0x177   : > { %1153 = vst.msk [vmem:[#allocation2 + $0x8] sm:$0xff] %vm1152_vm12, %v1108_v43 }
 0x178   : > { %1421 = vrot.lane.b32.xlu0 %v3647_v40, %s3256_s25  ;;  %1206 = vrot.lane.b32.xlu1 %v3672_v57, %s3259_s28 }
 0x17a   : > { %v3903_v59 = vpop.permute.xlu1 %1216  ;;  %v1398_v1 = vpop.permute.xlu0 %1397 }
 0x17c   : > { %1570 = vrot.lane.b32.xlu0 %v3651_v44, %s3263_s12  ;;  %1472 = vrot.lane.b32.xlu1 %v3672_v57, %s3261_s30 }
 0x17e   : > { %v1317_v10 = vpop.permute.xlu1 %1316  ;;  %v1124_v16 = vpop.permute.xlu0 %1123  ;;  %v1246_v24 = vld [vmem:[#allocation2 + $0x8] sm:$0xff] }
 0x17f   : > { %1161 = vst.msk [vmem:[#allocation2 + $0x48] sm:$0xff] %vm1152_vm12, %v1124_v16 }
 0x180   : > { %1723 = vrot.lane.b32.xlu0 %v3649_v42, %s3262_s11  ;;  %1568 = vrot.lane.b32.xlu1 %v3688_v36, %s3263_s12 }
 0x182   : > { %v3924_v18 = vpop.permute.xlu0 %1413  ;;  %v1199_v22 = vpop.permute.xlu1 %1198 }
 0x183   : > { %v1247_v42 = vsel %vm3920_vm1, %v1199_v22, %v1246_v24 }
 0x184   : > { %v1352_v3 = vsel %vm3915_vm0, %v1301_v61, %v1247_v42  ;;  %1721 = vrot.lane.b32.xlu1 %v3672_v57, %s3262_s11  ;;  %1306 = vrot.lane.b32.xlu0 %v3688_v36, %s3260_s29 }
 0x185   : > { %1353 = vst [vmem:[#allocation2 + $0x8] sm:$0xff] %v1352_v3 }
 0x186   : > { %v1563_v27 = vpop.permute.xlu0 %1562  ;;  %v1465_v19 = vpop.permute.xlu1 %1464  ;;  %1447 = vst.msk [vmem:[#allocation2 + $0x8] sm:$0xff] %vm1445_vm2, %v1400_v7  ;;  %v1270_v30 = vld [vmem:[#allocation2 + $0x48] sm:$0xff] }
 0x188   : > { %1222 = vrot.lane.b32.xlu0 %v3720_v11, %s3259_s28  ;;  %1666 = vrot.lane.b32.xlu1 %v3701_v8, %s3258_s27 }
 0x18a   : > { %v3939_v51 = vpop.permute.xlu0 %1482  ;;  %v1215_v5 = vpop.permute.xlu1 %1214 }
 0x18b   : > { %v1271_v57 = vsel %vm3920_vm1, %v1215_v5, %v1270_v30 }
 0x18c   : > { %v1376_v36 = vsel %vm3915_vm0, %v1317_v10, %v1271_v57  ;;  %1322 = vrot.lane.b32.xlu0 %v3710_v63, %s3260_s29  ;;  %1212 = vrot.lane.b32.xlu1 %v3731_v14, %s3259_s28 }
 0x18d   : > { %1377 = vst [vmem:[#allocation2 + $0x48] sm:$0xff] %v1376_v36  ;;  %v1517_v5 = vld [vmem:[#allocation2 + $0x8] sm:$0xff] }
 0x18e   : > { %v3949_v2 = vpop.permute.xlu0 %1578  ;;  %v3951_v17 = vpop.permute.xlu1 %1419  ;;  %1455 = vst.msk [vmem:[#allocation2 + $0x48] sm:$0xff] %vm1445_vm2, %v1416_v53 }
 0x190   : > { %1121 = vrot.lane.b32.xlu0 %v3701_v8, %s3257_s26  ;;  %1312 = vrot.lane.b32.xlu1 %v3733_v23, %s3260_s29 }
 0x192   : > { %v1299_v15 = vpop.permute.xlu0 %1298  ;;  %v1112_v21 = vpop.permute.xlu1 %1111 }
 0x193   : > { %v1349_v26 = vsel %vm3915_vm0, %v1299_v15, %v1348_v54  ;;  %1155 = vst.msk [vmem:[#allocation2 + $0x18] sm:$0xff] %vm1152_vm12, %v1112_v21  ;;  %v1249_v54 = vld [vmem:[#allocation2 + $0x10] sm:$0xff] }
 0x194   : > { %1350 = vst [vmem:[#allocation2] sm:$0xff] %v1349_v26  ;;  %1411 = vrot.lane.b32.xlu0 %v3701_v8, %s3256_s25  ;;  %1478 = vrot.lane.b32.xlu1 %v3731_v14, %s3261_s30 }
 0x195   : > { %1446 = vst.msk [vmem:[#allocation2] sm:$0xff] %vm1445_vm2, %v1398_v1 }
 0x196   : > { %v3966_v52 = vpop.permute.xlu0 %1314  ;;  %v3968_v60 = vpop.permute.xlu1 %1656 }
 0x198   : > { %1574 = vrot.lane.b32.xlu1 %v3733_v23, %s3263_s12  ;;  %1119 = vrot.lane.b32.xlu0 %v3708_v49, %s3257_s26 }
 0x19a   : > { %v3974_v58 = vpop.permute.xlu0 %1480  ;;  %v3976_v8 = vpop.permute.xlu1 %1417 }
 0x19c   : > { %v1514_v7 = vld [vmem:[#allocation2] sm:$0xff]  ;;  %1409 = vrot.lane.b32.xlu0 %v3708_v49, %s3256_s25  ;;  %1210 = vrot.lane.b32.xlu1 %v3742_v38, %s3259_s28 }
 0x19d   : > { %v1515_v23 = vsel %vm3984_vm6, %v1465_v19, %v1514_v7 }
 0x19e   : > { %v1610_v28 = vsel %vm3979_vm5, %v1563_v27, %v1515_v23  ;;  %v3996_v47 = vpop.permute.xlu0 %1576  ;;  %v3998_v53 = vpop.permute.xlu1 %1204  ;;  %v1252_v27 = vld [vmem:[#allocation2 + $0x18] sm:$0xff] }
 0x19f   : > { %1611 = vst [vmem:[#allocation2] sm:$0xff] %v1610_v28 }
 0x1a0   : > { %1700 = vst.msk [vmem:[#allocation2] sm:$0xff] %vm1699_vm9, %v3871_v46  ;;  %1664 = vrot.lane.b32.xlu0 %v3708_v49, %s3258_s27  ;;  %1727 = vrot.lane.b32.xlu1 %v3731_v14, %s3262_s11 }
 0x1a2   : > { %v1114_v61 = vpop.permute.xlu0 %1113  ;;  %v1305_v43 = vpop.permute.xlu1 %1304 }
 0x1a3   : > { %1156 = vst.msk [vmem:[#allocation2 + $0x20] sm:$0xff] %vm1152_vm12, %v1114_v61 }
 0x1a4   : > { %1672 = vrot.lane.b32.xlu0 %v3538_v56, %s3258_s27  ;;  %1729 = vrot.lane.b32.xlu1 %v3681_v45, %s3262_s11 }
 0x1a6   : > { %v1404_v49 = vpop.permute.xlu0 %1403  ;;  %v4016_v1 = vpop.permute.xlu1 %1470 }
 0x1a7   : > { %v1762_v14 = vld [vmem:[#allocation2] sm:$0xff] }
 0x1a8   : > { %v1763_v10 = vsel %vm4012_vm13, %v3896_v12, %v1762_v14  ;;  %1425 = vrot.lane.b32.xlu1 %v3786_v6, %s3256_s25  ;;  %1310 = vrot.lane.b32.xlu0 %v3748_v48, %s3260_s29 }
 0x1a9   : > { %1764 = vst [vmem:[#allocation2] sm:$0xff] %v1763_v10  ;;  %3141 = vmatprep.mubr.msk.bf16.mxu1 %vm817_vm10, %v1763_v10 }
 0x1aa   : > { %v4026_v56 = vpop.permute.xlu0 %1658  ;;  %v4028_v45 = vpop.permute.xlu1 %1719 }
 0x1ac   : > { %1476 = vrot.lane.b32.xlu1 %v3742_v38, %s3261_s30  ;;  %1488 = vrot.lane.b32.xlu0 %v3720_v11, %s3261_s30 }
 0x1ae   : > { %v1130_v12 = vpop.permute.xlu0 %1129  ;;  %v4034_v16 = vpop.permute.xlu1 %1220 }
 0x1af   : > { %1164 = vst.msk [vmem:[#allocation2 + $0x60] sm:$0xff] %vm1152_vm12, %v1130_v12  ;;  %v1541_v12 = vld [vmem:[#allocation2 + $0x48] sm:$0xff] }
 0x1b0   : > { %1572 = vrot.lane.b32.xlu1 %v3748_v48, %s3263_s12  ;;  %1490 = vrot.lane.b32.xlu0 %v3683_v20, %s3261_s30 }
 0x1b2   : > { %v1402_v22 = vpop.permute.xlu0 %1401  ;;  %v4041_v24 = vpop.permute.xlu1 %1486 }
 0x1b4   : > { %1135 = vrot.lane.b32.xlu1 %v3786_v6, %s3257_s26  ;;  %1584 = vrot.lane.b32.xlu0 %v3710_v63, %s3263_s12 }
 0x1b6   : > { %v1128_v42 = vpop.permute.xlu0 %1127  ;;  %v1203_v3 = vpop.permute.xlu1 %1202 }
 0x1b7   : > { %1163 = vst.msk [vmem:[#allocation2 + $0x58] sm:$0xff] %vm1152_vm12, %v1128_v42  ;;  %v1253_v48 = vsel %vm3920_vm1, %v1203_v3, %v1252_v27 }
 0x1b8   : > { %v1358_v19 = vsel %vm3915_vm0, %v1305_v43, %v1253_v48  ;;  %1582 = vrot.lane.b32.xlu1 %v3598_v39, %s3263_s12  ;;  %1731 = vrot.lane.b32.xlu0 %v3558_v4, %s3262_s11  ;;  %v1518_v39 = vsel %vm3984_vm6, %v3890_v9, %v1517_v5 }
 0x1b9   : > { %1359 = vst [vmem:[#allocation2 + $0x18] sm:$0xff] %v1358_v19 }
 0x1ba   : > { %1449 = vst.msk [vmem:[#allocation2 + $0x18] sm:$0xff] %vm1445_vm2, %v1404_v49  ;;  %v1567_v63 = vpop.permute.xlu0 %1566  ;;  %v1469_v30 = vpop.permute.xlu1 %1468 }
 0x1bc   : > { %1674 = vrot.lane.b32.xlu1 %v3514_v33, %s3258_s27  ;;  %1733 = vrot.lane.b32.xlu0 %v3642_v34, %s3262_s11  ;;  %v1250_v33 = vsel %vm3920_vm1, %v3877_v35, %v1249_v54 }
 0x1be   : > { %v1321_v57 = vpop.permute.xlu0 %1320  ;;  %v1565_v36 = vpop.permute.xlu1 %1564 }
 0x1bf   : > { %v1613_v4 = vsel %vm3979_vm5, %v1565_v36, %v1518_v39 }
 0x1c0   : > { %1614 = vst [vmem:[#allocation2 + $0x8] sm:$0xff] %v1613_v4  ;;  %1676 = vrot.lane.b32.xlu1 %v3647_v40, %s3258_s27  ;;  %1725 = vrot.lane.b32.xlu0 %v3742_v38, %s3262_s11  ;;  %v1276_v40 = vld [vmem:[#allocation2 + $0x58] sm:$0xff] }
 0x1c1   : > { %1701 = vst.msk [vmem:[#allocation2 + $0x8] sm:$0xff] %vm1699_vm9, %v3968_v60 }
 0x1c2   : > { %v1718_v34 = vpop.permute.xlu1 %1717  ;;  %v1303_v9 = vpop.permute.xlu0 %1302 }
 0x1c3   : > { %v1355_v15 = vsel %vm3915_vm0, %v1303_v9, %v1250_v33 }
 0x1c4   : > { %1356 = vst [vmem:[#allocation2 + $0x10] sm:$0xff] %v1355_v15  ;;  %1586 = vrot.lane.b32.xlu1 %v3685_v41, %s3263_s12  ;;  %1735 = vrot.lane.b32.xlu0 %v3811_v32, %s3262_s11  ;;  %v1273_v41 = vld [vmem:[#allocation2 + $0x50] sm:$0xff]  ;;  %v1523_v15 = vld [vmem:[#allocation2 + $0x18] sm:$0xff] }
 0x1c5   : > { %1448 = vst.msk [vmem:[#allocation2 + $0x10] sm:$0xff] %vm1445_vm2, %v1402_v22  ;;  %v1274_v7 = vsel %vm3920_vm1, %v3903_v59, %v1273_v41 }
 0x1c6   : > { %v1219_v38 = vpop.permute.xlu1 %1218  ;;  %v1118_v21 = vpop.permute.xlu0 %1117 }
 0x1c7   : > { %v1277_v35 = vsel %vm3920_vm1, %v1219_v38, %v1276_v40  ;;  %1158 = vst.msk [vmem:[#allocation2 + $0x30] sm:$0xff] %vm1152_vm12, %v1118_v21  ;;  %v1524_v38 = vsel %vm3984_vm6, %v4016_v1, %v1523_v15 }
 0x1c8   : > { %v1765_v26 = vld [vmem:[#allocation2 + $0x8] sm:$0xff]  ;;  %v1382_v60 = vsel %vm3915_vm0, %v1321_v57, %v1277_v35  ;;  %1678 = vrot.lane.b32.xlu1 %v3640_v29, %s3258_s27  ;;  %1326 = vrot.lane.b32.xlu0 %v3794_v55, %s3260_s29  ;;  %v1292_v29 = vshrl.u32 %v3782_v25, 16  ;;  %v1255_v35 = vld [vmem:[#allocation2 + $0x20] sm:$0xff] }
 0x1c9   : > { %v1766_v32 = vsel %vm4012_vm13, %v1718_v34, %v1765_v26  ;;  %1383 = vst [vmem:[#allocation2 + $0x58] sm:$0xff] %v1382_v60  ;;  %v1256_v60 = vsel %vm3920_vm1, %v3998_v53, %v1255_v35 }
 0x1ca   : > { %1767 = vst [vmem:[#allocation2 + $0x8] sm:$0xff] %v1766_v32  ;;  %1457 = vst.msk [vmem:[#allocation2 + $0x58] sm:$0xff] %vm1445_vm2, %v3951_v17  ;;  %v1319_v23 = vpop.permute.xlu1 %1318  ;;  %v1408_v28 = vpop.permute.xlu0 %1407  ;;  %3142 = vmatmul.mubr.msk.bf16.vlgmr.msra.gmra.mrb[16].mxu1 %vm817_vm10, %v1766_v32  ;;  %v1294_v10 = vrot.slane %v1292_v29, 7 }
 0x1cb   : > { %v1379_v61 = vsel %vm3915_vm0, %v1319_v23, %v1274_v7 }
 0x1cc   : > { %v1520_v43 = vld [vmem:[#allocation2 + $0x10] sm:$0xff]  ;;  %1380 = vst [vmem:[#allocation2 + $0x50] sm:$0xff] %v1379_v61  ;;  %1680 = vrot.lane.b32.xlu1 %v3786_v6, %s3258_s27  ;;  %1737 = vrot.lane.b32.xlu0 %v3720_v11, %s3262_s11  ;;  %v1295_v11 = vshll.u32 %v3782_v25, 16  ;;  %v1542_v6 = vsel %vm3984_vm6, %v3939_v51, %v1541_v12 }
 0x1cd   : > { %v1521_v59 = vsel %vm3984_vm6, %v1469_v30, %v1520_v43  ;;  %1456 = vst.msk [vmem:[#allocation2 + $0x50] sm:$0xff] %vm1445_vm2, %v3976_v8 }
 0x1ce   : > { %v1616_v17 = vsel %vm3979_vm5, %v1567_v63, %v1521_v59  ;;  %v4112_v49 = vpop.permute.xlu1 %1484  ;;  %v4114_v14 = vpop.permute.xlu0 %1662  ;;  %v1297_v42 = vor.u32 %v1295_v11, %v1294_v10  ;;  %v1462_v30 = vrot.slane %v1295_v11, 1 }
 0x1cf   : > { %1617 = vst [vmem:[#allocation2 + $0x10] sm:$0xff] %v1616_v17 }
 0x1d0   : > { %1702 = vst.msk [vmem:[#allocation2 + $0x10] sm:$0xff] %vm1699_vm9, %v4026_v56  ;;  %1492 = vrot.lane.b32.xlu1 %v3796_v50, %s3261_s30  ;;  %1226 = vrot.lane.b32.xlu0 %v3796_v50, %s3259_s28  ;;  %v1463_v5 = vor.u32 %v1462_v30, %v1292_v29  ;;  %v1279_v29 = vld [vmem:[#allocation2 + $0x60] sm:$0xff] }
 0x1d1   : > { %v1280_v17 = vsel %vm3920_vm1, %v4034_v16, %v1279_v29 }
 0x1d2   : > { %v1581_v8 = vpop.permute.xlu1 %1580  ;;  %v1134_v22 = vpop.permute.xlu0 %1133 }
 0x1d3   : > { %v1637_v3 = vsel %vm3979_vm5, %v1581_v8, %v1542_v6  ;;  %1166 = vst.msk [vmem:[#allocation2 + $0x70] sm:$0xff] %vm1152_vm12, %v1134_v22 }
 0x1d4   : > { %1638 = vst [vmem:[#allocation2 + $0x48] sm:$0xff] %v1637_v3  ;;  %1590 = vrot.lane.b32.xlu1 %v1297_v42, %s3263_s12  ;;  %1588 = vrot.lane.b32.xlu0 %v3794_v55, %s3263_s12 }
 0x1d6   : > { %v1424_v56 = vpop.permute.xlu0 %1423  ;;  %v4132_v27 = vpop.permute.xlu1 %1208 }
 0x1d7   : > { %v1768_v48 = vld [vmem:[#allocation2 + $0x10] sm:$0xff] }
 0x1d8   : > { %v1769_v51 = vsel %vm4012_vm13, %v4028_v45, %v1768_v48  ;;  %1682 = vrot.lane.b32.xlu1 %v3782_v25, %s3258_s27  ;;  %1328 = vrot.lane.b32.xlu0 %v1297_v42, %s3260_s29 }
 0x1d9   : > { %1770 = vst [vmem:[#allocation2 + $0x10] sm:$0xff] %v1769_v51  ;;  %3145 = vmatprep.mubr.msk.bf16.mxu1 %vm817_vm10, %v1769_v51 }
 0x1da   : > { %v1309_v19 = vpop.permute.xlu1 %1308  ;;  %v1116_v63 = vpop.permute.xlu0 %1115 }
 0x1db   : > { %1157 = vst.msk [vmem:[#allocation2 + $0x28] sm:$0xff] %vm1152_vm12, %v1116_v63 }
 0x1dc   : > { %1427 = vrot.lane.b32.xlu1 %v3782_v25, %s3256_s25  ;;  %1739 = vrot.lane.b32.xlu0 %v3683_v20, %s3262_s11 }
 0x1de   : > { %v4146_v55 = vpop.permute.xlu1 %1474  ;;  %v1406_v45 = vpop.permute.xlu0 %1405 }
 0x1e0   : > { %1743 = vrot.lane.b32.xlu1 %v1463_v5, %s3262_s11  ;;  %1741 = vrot.lane.b32.xlu0 %v3796_v50, %s3262_s11 }
 0x1e2   : > { %v4151_v57 = vpop.permute.xlu1 %1224  ;;  %v1661_v39 = vpop.permute.xlu0 %1660  ;;  %v1258_v4 = vld [vmem:[#allocation2 + $0x28] sm:$0xff] }
 0x1e4   : > { %1494 = vrot.lane.b32.xlu0 %v1463_v5, %s3261_s30 }
 0x1e6   : > { %v1325_v36 = vpop.permute.xlu1 %1324  ;;  %v1132_v54 = vpop.permute.xlu0 %1131 }
 0x1e7   : > { %1165 = vst.msk [vmem:[#allocation2 + $0x68] sm:$0xff] %vm1152_vm12, %v1132_v54 }
 0x1ea   : > { %v1422_v25 = vpop.permute.xlu0 %1421  ;;  %v1207_v20 = vpop.permute.xlu1 %1206 }
 0x1eb   : > { %v1259_v33 = vsel %vm3920_vm1, %v1207_v20, %v1258_v4 }
 0x1ec   : > { %v1364_v34 = vsel %vm3915_vm0, %v1309_v19, %v1259_v33 }
 0x1ed   : > { %1365 = vst [vmem:[#allocation2 + $0x28] sm:$0xff] %v1364_v34 }
 0x1ee   : > { %1451 = vst.msk [vmem:[#allocation2 + $0x28] sm:$0xff] %vm1445_vm2, %v1408_v28  ;;  %v1571_v50 = vpop.permute.xlu0 %1570  ;;  %v1473_v9 = vpop.permute.xlu1 %1472  ;;  %v1282_v1 = vld [vmem:[#allocation2 + $0x68] sm:$0xff] }
 0x1f2   : > { %v1724_v40 = vpop.permute.xlu0 %1723  ;;  %v1569_v21 = vpop.permute.xlu1 %1568 }
 0x1f3   : > { %v1619_v26 = vsel %vm3979_vm5, %v1569_v21, %v1524_v38 }
 0x1f4   : > { %1620 = vst [vmem:[#allocation2 + $0x18] sm:$0xff] %v1619_v26 }
 0x1f5   : > { %1703 = vst.msk [vmem:[#allocation2 + $0x18] sm:$0xff] %vm1699_vm9, %v1661_v39 }
 0x1f6   : > { %v1722_v41 = vpop.permute.xlu1 %1721  ;;  %v1307_v32 = vpop.permute.xlu0 %1306 }
 0x1f7   : > { %v1361_v7 = vsel %vm3915_vm0, %v1307_v32, %v1256_v60 }
 0x1f8   : > { %1362 = vst [vmem:[#allocation2 + $0x20] sm:$0xff] %v1361_v7 }
 0x1f9   : > { %1450 = vst.msk [vmem:[#allocation2 + $0x20] sm:$0xff] %vm1445_vm2, %v1406_v45 }
 0x1fa   : > { %v1223_v23 = vpop.permute.xlu0 %1222  ;;  %v4172_v28 = vpop.permute.xlu1 %1666 }
 0x1fb   : > { %v1283_v61 = vsel %vm3920_vm1, %v1223_v23, %v1282_v1  ;;  %v1547_v1 = vld [vmem:[#allocation2 + $0x58] sm:$0xff] }
 0x1fc   : > { %v1771_v43 = vld [vmem:[#allocation2 + $0x18] sm:$0xff]  ;;  %v1388_v53 = vsel %vm3915_vm0, %v1325_v36, %v1283_v61 }
 0x1fd   : > { %v1772_v59 = vsel %vm4012_vm13, %v1722_v41, %v1771_v43  ;;  %1389 = vst [vmem:[#allocation2 + $0x68] sm:$0xff] %v1388_v53  ;;  %v1544_v43 = vld [vmem:[#allocation2 + $0x50] sm:$0xff] }
 0x1fe   : > { %1773 = vst [vmem:[#allocation2 + $0x18] sm:$0xff] %v1772_v59  ;;  %1459 = vst.msk [vmem:[#allocation2 + $0x68] sm:$0xff] %vm1445_vm2, %v1424_v56  ;;  %v1323_v10 = vpop.permute.xlu0 %1322  ;;  %v1213_v12 = vpop.permute.xlu1 %1212  ;;  %3146 = vmatmul.mubr.msk.bf16.gmra.mrb[20].mxu1 %vm817_vm10, %v1772_v59  ;;  %v2182_v59 = vld [vmem:[%s4595_s7] sm:$0x3] }
 0x1ff   : > { %v1385_v11 = vsel %vm3915_vm0, %v1323_v10, %v1280_v17  ;;  %3210 = vmatprep.subr.msk.bf16.mxu0 %vm1891_vm11, %v2182_v59 }
 0x200   : > { %v1526_v6 = vld [vmem:[#allocation2 + $0x20] sm:$0xff]  ;;  %1386 = vst [vmem:[#allocation2 + $0x60] sm:$0xff] %v1385_v11 }
 0x201   : > { %v1527_v8 = vsel %vm3984_vm6, %v1473_v9, %v1526_v6  ;;  %1458 = vst.msk [vmem:[#allocation2 + $0x60] sm:$0xff] %vm1445_vm2, %v1422_v25  ;;  %v1261_v9 = vld [vmem:[#allocation2 + $0x30] sm:$0xff] }
 0x202   : > { %v1622_v16 = vsel %vm3979_vm5, %v1571_v50, %v1527_v8  ;;  %v1122_v22 = vpop.permute.xlu0 %1121  ;;  %v1313_v42 = vpop.permute.xlu1 %1312  ;;  %v1262_v15 = vsel %vm3920_vm1, %v4132_v27, %v1261_v9  ;;  %v1529_v27 = vld [vmem:[#allocation2 + $0x28] sm:$0xff] }
 0x203   : > { %1623 = vst [vmem:[#allocation2 + $0x20] sm:$0xff] %v1622_v16  ;;  %1160 = vst.msk [vmem:[#allocation2 + $0x40] sm:$0xff] %vm1152_vm12, %v1122_v22  ;;  %v1530_v60 = vsel %vm3984_vm6, %v4146_v55, %v1529_v27  ;;  %v1548_v55 = vsel %vm3984_vm6, %v4041_v24, %v1547_v1  ;;  %v2233_v24 = vsel %vm1891_vm11, %v2182_v59, 0 }
 0x204   : > { %1704 = vst.msk [vmem:[#allocation2 + $0x20] sm:$0xff] %vm1699_vm9, %v4114_v14  ;;  %3174 = vmatpush3.bf16.msra.mxu0 %v2233_v24  ;;  %v4337_v24 = vld [vmem:[%s4593_s5] ss:$0 sm:$0xff] }
 0x206   : > { %v1412_v3 = vpop.permute.xlu0 %1411  ;;  %v1479_v56 = vpop.permute.xlu1 %1478 }
 0x20a   : > { %v1267_v48 = vld [vmem:[#allocation2 + $0x40] sm:$0xff]  ;;  %v1575_v51 = vpop.permute.xlu1 %1574  ;;  %v1120_v19 = vpop.permute.xlu0 %1119 }
 0x20b   : > { %v1774_v63 = vld [vmem:[#allocation2 + $0x20] sm:$0xff]  ;;  %v1268_v30 = vsel %vm3920_vm1, %v1213_v12, %v1267_v48  ;;  %1159 = vst.msk [vmem:[#allocation2 + $0x38] sm:$0xff] %vm1152_vm12, %v1120_v19  ;;  %v1545_v12 = vsel %vm3984_vm6, %v4112_v49, %v1544_v43 }
 0x20c   : > { %v1775_v45 = vsel %vm4012_vm13, %v1724_v40, %v1774_v63  ;;  %v1373_v5 = vsel %vm3915_vm0, %v3966_v52, %v1268_v30 }
 0x20d   : > { %1776 = vst [vmem:[#allocation2 + $0x20] sm:$0xff] %v1775_v45  ;;  %1374 = vst [vmem:[#allocation2 + $0x40] sm:$0xff] %v1373_v5  ;;  %3149 = vmatprep.mubr.msk.bf16.mxu1 %vm817_vm10, %v1775_v45  ;;  %v1550_v45 = vld [vmem:[#allocation2 + $0x60] sm:$0xff] }
 0x20e   : > { %1454 = vst.msk [vmem:[#allocation2 + $0x40] sm:$0xff] %vm1445_vm2, %v3924_v18  ;;  %v1410_v14 = vpop.permute.xlu0 %1409  ;;  %v1211_v39 = vpop.permute.xlu1 %1210 }
 0x212   : > { %v1264_v36 = vld [vmem:[#allocation2 + $0x38] sm:$0xff]  ;;  %v1665_v54 = vpop.permute.xlu0 %1664  ;;  %v4206_v25 = vpop.permute.xlu1 %1727 }
 0x213   : > { %v1265_v20 = vsel %vm3920_vm1, %v1211_v39, %v1264_v36 }
 0x214   : > { %v1370_v4 = vsel %vm3915_vm0, %v1313_v42, %v1265_v20  ;;  %v1285_v20 = vld [vmem:[#allocation2 + $0x70] sm:$0xff] }
 0x215   : > { %1371 = vst [vmem:[#allocation2 + $0x38] sm:$0xff] %v1370_v4  ;;  %v1538_v52 = vld [vmem:[#allocation2 + $0x40] sm:$0xff]  ;;  %v1286_v4 = vsel %vm3920_vm1, %v4151_v57, %v1285_v20 }
 0x216   : > { %1453 = vst.msk [vmem:[#allocation2 + $0x38] sm:$0xff] %vm1445_vm2, %v1412_v3  ;;  %v1673_v33 = vpop.permute.xlu0 %1672  ;;  %v1730_v34 = vpop.permute.xlu1 %1729  ;;  %v1539_v18 = vsel %vm3984_vm6, %v3974_v58, %v1538_v52 }
 0x217   : > { %1709 = vst.msk [vmem:[#allocation2 + $0x48] sm:$0xff] %vm1699_vm9, %v1673_v33  ;;  %v1634_v50 = vsel %vm3979_vm5, %v3949_v2, %v1539_v18 }
 0x218   : > { %1635 = vst [vmem:[#allocation2 + $0x40] sm:$0xff] %v1634_v50 }
 0x219   : > { %1708 = vst.msk [vmem:[#allocation2 + $0x40] sm:$0xff] %vm1699_vm9, %v3888_v37 }
 0x21a   : > { %v4225_v40 = vpop.permute.xlu1 %1425  ;;  %v1311_v38 = vpop.permute.xlu0 %1310 }
 0x21b   : > { %v1367_v58 = vsel %vm3915_vm0, %v1311_v38, %v1262_v15 }
 0x21c   : > { %1368 = vst [vmem:[#allocation2 + $0x30] sm:$0xff] %v1367_v58 }
 0x21d   : > { %v1535_v21 = vld [vmem:[#allocation2 + $0x38] sm:$0xff]  ;;  %1452 = vst.msk [vmem:[#allocation2 + $0x30] sm:$0xff] %vm1445_vm2, %v1410_v14 }
 0x21e   : > { %v1536_v2 = vsel %vm3984_vm6, %v1479_v56, %v1535_v21  ;;  %v1477_v35 = vpop.permute.xlu1 %1476  ;;  %v4232_v26 = vpop.permute.xlu0 %1488  ;;  %v1789_v42 = vld [vmem:[#allocation2 + $0x48] sm:$0xff] }
 0x21f   : > { %v1631_v37 = vsel %vm3979_vm5, %v3996_v47, %v1536_v2  ;;  %v1551_v5 = vsel %vm3984_vm6, %v4232_v26, %v1550_v45  ;;  %v1553_v21 = vld [vmem:[#allocation2 + $0x68] sm:$0xff] }
 0x220   : > { %1632 = vst [vmem:[#allocation2 + $0x38] sm:$0xff] %v1631_v37  ;;  %v1786_v6 = vld [vmem:[#allocation2 + $0x40] sm:$0xff] }
 0x221   : > { %1707 = vst.msk [vmem:[#allocation2 + $0x38] sm:$0xff] %vm1699_vm9, %v3869_v31 }
 0x222   : > { %v1573_v41 = vpop.permute.xlu1 %1572  ;;  %v4242_v32 = vpop.permute.xlu0 %1490 }
 0x223   : > { %v1625_v7 = vsel %vm3979_vm5, %v1573_v41, %v1530_v60 }
 0x224   : > { %v1532_v23 = vld [vmem:[#allocation2 + $0x30] sm:$0xff]  ;;  %1626 = vst [vmem:[#allocation2 + $0x28] sm:$0xff] %v1625_v7 }
 0x225   : > { %v1533_v47 = vsel %vm3984_vm6, %v1477_v35, %v1532_v23  ;;  %1705 = vst.msk [vmem:[#allocation2 + $0x28] sm:$0xff] %vm1699_vm9, %v1665_v54 }
 0x226   : > { %v1628_v31 = vsel %vm3979_vm5, %v1575_v51, %v1533_v47  ;;  %v1136_v29 = vpop.permute.xlu1 %1135  ;;  %v1585_v61 = vpop.permute.xlu0 %1584 }
 0x227   : > { %1629 = vst [vmem:[#allocation2 + $0x30] sm:$0xff] %v1628_v31  ;;  %1167 = vst.msk [vmem:[#allocation2 + $0x78] sm:$0xff] %vm1152_vm12, %v1136_v29  ;;  %v1643_v53 = vsel %vm3979_vm5, %v1585_v61, %v1548_v55 }
 0x228   : > { %v1783_v17 = vld [vmem:[#allocation2 + $0x38] sm:$0xff]  ;;  %1706 = vst.msk [vmem:[#allocation2 + $0x30] sm:$0xff] %vm1699_vm9, %v4172_v28  ;;  %1644 = vst [vmem:[#allocation2 + $0x58] sm:$0xff] %v1643_v53 }
 0x229   : > { %v1784_v10 = vsel %vm4012_vm13, %v1730_v34, %v1783_v17 }
 0x22a   : > { %1785 = vst [vmem:[#allocation2 + $0x38] sm:$0xff] %v1784_v10  ;;  %v1583_v11 = vpop.permute.xlu1 %1582  ;;  %v1732_v8 = vpop.permute.xlu0 %1731 }
 0x22b   : > { %v1640_v28 = vsel %vm3979_vm5, %v1583_v11, %v1545_v12  ;;  %v1787_v16 = vsel %vm4012_vm13, %v1732_v8, %v1786_v6 }
 0x22c   : > { %1641 = vst [vmem:[#allocation2 + $0x50] sm:$0xff] %v1640_v28  ;;  %1788 = vst [vmem:[#allocation2 + $0x40] sm:$0xff] %v1787_v16  ;;  %v1777_v19 = vld [vmem:[#allocation2 + $0x28] sm:$0xff] }
 0x22e   : > { %v1675_v22 = vpop.permute.xlu1 %1674  ;;  %v1734_v3 = vpop.permute.xlu0 %1733  ;;  %v1288_v60 = vld [vmem:[#allocation2 + $0x78] sm:$0xff] }
 0x22f   : > { %v1780_v56 = vld [vmem:[#allocation2 + $0x30] sm:$0xff]  ;;  %1710 = vst.msk [vmem:[#allocation2 + $0x50] sm:$0xff] %vm1699_vm9, %v1675_v22  ;;  %v1790_v49 = vsel %vm4012_vm13, %v1734_v3, %v1789_v42 }
 0x230   : > { %v1781_v48 = vsel %vm4012_vm13, %v4206_v25, %v1780_v56  ;;  %1791 = vst [vmem:[#allocation2 + $0x48] sm:$0xff] %v1790_v49 }
 0x231   : > { %1782 = vst [vmem:[#allocation2 + $0x30] sm:$0xff] %v1781_v48 }
 0x232   : > { %v1677_v51 = vpop.permute.xlu1 %1676  ;;  %v1726_v63 = vpop.permute.xlu0 %1725 }
 0x233   : > { %1711 = vst.msk [vmem:[#allocation2 + $0x58] sm:$0xff] %vm1699_vm9, %v1677_v51  ;;  %v1778_v30 = vsel %vm4012_vm13, %v1726_v63, %v1777_v19 }
 0x234   : > { %1779 = vst [vmem:[#allocation2 + $0x28] sm:$0xff] %v1778_v30  ;;  %3150 = vmatmul.mubr.msk.bf16.gmra.mrb[24].mxu1 %vm817_vm10, %v1778_v30 }
 0x235   : > { %3153 = vmatprep.mubr.msk.bf16.mxu1 %vm817_vm10, %v1781_v48 }
 0x236   : > { %v1587_v14 = vpop.permute.xlu1 %1586  ;;  %v1792_v39 = vld [vmem:[#allocation2 + $0x50] sm:$0xff]  ;;  %v1736_v36 = vpop.permute.xlu0 %1735 }
 0x237   : > { %v1646_v54 = vsel %vm3979_vm5, %v1587_v14, %v1551_v5  ;;  %v1793_v25 = vsel %vm4012_vm13, %v1736_v36, %v1792_v39 }
 0x238   : > { %1647 = vst [vmem:[#allocation2 + $0x60] sm:$0xff] %v1646_v54  ;;  %1794 = vst [vmem:[#allocation2 + $0x50] sm:$0xff] %v1793_v25 }
 0x23a   : > { %v1679_v52 = vpop.permute.xlu1 %1678  ;;  %v1327_v33 = vpop.permute.xlu0 %1326  ;;  %v1795_v50 = vld [vmem:[#allocation2 + $0x58] sm:$0xff] }
 0x23b   : > { %1712 = vst.msk [vmem:[#allocation2 + $0x60] sm:$0xff] %vm1699_vm9, %v1679_v52  ;;  %v1391_v34 = vsel %vm3915_vm0, %v1327_v33, %v1286_v4 }
 0x23c   : > { %1392 = vst [vmem:[#allocation2 + $0x70] sm:$0xff] %v1391_v34  ;;  %3154 = vmatmul.mubr.msk.bf16.gmra.mrb[28].mxu1 %vm817_vm10, %v1784_v10  ;;  %v4342_v10 = vld [vmem:[%s4594_s6] ss:$0 sm:$0xff] }
 0x23d   : > { %1460 = vst.msk [vmem:[#allocation2 + $0x70] sm:$0xff] %vm1445_vm2, %v4225_v40  ;;  %3157 = vmatprep.mubr.msk.bf16.mxu1 %vm817_vm10, %v1787_v16  ;;  %v1554_v40 = vsel %vm3984_vm6, %v4242_v32, %v1553_v21 }
 0x23e   : > { %v1681_v18 = vpop.permute.xlu1 %1680  ;;  %v1738_v9 = vpop.permute.xlu0 %1737 }
 0x23f   : > { %v1796_v57 = vsel %vm4012_vm13, %v1738_v9, %v1795_v50 }
 0x240   : > { %1797 = vst [vmem:[#allocation2 + $0x58] sm:$0xff] %v1796_v57 }
 0x242   : > { %v1493_v15 = vpop.permute.xlu1 %1492  ;;  %v1227_v38 = vpop.permute.xlu0 %1226  ;;  %v1798_v23 = vld [vmem:[#allocation2 + $0x60] sm:$0xff] }
 0x243   : > { %v1289_v41 = vsel %vm3920_vm1, %v1227_v38, %v1288_v60 }
 0x244   : > { %v1556_v58 = vld [vmem:[#allocation2 + $0x70] sm:$0xff]  ;;  %3158 = vmatmul.mubr.msk.bf16.gmra.mrb[32].mxu1 %vm817_vm10, %v1790_v49 }
 0x245   : > { %v1557_v2 = vsel %vm3984_vm6, %v1493_v15, %v1556_v58  ;;  %3161 = vmatprep.mubr.msk.bf16.mxu1 %vm817_vm10, %v1793_v25 }
 0x246   : > { %v1591_v35 = vpop.permute.xlu1 %1590  ;;  %v1589_v26 = vpop.permute.xlu0 %1588 }
 0x247   : > { %v1652_v37 = vsel %vm3979_vm5, %v1591_v35, %v1557_v2  ;;  %v1649_v27 = vsel %vm3979_vm5, %v1589_v26, %v1554_v40 }
 0x248   : > { %1653 = vst [vmem:[#allocation2 + $0x70] sm:$0xff] %v1652_v37  ;;  %1650 = vst [vmem:[#allocation2 + $0x68] sm:$0xff] %v1649_v27 }
 0x249   : > { %1713 = vst.msk [vmem:[#allocation2 + $0x68] sm:$0xff] %vm1699_vm9, %v1681_v18 }
 0x24a   : > { %v1683_v7 = vpop.permute.xlu1 %1682  ;;  %v1329_v1 = vpop.permute.xlu0 %1328 }
 0x24b   : > { %1714 = vst.msk [vmem:[#allocation2 + $0x70] sm:$0xff] %vm1699_vm9, %v1683_v7  ;;  %v1394_v32 = vsel %vm3915_vm0, %v1329_v1, %v1289_v41 }
 0x24c   : > { %1395 = vst [vmem:[#allocation2 + $0x78] sm:$0xff] %v1394_v32  ;;  %3162 = vmatmul.mubr.msk.bf16.gmra.mrb[36].mxu1 %vm817_vm10, %v1796_v57 }
 0x24e   : > { %v1428_v62 = vpop.permute.xlu1 %1427  ;;  %v1740_v47 = vpop.permute.xlu0 %1739 }
 0x24f   : > { %1461 = vst.msk [vmem:[#allocation2 + $0x78] sm:$0xff] %vm1445_vm2, %v1428_v62  ;;  %v1799_v31 = vsel %vm4012_vm13, %v1740_v47, %v1798_v23 }
 0x250   : > { %1800 = vst [vmem:[#allocation2 + $0x60] sm:$0xff] %v1799_v31  ;;  %3165 = vmatprep.mubr.msk.bf16.mxu1 %vm817_vm10, %v1799_v31  ;;  %v1801_v55 = vld [vmem:[#allocation2 + $0x68] sm:$0xff] }
 0x252   : > { %v1744_v44 = vpop.permute.xlu1 %1743  ;;  %v1804_v29 = vld [vmem:[#allocation2 + $0x70] sm:$0xff]  ;;  %v1742_v61 = vpop.permute.xlu0 %1741 }
 0x253   : > { %v1805_v13 = vsel %vm4012_vm13, %v1744_v44, %v1804_v29  ;;  %v1802_v43 = vsel %vm4012_vm13, %v1742_v61, %v1801_v55 }
 0x254   : > { %1806 = vst [vmem:[#allocation2 + $0x70] sm:$0xff] %v1805_v13  ;;  %1803 = vst [vmem:[#allocation2 + $0x68] sm:$0xff] %v1802_v43  ;;  %3166 = vmatmul.mubr.msk.bf16.gmra.mrb[40].mxu1 %vm817_vm10, %v1802_v43 }
 0x255   : > { %3169 = vmatprep.mubr.msk.bf16.mxu1 %vm817_vm10, %v1805_v13 }
 0x256   : > { %v1559_v53 = vld [vmem:[#allocation2 + $0x78] sm:$0xff]  ;;  %v1495_v59 = vpop.permute.xlu0 %1494 }
 0x257   : > { %v1560_v17 = vsel %vm3984_vm6, %v1495_v59, %v1559_v53 }
 0x258   : > { %1561 = vst [vmem:[#allocation2 + $0x78] sm:$0xff] %v1560_v17 }
 0x25c   : > { %3170 = vmatmul.mubr.msk.bf16.gmra.mrb[44].mxu1 %vm817_vm10, %v1560_v17 }
 0x29d   : > { %v3143_v46 = vpop.f32.mrb[16].mxu1 }
 0x29e   : > { %v2065_v12 = vmul.f32 %v3143_v46, %v4337_v24  ;;  %v1929_v11 = vpop.f32.mrb[17].mxu1 }
 0x29f   : > { %v2063_v0 = vmul.f32 %v4337_v24, %v1929_v11  ;;  %v3144_v6 = vpop.f32.mrb[18].mxu1 }
 0x2a0   : > { %v2104_v8 = vadd.f32 %v4342_v10, %v2065_v12  ;;  %v2066_v28 = vmul.f32 %v3144_v6, %v4337_v24  ;;  %v1932_v16 = vpop.f32.mrb[19].mxu1 }
 0x2a1   : > { %v2102_v22 = vadd.f32 %v4342_v10, %v2063_v0  ;;  %v2064_v42 = vmul.f32 %v4337_v24, %v1932_v16 }
 0x2a2   : > { %v2105_v3 = vadd.f32 %v4342_v10, %v2066_v28  ;;  %v2136_v49 = vmax.f32 %v2104_v8, 0.0 }
 0x2a3   : > { %v2103_v56 = vadd.f32 %v4342_v10, %v2064_v42  ;;  %v2134_v51 = vmax.f32 %v2102_v22, 0.0 }
 0x2a4   : > { %v2137_v48 = vmax.f32 %v2105_v3, 0.0 }
 0x2a5   : > { %v2135_v19 = vmax.f32 %v2103_v56, 0.0 }
 0x2a6   : > { %v2167_v63 = vpack.c.bf16 %v2137_v48, %v2136_v49 }
 0x2a7   : > { %v2166_v30 = vpack.c.bf16 %v2135_v19, %v2134_v51 }
 0x2a9   : > { %3175 = vmatprep.mubr.msk.bf16.mxu0 %vm1044_vm7, %v2166_v30 }
 0x2aa   : > { %3176 = vmatmul.mubr.msk.bf16.vlgmr.msra.gmra.mrb[16].mxu0 %vm1044_vm7, %v2167_v63 }
 0x2d1   : > { %v3147_v45 = vpop.f32.mrb[20].mxu1 }
 0x2d2   : > { %v2069_v5 = vmul.f32 %v3147_v45, %v4337_v24  ;;  %v1945_v14 = vpop.f32.mrb[21].mxu1 }
 0x2d3   : > { %v2067_v39 = vmul.f32 %v4337_v24, %v1945_v14  ;;  %v3148_v36 = vpop.f32.mrb[22].mxu1 }
 0x2d4   : > { %v2108_v54 = vadd.f32 %v4342_v10, %v2069_v5  ;;  %v2070_v25 = vmul.f32 %v3148_v36, %v4337_v24  ;;  %v1948_v20 = vpop.f32.mrb[23].mxu1 }
 0x2d5   : > { %v2106_v4 = vadd.f32 %v4342_v10, %v2067_v39  ;;  %v2068_v52 = vmul.f32 %v4337_v24, %v1948_v20 }
 0x2d6   : > { %v2109_v33 = vadd.f32 %v4342_v10, %v2070_v25  ;;  %v2140_v18 = vmax.f32 %v2108_v54, 0.0 }
 0x2d7   : > { %v2107_v34 = vadd.f32 %v4342_v10, %v2068_v52  ;;  %v2138_v9 = vmax.f32 %v2106_v4, 0.0 }
 0x2d8   : > { %v2141_v50 = vmax.f32 %v2109_v33, 0.0 }
 0x2d9   : > { %v2139_v57 = vmax.f32 %v2107_v34, 0.0 }
 0x2da   : > { %v2169_v15 = vpack.c.bf16 %v2141_v50, %v2140_v18 }
 0x2db   : > { %v2168_v38 = vpack.c.bf16 %v2139_v57, %v2138_v9 }
 0x2dd   : > { %3179 = vmatprep.mubr.msk.bf16.mxu0 %vm1044_vm7, %v2168_v38 }
 0x2de   : > { %3180 = vmatmul.mubr.msk.bf16.gmra.mrb[20].mxu0 %vm1044_vm7, %v2169_v15 }
 0x307   : > { %v3151_v58 = vpop.f32.mrb[24].mxu1 }
 0x308   : > { %v2073_v21 = vmul.f32 %v3151_v58, %v4337_v24  ;;  %v1961_v2 = vpop.f32.mrb[25].mxu1 }
 0x309   : > { %v2071_v40 = vmul.f32 %v4337_v24, %v1961_v2  ;;  %v3152_v35 = vpop.f32.mrb[26].mxu1 }
 0x30a   : > { %v2112_v26 = vadd.f32 %v4342_v10, %v2073_v21  ;;  %v2074_v37 = vmul.f32 %v3152_v35, %v4337_v24  ;;  %v1964_v27 = vpop.f32.mrb[27].mxu1 }
 0x30b   : > { %v2110_v60 = vadd.f32 %v4342_v10, %v2071_v40  ;;  %v2072_v41 = vmul.f32 %v4337_v24, %v1964_v27 }
 0x30c   : > { %v2113_v7 = vadd.f32 %v4342_v10, %v2074_v37  ;;  %v2144_v32 = vmax.f32 %v2112_v26, 0.0 }
 0x30d   : > { %v2111_v1 = vadd.f32 %v4342_v10, %v2072_v41  ;;  %v2142_v23 = vmax.f32 %v2110_v60, 0.0 }
 0x30e   : > { %v2145_v62 = vmax.f32 %v2113_v7, 0.0 }
 0x30f   : > { %v2143_v47 = vmax.f32 %v2111_v1, 0.0  ;;  %v3155_v31 = vpop.f32.mrb[28].mxu1 }
 0x310   : > { %v2171_v44 = vpack.c.bf16 %v2145_v62, %v2144_v32  ;;  %v2077_v29 = vmul.f32 %v3155_v31, %v4337_v24  ;;  %v1977_v55 = vpop.f32.mrb[29].mxu1 }
 0x311   : > { %v2170_v61 = vpack.c.bf16 %v2143_v47, %v2142_v23  ;;  %v2075_v13 = vmul.f32 %v4337_v24, %v1977_v55  ;;  %v3156_v43 = vpop.f32.mrb[30].mxu1 }
 0x312   : > { %v2116_v53 = vadd.f32 %v4342_v10, %v2077_v29  ;;  %v2078_v59 = vmul.f32 %v3156_v43, %v4337_v24  ;;  %v1980_v17 = vpop.f32.mrb[31].mxu1 }
 0x313   : > { %v2114_v46 = vadd.f32 %v4342_v10, %v2075_v13  ;;  %v2076_v12 = vmul.f32 %v4337_v24, %v1980_v17  ;;  %3183 = vmatprep.mubr.msk.bf16.mxu0 %vm1044_vm7, %v2170_v61 }
 0x314   : > { %v2117_v11 = vadd.f32 %v4342_v10, %v2078_v59  ;;  %3184 = vmatmul.mubr.msk.bf16.gmra.mrb[24].mxu0 %vm1044_vm7, %v2171_v44  ;;  %v2148_v6 = vmax.f32 %v2116_v53, 0.0 }
 0x315   : > { %v2115_v0 = vadd.f32 %v4342_v10, %v2076_v12  ;;  %v2146_v28 = vmax.f32 %v2114_v46, 0.0 }
 0x316   : > { %v2149_v8 = vmax.f32 %v2117_v11, 0.0 }
 0x317   : > { %v2147_v16 = vmax.f32 %v2115_v0, 0.0  ;;  %v3159_v22 = vpop.f32.mrb[32].mxu1 }
 0x318   : > { %v2173_v42 = vpack.c.bf16 %v2149_v8, %v2148_v6  ;;  %v2081_v3 = vmul.f32 %v3159_v22, %v4337_v24  ;;  %v1993_v56 = vpop.f32.mrb[33].mxu1 }
 0x319   : > { %v2172_v49 = vpack.c.bf16 %v2147_v16, %v2146_v28  ;;  %v2079_v48 = vmul.f32 %v4337_v24, %v1993_v56  ;;  %v3160_v51 = vpop.f32.mrb[34].mxu1 }
 0x31a   : > { %v2120_v19 = vadd.f32 %v4342_v10, %v2081_v3  ;;  %v2082_v63 = vmul.f32 %v3160_v51, %v4337_v24  ;;  %v1996_v30 = vpop.f32.mrb[35].mxu1 }
 0x31b   : > { %v2118_v45 = vadd.f32 %v4342_v10, %v2079_v48  ;;  %v2080_v5 = vmul.f32 %v4337_v24, %v1996_v30  ;;  %3187 = vmatprep.mubr.msk.bf16.mxu0 %vm1044_vm7, %v2172_v49 }
 0x31c   : > { %v2121_v14 = vadd.f32 %v4342_v10, %v2082_v63  ;;  %3188 = vmatmul.mubr.msk.bf16.gmra.mrb[28].mxu0 %vm1044_vm7, %v2173_v42  ;;  %v2152_v36 = vmax.f32 %v2120_v19, 0.0 }
 0x31d   : > { %v2119_v39 = vadd.f32 %v4342_v10, %v2080_v5  ;;  %v2150_v25 = vmax.f32 %v2118_v45, 0.0 }
 0x31e   : > { %v2153_v54 = vmax.f32 %v2121_v14, 0.0  ;;  %v3033_v14 = vld [vmem:[%s3339_s20 + $0x8] sm:$0xff]  }
 0x31f   : > { %v2151_v20 = vmax.f32 %v2119_v39, 0.0  ;;  %v3163_v4 = vpop.f32.mrb[36].mxu1  ;;  %v2970_v39 = vld [vmem:[%s3339_s20] sm:$0xff]  }
 0x320   : > { %v2175_v52 = vpack.c.bf16 %v2153_v54, %v2152_v36  ;;  %v2085_v33 = vmul.f32 %v3163_v4, %v4337_v24  ;;  %v2009_v34 = vpop.f32.mrb[37].mxu1 }
 0x321   : > { %v2174_v18 = vpack.c.bf16 %v2151_v20, %v2150_v25  ;;  %v2083_v50 = vmul.f32 %v4337_v24, %v2009_v34  ;;  %v3164_v9 = vpop.f32.mrb[38].mxu1  ;;  %v2975_v25 = vunpack.c.l.bf16 %v3033_v14 }
 0x322   : > { %v2124_v57 = vadd.f32 %v4342_v10, %v2085_v33  ;;  %v2086_v15 = vmul.f32 %v3164_v9, %v4337_v24  ;;  %v2012_v38 = vpop.f32.mrb[39].mxu1 }
 0x323   : > { %v2122_v58 = vadd.f32 %v4342_v10, %v2083_v50  ;;  %v2084_v21 = vmul.f32 %v4337_v24, %v2012_v38  ;;  %3191 = vmatprep.mubr.msk.bf16.mxu0 %vm1044_vm7, %v2174_v18  ;;  %v2976_v50 = vunpack.c.h.bf16 %v3033_v14  ;;  %v2972_v38 = vunpack.c.h.bf16 %v2970_v39 }
 0x324   : > { %v2125_v2 = vadd.f32 %v4342_v10, %v2086_v15  ;;  %3192 = vmatmul.mubr.msk.bf16.gmra.mrb[32].mxu0 %vm1044_vm7, %v2175_v52  ;;  %v2156_v35 = vmax.f32 %v2124_v57, 0.0  ;;  %v2971_v52 = vunpack.c.l.bf16 %v2970_v39 }
 0x325   : > { %v2123_v40 = vadd.f32 %v4342_v10, %v2084_v21  ;;  %v2154_v37 = vmax.f32 %v2122_v58, 0.0 }
 0x326   : > { %v2157_v26 = vmax.f32 %v2125_v2, 0.0 }
 0x327   : > { %v2155_v27 = vmax.f32 %v2123_v40, 0.0  ;;  %v3167_v60 = vpop.f32.mrb[40].mxu1 }
 0x328   : > { %v2177_v41 = vpack.c.bf16 %v2157_v26, %v2156_v35  ;;  %v2089_v7 = vmul.f32 %v3167_v60, %v4337_v24  ;;  %v2025_v1 = vpop.f32.mrb[41].mxu1 }
 0x329   : > { %v2176_v32 = vpack.c.bf16 %v2155_v27, %v2154_v37  ;;  %v2087_v62 = vmul.f32 %v4337_v24, %v2025_v1  ;;  %v3168_v23 = vpop.f32.mrb[42].mxu1 }
 0x32a   : > { %v2128_v47 = vadd.f32 %v4342_v10, %v2089_v7  ;;  %v2090_v31 = vmul.f32 %v3168_v23, %v4337_v24  ;;  %v2028_v44 = vpop.f32.mrb[43].mxu1  ;;  %v3035_v23 = vld [vmem:[%s3339_s20 + $0x18] sm:$0xff]  }
 0x32b   : > { %v2126_v29 = vadd.f32 %v4342_v10, %v2087_v62  ;;  %v2088_v55 = vmul.f32 %v4337_v24, %v2028_v44  ;;  %3195 = vmatprep.mubr.msk.bf16.mxu0 %vm1044_vm7, %v2176_v32 }
 0x32c   : > { %v2129_v61 = vadd.f32 %v4342_v10, %v2090_v31  ;;  %3196 = vmatmul.mubr.msk.bf16.gmra.mrb[36].mxu0 %vm1044_vm7, %v2177_v41  ;;  %v2160_v43 = vmax.f32 %v2128_v47, 0.0  ;;  %v3034_v47 = vld [vmem:[%s3339_s20 + $0x10] sm:$0xff]  }
 0x32d   : > { %v2127_v13 = vadd.f32 %v4342_v10, %v2088_v55  ;;  %v2158_v59 = vmax.f32 %v2126_v29, 0.0  ;;  %v2983_v29 = vunpack.c.l.bf16 %v3035_v23 }
 0x32e   : > { %v2161_v53 = vmax.f32 %v2129_v61, 0.0 }
 0x32f   : > { %v2159_v17 = vmax.f32 %v2127_v13, 0.0  ;;  %v3171_v46 = vpop.f32.mrb[44].mxu1  ;;  %v2979_v13 = vunpack.c.l.bf16 %v3034_v47 }
 0x330   : > { %v2179_v12 = vpack.c.bf16 %v2161_v53, %v2160_v43  ;;  %v2093_v11 = vmul.f32 %v3171_v46, %v4337_v24  ;;  %v2041_v0 = vpop.f32.mrb[45].mxu1 }
 0x331   : > { %v2178_v6 = vpack.c.bf16 %v2159_v17, %v2158_v59  ;;  %v2091_v8 = vmul.f32 %v4337_v24, %v2041_v0  ;;  %v3172_v28 = vpop.f32.mrb[46].mxu1  ;;  %v2984_v17 = vunpack.c.h.bf16 %v3035_v23  ;;  %v2980_v0 = vunpack.c.h.bf16 %v3034_v47 }
 0x332   : > { %v2132_v16 = vadd.f32 %v4342_v10, %v2093_v11  ;;  %v2094_v22 = vmul.f32 %v3172_v28, %v4337_v24  ;;  %v2044_v42 = vpop.f32.mrb[47].mxu1 }
 0x333   : > { %v2130_v3 = vadd.f32 %v4342_v10, %v2091_v8  ;;  %v2092_v56 = vmul.f32 %v4337_v24, %v2044_v42  ;;  %3199 = vmatprep.mubr.msk.bf16.mxu0 %vm1044_vm7, %v2178_v6  ;;  %v4427_v24 = vld [vmem:[%s4596_s8] ss:$0 sm:$0xff] }
 0x334   : > { %v2133_v49 = vadd.f32 %v4342_v10, %v2094_v22  ;;  %3200 = vmatmul.mubr.msk.bf16.gmra.mrb[40].mxu0 %vm1044_vm7, %v2179_v12  ;;  %v2164_v51 = vmax.f32 %v2132_v16, 0.0 }
 0x335   : > { %v2131_v48 = vadd.f32 %v4342_v10, %v2092_v56  ;;  %v2162_v63 = vmax.f32 %v2130_v3, 0.0  ;;  %v4434_v10 = vld [vmem:[%s4597_s9] ss:$0 sm:$0xff] }
 0x336   : > { %v2165_v19 = vmax.f32 %v2133_v49, 0.0 }
 0x337   : > { %v2163_v30 = vmax.f32 %v2131_v48, 0.0 }
 0x338   : > { %v2181_v45 = vpack.c.bf16 %v2165_v19, %v2164_v51 }
 0x339   : > { %v2180_v5 = vpack.c.bf16 %v2163_v30, %v2162_v63 }
 0x33b   : > { %3203 = vmatprep.mubr.msk.bf16.mxu0 %vm1044_vm7, %v2180_v5  ;;  %v3036_v5 = vld [vmem:[%s3339_s20 + $0x20] sm:$0xff]  }
 0x33c   : > { %3204 = vmatmul.mubr.msk.bf16.gmra.mrb[44].mxu0 %vm1044_vm7, %v2181_v45  ;;  %vm2730_vm7 = vcmask 125952   ;;  %v3037_v45 = vld [vmem:[%s3339_s20 + $0x28] sm:$0xff]  }
 0x37d   : > { %v3177_v36 = vpop.f32.mrb[16].mxu0 }
 0x37e   : > { %v2405_v54 = vmul.f32 %v3177_v36, %v4427_v24  ;;  %v2269_v20 = vpop.f32.mrb[17].mxu0  ;;  %v2991_v36 = vunpack.c.l.bf16 %v3037_v45 }
 0x37f   : > { %v2403_v4 = vmul.f32 %v4427_v24, %v2269_v20  ;;  %v3178_v33 = vpop.f32.mrb[18].mxu0  ;;  %v2987_v20 = vunpack.c.l.bf16 %v3036_v5 }
 0x380   : > { %v2444_v34 = vadd.f32 %v4434_v10, %v2405_v54  ;;  %v2406_v18 = vmul.f32 %v3178_v33, %v4427_v24  ;;  %v2272_v9 = vpop.f32.mrb[19].mxu0 }
 0x381   : > { %v2442_v57 = vadd.f32 %v4434_v10, %v2403_v4  ;;  %v2404_v15 = vmul.f32 %v4427_v24, %v2272_v9 }
 0x382   : > { %v2540_v58 = vadd.f32 %v2975_v25, %v2444_v34  ;;  %v2445_v21 = vadd.f32 %v4434_v10, %v2406_v18  ;;  %v2992_v34 = vunpack.c.h.bf16 %v3037_v45 }
 0x383   : > { %v2538_v2 = vadd.f32 %v2971_v52, %v2442_v57  ;;  %v2443_v40 = vadd.f32 %v4434_v10, %v2404_v15  ;;  %v2988_v57 = vunpack.c.h.bf16 %v3036_v5 }
 0x384   : > { %v2572_v35 = vmax.f32 %v2540_v58, 0.0  ;;  %v2541_v26 = vadd.f32 %v2976_v50, %v2445_v21 }
 0x385   : > { %v2570_v37 = vmax.f32 %v2538_v2, 0.0  ;;  %v2539_v27 = vadd.f32 %v2972_v38, %v2443_v40  ;;  %v3039_v2 = vld [vmem:[%s3339_s20 + $0x38] sm:$0xff]  }
 0x386   : > { %v2939_v60 = vpack.c.bf16 %v2572_v35, %v2572_v35  ;;  %v2573_v41 = vmax.f32 %v2541_v26, 0.0  ;;  %v3038_v26 = vld [vmem:[%s3339_s20 + $0x30] sm:$0xff]  }
 0x387   : > { %v2937_v7 = vpack.c.bf16 %v2570_v37, %v2570_v37  ;;  %v2571_v1 = vmax.f32 %v2539_v27, 0.0 }
 0x388   : > { %2733 = vst.msk [vmem:[%s4449_s18 + $0x8] sm:$0xf] %vm2730_vm7, %v2939_v60  ;;  %v2940_v32 = vpack.c.bf16 %v2573_v41, %v2573_v41 }
 0x389   : > { %2731 = vst.msk [vmem:[%s4449_s18] sm:$0xf] %vm2730_vm7, %v2937_v7  ;;  %v2938_v62 = vpack.c.bf16 %v2571_v1, %v2571_v1 }
 0x38a   : > { %2734 = vst.msk [vmem:[%s4449_s18 + $0xc] sm:$0xf] %vm2730_vm7, %v2940_v32  ;;  %v2999_v32 = vunpack.c.l.bf16 %v3039_v2 }
 0x38b   : > { %2732 = vst.msk [vmem:[%s4449_s18 + $0x4] sm:$0xf] %vm2730_vm7, %v2938_v62 }
 0x3b1   : > { %v3181_v31 = vpop.f32.mrb[20].mxu0 }
 0x3b2   : > { %v2409_v44 = vmul.f32 %v3181_v31, %v4427_v24  ;;  %v2285_v55 = vpop.f32.mrb[21].mxu0 }
 0x3b3   : > { %v2407_v61 = vmul.f32 %v4427_v24, %v2285_v55  ;;  %v3182_v43 = vpop.f32.mrb[22].mxu0 }
 0x3b4   : > { %v2448_v53 = vadd.f32 %v4434_v10, %v2409_v44  ;;  %v2410_v59 = vmul.f32 %v3182_v43, %v4427_v24  ;;  %v2288_v46 = vpop.f32.mrb[23].mxu0  ;;  %v2995_v44 = vunpack.c.l.bf16 %v3038_v26  ;;  %v3000_v43 = vunpack.c.h.bf16 %v3039_v2 }
 0x3b5   : > { %v2446_v12 = vadd.f32 %v4434_v10, %v2407_v61  ;;  %v2408_v11 = vmul.f32 %v4427_v24, %v2288_v46 }
 0x3b6   : > { %v2544_v6 = vadd.f32 %v2983_v29, %v2448_v53  ;;  %v2449_v8 = vadd.f32 %v4434_v10, %v2410_v59 }
 0x3b7   : > { %v2542_v28 = vadd.f32 %v2979_v13, %v2446_v12  ;;  %v2447_v16 = vadd.f32 %v4434_v10, %v2408_v11  ;;  %v2996_v12 = vunpack.c.h.bf16 %v3038_v26 }
 0x3b8   : > { %v2576_v22 = vmax.f32 %v2544_v6, 0.0  ;;  %v2545_v42 = vadd.f32 %v2984_v17, %v2449_v8 }
 0x3b9   : > { %v2574_v3 = vmax.f32 %v2542_v28, 0.0  ;;  %v2543_v56 = vadd.f32 %v2980_v0, %v2447_v16  ;;  %v3041_v28 = vld [vmem:[%s3339_s20 + $0x48] sm:$0xff]  }
 0x3ba   : > { %v2943_v49 = vpack.c.bf16 %v2576_v22, %v2576_v22  ;;  %v2577_v48 = vmax.f32 %v2545_v42, 0.0  ;;  %v3040_v42 = vld [vmem:[%s3339_s20 + $0x40] sm:$0xff]  }
 0x3bb   : > { %v2941_v51 = vpack.c.bf16 %v2574_v3, %v2574_v3  ;;  %v2575_v19 = vmax.f32 %v2543_v56, 0.0 }
 0x3bc   : > { %2737 = vst.msk [vmem:[%s4449_s18 + $0x18] sm:$0xf] %vm2730_vm7, %v2943_v49  ;;  %v2944_v63 = vpack.c.bf16 %v2577_v48, %v2577_v48 }
 0x3bd   : > { %2735 = vst.msk [vmem:[%s4449_s18 + $0x10] sm:$0xf] %vm2730_vm7, %v2941_v51  ;;  %v2942_v30 = vpack.c.bf16 %v2575_v19, %v2575_v19 }
 0x3be   : > { %2738 = vst.msk [vmem:[%s4449_s18 + $0x1c] sm:$0xf] %vm2730_vm7, %v2944_v63  ;;  %v3007_v63 = vunpack.c.l.bf16 %v3041_v28 }
 0x3bf   : > { %2736 = vst.msk [vmem:[%s4449_s18 + $0x14] sm:$0xf] %vm2730_vm7, %v2942_v30 }
 0x3e7   : > { %v3185_v14 = vpop.f32.mrb[24].mxu0 }
 0x3e8   : > { %v2413_v39 = vmul.f32 %v3185_v14, %v4427_v24  ;;  %v2301_v54 = vpop.f32.mrb[25].mxu0 }
 0x3e9   : > { %v2411_v25 = vmul.f32 %v4427_v24, %v2301_v54  ;;  %v3186_v4 = vpop.f32.mrb[26].mxu0 }
 0x3ea   : > { %v2452_v52 = vadd.f32 %v4434_v10, %v2413_v39  ;;  %v2414_v33 = vmul.f32 %v3186_v4, %v4427_v24  ;;  %v2304_v18 = vpop.f32.mrb[27].mxu0  ;;  %v3003_v39 = vunpack.c.l.bf16 %v3040_v42  ;;  %v3008_v4 = vunpack.c.h.bf16 %v3041_v28 }
 0x3eb   : > { %v2450_v50 = vadd.f32 %v4434_v10, %v2411_v25  ;;  %v2412_v9 = vmul.f32 %v4427_v24, %v2304_v18 }
 0x3ec   : > { %v2548_v15 = vadd.f32 %v2991_v36, %v2452_v52  ;;  %v2453_v38 = vadd.f32 %v4434_v10, %v2414_v33 }
 0x3ed   : > { %v2546_v58 = vadd.f32 %v2987_v20, %v2450_v50  ;;  %v2451_v21 = vadd.f32 %v4434_v10, %v2412_v9  ;;  %v3004_v50 = vunpack.c.h.bf16 %v3040_v42 }
 0x3ee   : > { %v2580_v40 = vmax.f32 %v2548_v15, 0.0  ;;  %v2549_v35 = vadd.f32 %v2992_v34, %v2453_v38 }
 0x3ef   : > { %v2578_v37 = vmax.f32 %v2546_v58, 0.0  ;;  %v2547_v27 = vadd.f32 %v2988_v57, %v2451_v21  ;;  %v3189_v60 = vpop.f32.mrb[28].mxu0  ;;  %v3043_v58 = vld [vmem:[%s3339_s20 + $0x58] sm:$0xff]  }
 0x3f0   : > { %v2947_v41 = vpack.c.bf16 %v2580_v40, %v2580_v40  ;;  %v2581_v7 = vmax.f32 %v2549_v35, 0.0  ;;  %v2417_v1 = vmul.f32 %v3189_v60, %v4427_v24  ;;  %v2317_v62 = vpop.f32.mrb[29].mxu0  ;;  %v3042_v40 = vld [vmem:[%s3339_s20 + $0x50] sm:$0xff]  }
 0x3f1   : > { %v2945_v23 = vpack.c.bf16 %v2578_v37, %v2578_v37  ;;  %v2579_v47 = vmax.f32 %v2547_v27, 0.0  ;;  %v2415_v31 = vmul.f32 %v4427_v24, %v2317_v62  ;;  %v3190_v29 = vpop.f32.mrb[30].mxu0 }
 0x3f2   : > { %2741 = vst.msk [vmem:[%s4449_s18 + $0x28] sm:$0xf] %vm2730_vm7, %v2947_v41  ;;  %v2948_v55 = vpack.c.bf16 %v2581_v7, %v2581_v7  ;;  %v2456_v61 = vadd.f32 %v4434_v10, %v2417_v1  ;;  %v2418_v13 = vmul.f32 %v3190_v29, %v4427_v24  ;;  %v2320_v53 = vpop.f32.mrb[31].mxu0  ;;  %v3015_v7 = vunpack.c.l.bf16 %v3043_v58 }
 0x3f3   : > { %2739 = vst.msk [vmem:[%s4449_s18 + $0x20] sm:$0xf] %vm2730_vm7, %v2945_v23  ;;  %v2946_v59 = vpack.c.bf16 %v2579_v47, %v2579_v47  ;;  %v2454_v17 = vadd.f32 %v4434_v10, %v2415_v31  ;;  %v2416_v46 = vmul.f32 %v4427_v24, %v2320_v53  ;;  %v3011_v47 = vunpack.c.l.bf16 %v3042_v40 }
 0x3f4   : > { %2742 = vst.msk [vmem:[%s4449_s18 + $0x2c] sm:$0xf] %vm2730_vm7, %v2948_v55  ;;  %v2552_v11 = vadd.f32 %v2999_v32, %v2456_v61  ;;  %v2457_v0 = vadd.f32 %v4434_v10, %v2418_v13  ;;  %v3016_v61 = vunpack.c.h.bf16 %v3043_v58 }
 0x3f5   : > { %2740 = vst.msk [vmem:[%s4449_s18 + $0x24] sm:$0xf] %vm2730_vm7, %v2946_v59  ;;  %v2550_v6 = vadd.f32 %v2995_v44, %v2454_v17  ;;  %v2455_v8 = vadd.f32 %v4434_v10, %v2416_v46  ;;  %v3012_v17 = vunpack.c.h.bf16 %v3042_v40 }
 0x3f6   : > { %v2584_v16 = vmax.f32 %v2552_v11, 0.0  ;;  %v2553_v22 = vadd.f32 %v3000_v43, %v2457_v0 }
 0x3f7   : > { %v2582_v3 = vmax.f32 %v2550_v6, 0.0  ;;  %v2551_v56 = vadd.f32 %v2996_v12, %v2455_v8  ;;  %v3193_v49 = vpop.f32.mrb[32].mxu0  ;;  %v3045_v6 = vld [vmem:[%s3339_s20 + $0x68] sm:$0xff]  }
 0x3f8   : > { %v2951_v48 = vpack.c.bf16 %v2584_v16, %v2584_v16  ;;  %v2585_v51 = vmax.f32 %v2553_v22, 0.0  ;;  %v2421_v19 = vmul.f32 %v3193_v49, %v4427_v24  ;;  %v2333_v30 = vpop.f32.mrb[33].mxu0  ;;  %v3044_v16 = vld [vmem:[%s3339_s20 + $0x60] sm:$0xff]  }
 0x3f9   : > { %v2949_v45 = vpack.c.bf16 %v2582_v3, %v2582_v3  ;;  %v2583_v5 = vmax.f32 %v2551_v56, 0.0  ;;  %v2419_v14 = vmul.f32 %v4427_v24, %v2333_v30  ;;  %v3194_v36 = vpop.f32.mrb[34].mxu0 }
 0x3fa   : > { %2745 = vst.msk [vmem:[%s4449_s18 + $0x38] sm:$0xf] %vm2730_vm7, %v2951_v48  ;;  %v2952_v54 = vpack.c.bf16 %v2585_v51, %v2585_v51  ;;  %v2460_v25 = vadd.f32 %v4434_v10, %v2421_v19  ;;  %v2422_v20 = vmul.f32 %v3194_v36, %v4427_v24  ;;  %v2336_v52 = vpop.f32.mrb[35].mxu0  ;;  %v3023_v51 = vunpack.c.l.bf16 %v3045_v6 }
 0x3fb   : > { %2743 = vst.msk [vmem:[%s4449_s18 + $0x30] sm:$0xf] %vm2730_vm7, %v2949_v45  ;;  %v2950_v33 = vpack.c.bf16 %v2583_v5, %v2583_v5  ;;  %v2458_v34 = vadd.f32 %v4434_v10, %v2419_v14  ;;  %v2420_v18 = vmul.f32 %v4427_v24, %v2336_v52  ;;  %v3019_v5 = vunpack.c.l.bf16 %v3044_v16 }
 0x3fc   : > { %2746 = vst.msk [vmem:[%s4449_s18 + $0x3c] sm:$0xf] %vm2730_vm7, %v2952_v54  ;;  %v2556_v9 = vadd.f32 %v3007_v63, %v2460_v25  ;;  %v2461_v57 = vadd.f32 %v4434_v10, %v2422_v20  ;;  %v3024_v25 = vunpack.c.h.bf16 %v3045_v6 }
 0x3fd   : > { %2744 = vst.msk [vmem:[%s4449_s18 + $0x34] sm:$0xf] %vm2730_vm7, %v2950_v33  ;;  %v2554_v15 = vadd.f32 %v3003_v39, %v2458_v34  ;;  %v2459_v38 = vadd.f32 %v4434_v10, %v2420_v18  ;;  %v3020_v34 = vunpack.c.h.bf16 %v3044_v16 }
 0x3fe   : > { %v2588_v21 = vmax.f32 %v2556_v9, 0.0  ;;  %v2557_v2 = vadd.f32 %v3008_v4, %v2461_v57 }
 0x3ff   : > { %v2586_v35 = vmax.f32 %v2554_v15, 0.0  ;;  %v2555_v26 = vadd.f32 %v3004_v50, %v2459_v38  ;;  %v3197_v37 = vpop.f32.mrb[36].mxu0  ;;  %v3047_v15 = vld [vmem:[%s3339_s20 + $0x78] sm:$0xff]  }
 0x400   : > { %v2955_v27 = vpack.c.bf16 %v2588_v21, %v2588_v21  ;;  %v2589_v60 = vmax.f32 %v2557_v2, 0.0  ;;  %v2425_v41 = vmul.f32 %v3197_v37, %v4427_v24  ;;  %v2349_v1 = vpop.f32.mrb[37].mxu0  ;;  %v3046_v21 = vld [vmem:[%s3339_s20 + $0x70] sm:$0xff]  }
 0x401   : > { %v2953_v32 = vpack.c.bf16 %v2586_v35, %v2586_v35  ;;  %v2587_v62 = vmax.f32 %v2555_v26, 0.0  ;;  %v2423_v23 = vmul.f32 %v4427_v24, %v2349_v1  ;;  %v3198_v31 = vpop.f32.mrb[38].mxu0 }
 0x402   : > { %2749 = vst.msk [vmem:[%s4449_s18 + $0x48] sm:$0xf] %vm2730_vm7, %v2955_v27  ;;  %v2956_v44 = vpack.c.bf16 %v2589_v60, %v2589_v60  ;;  %v2464_v29 = vadd.f32 %v4434_v10, %v2425_v41  ;;  %v2426_v55 = vmul.f32 %v3198_v31, %v4427_v24  ;;  %v2352_v13 = vpop.f32.mrb[39].mxu0  ;;  %v3031_v60 = vunpack.c.l.bf16 %v3047_v15 }
 0x403   : > { %2747 = vst.msk [vmem:[%s4449_s18 + $0x40] sm:$0xf] %vm2730_vm7, %v2953_v32  ;;  %v2954_v43 = vpack.c.bf16 %v2587_v62, %v2587_v62  ;;  %v2462_v53 = vadd.f32 %v4434_v10, %v2423_v23  ;;  %v2424_v59 = vmul.f32 %v4427_v24, %v2352_v13  ;;  %v3027_v62 = vunpack.c.l.bf16 %v3046_v21 }
 0x404   : > { %2750 = vst.msk [vmem:[%s4449_s18 + $0x4c] sm:$0xf] %vm2730_vm7, %v2956_v44  ;;  %v2560_v46 = vadd.f32 %v3015_v7, %v2464_v29  ;;  %v2465_v12 = vadd.f32 %v4434_v10, %v2426_v55  ;;  %v3032_v29 = vunpack.c.h.bf16 %v3047_v15 }
 0x405   : > { %2748 = vst.msk [vmem:[%s4449_s18 + $0x44] sm:$0xf] %vm2730_vm7, %v2954_v43  ;;  %v2558_v11 = vadd.f32 %v3011_v47, %v2462_v53  ;;  %v2463_v0 = vadd.f32 %v4434_v10, %v2424_v59  ;;  %v3028_v53 = vunpack.c.h.bf16 %v3046_v21 }
 0x406   : > { %v2592_v8 = vmax.f32 %v2560_v46, 0.0  ;;  %v2561_v28 = vadd.f32 %v3016_v61, %v2465_v12 }
 0x407   : > { %v2590_v22 = vmax.f32 %v2558_v11, 0.0  ;;  %v2559_v42 = vadd.f32 %v3012_v17, %v2463_v0  ;;  %v3201_v3 = vpop.f32.mrb[40].mxu0 }
 0x408   : > { %v2959_v56 = vpack.c.bf16 %v2592_v8, %v2592_v8  ;;  %v2593_v49 = vmax.f32 %v2561_v28, 0.0  ;;  %v2429_v48 = vmul.f32 %v3201_v3, %v4427_v24  ;;  %v2365_v19 = vpop.f32.mrb[41].mxu0 }
 0x409   : > { %v2957_v63 = vpack.c.bf16 %v2590_v22, %v2590_v22  ;;  %v2591_v30 = vmax.f32 %v2559_v42, 0.0  ;;  %v2427_v45 = vmul.f32 %v4427_v24, %v2365_v19  ;;  %v3202_v14 = vpop.f32.mrb[42].mxu0 }
 0x40a   : > { %2753 = vst.msk [vmem:[%s4449_s18 + $0x58] sm:$0xf] %vm2730_vm7, %v2959_v56  ;;  %v2960_v39 = vpack.c.bf16 %v2593_v49, %v2593_v49  ;;  %v2468_v36 = vadd.f32 %v4434_v10, %v2429_v48  ;;  %v2430_v54 = vmul.f32 %v3202_v14, %v4427_v24  ;;  %v2368_v20 = vpop.f32.mrb[43].mxu0 }
 0x40b   : > { %2751 = vst.msk [vmem:[%s4449_s18 + $0x50] sm:$0xf] %vm2730_vm7, %v2957_v63  ;;  %v2958_v4 = vpack.c.bf16 %v2591_v30, %v2591_v30  ;;  %v2466_v52 = vadd.f32 %v4434_v10, %v2427_v45  ;;  %v2428_v33 = vmul.f32 %v4427_v24, %v2368_v20 }
 0x40c   : > { %2754 = vst.msk [vmem:[%s4449_s18 + $0x5c] sm:$0xf] %vm2730_vm7, %v2960_v39  ;;  %v2564_v18 = vadd.f32 %v3023_v51, %v2468_v36  ;;  %v2469_v50 = vadd.f32 %v4434_v10, %v2430_v54 }
 0x40d   : > { %2752 = vst.msk [vmem:[%s4449_s18 + $0x54] sm:$0xf] %vm2730_vm7, %v2958_v4  ;;  %v2562_v9 = vadd.f32 %v3019_v5, %v2466_v52  ;;  %v2467_v57 = vadd.f32 %v4434_v10, %v2428_v33 }
 0x40e   : > { %v2596_v38 = vmax.f32 %v2564_v18, 0.0  ;;  %v2565_v58 = vadd.f32 %v3024_v25, %v2469_v50 }
 0x40f   : > { %v2594_v2 = vmax.f32 %v2562_v9, 0.0  ;;  %v2563_v40 = vadd.f32 %v3020_v34, %v2467_v57  ;;  %v3205_v35 = vpop.f32.mrb[44].mxu0 }
 0x410   : > { %v2963_v26 = vpack.c.bf16 %v2596_v38, %v2596_v38  ;;  %v2597_v37 = vmax.f32 %v2565_v58, 0.0  ;;  %v2433_v27 = vmul.f32 %v3205_v35, %v4427_v24  ;;  %v2381_v41 = vpop.f32.mrb[45].mxu0 }
 0x411   : > { %v2961_v7 = vpack.c.bf16 %v2594_v2, %v2594_v2  ;;  %v2595_v1 = vmax.f32 %v2563_v40, 0.0  ;;  %v2431_v32 = vmul.f32 %v4427_v24, %v2381_v41  ;;  %v3206_v23 = vpop.f32.mrb[46].mxu0 }
 0x412   : > { %2757 = vst.msk [vmem:[%s4449_s18 + $0x68] sm:$0xf] %vm2730_vm7, %v2963_v26  ;;  %v2964_v47 = vpack.c.bf16 %v2597_v37, %v2597_v37  ;;  %v2472_v31 = vadd.f32 %v4434_v10, %v2433_v27  ;;  %v2434_v44 = vmul.f32 %v3206_v23, %v4427_v24  ;;  %v2384_v55 = vpop.f32.mrb[47].mxu0 }
 0x413   : > { %2755 = vst.msk [vmem:[%s4449_s18 + $0x60] sm:$0xf] %vm2730_vm7, %v2961_v7  ;;  %v2962_v61 = vpack.c.bf16 %v2595_v1, %v2595_v1  ;;  %v2470_v13 = vadd.f32 %v4434_v10, %v2431_v32  ;;  %v2432_v43 = vmul.f32 %v4427_v24, %v2384_v55 }
 0x414   : > { %2758 = vst.msk [vmem:[%s4449_s18 + $0x6c] sm:$0xf] %vm2730_vm7, %v2964_v47  ;;  %v2568_v59 = vadd.f32 %v3031_v60, %v2472_v31  ;;  %v2473_v17 = vadd.f32 %v4434_v10, %v2434_v44 }
 0x415   : > { %2756 = vst.msk [vmem:[%s4449_s18 + $0x64] sm:$0xf] %vm2730_vm7, %v2962_v61  ;;  %v2566_v46 = vadd.f32 %v3027_v62, %v2470_v13  ;;  %v2471_v12 = vadd.f32 %v4434_v10, %v2432_v43 }
 0x416   : > { %v2600_v11 = vmax.f32 %v2568_v59, 0.0  ;;  %v2569_v0 = vadd.f32 %v3032_v29, %v2473_v17 }
 0x417   : > { %v2598_v6 = vmax.f32 %v2566_v46, 0.0  ;;  %v2567_v8 = vadd.f32 %v3028_v53, %v2471_v12 }
 0x418   : > { %v2967_v24 = vpack.c.bf16 %v2600_v11, %v2600_v11  ;;  %v2601_v28 = vmax.f32 %v2569_v0, 0.0 }
 0x419   : > { %v2965_v16 = vpack.c.bf16 %v2598_v6, %v2598_v6  ;;  %v2599_v22 = vmax.f32 %v2567_v8, 0.0 }
 0x41a   : > { %2761 = vst.msk [vmem:[%s4449_s18 + $0x78] sm:$0xf] %vm2730_vm7, %v2967_v24  ;;  %v2968_v42 = vpack.c.bf16 %v2601_v28, %v2601_v28 }
 0x41b   : > { %2759 = vst.msk [vmem:[%s4449_s18 + $0x70] sm:$0xf] %vm2730_vm7, %v2965_v16  ;;  %v2966_v3 = vpack.c.bf16 %v2599_v22, %v2599_v22 }
 0x41c   : > { %2762 = vst.msk [vmem:[%s4449_s18 + $0x7c] sm:$0xf] %vm2730_vm7, %v2968_v42 }
 0x41d   : > { %2760 = vst.msk [vmem:[%s4449_s18 + $0x74] sm:$0xf] %vm2730_vm7, %v2966_v3 }
 0x41e PF: > { %s20_s13 = sadd.s32 1, %s3254_s13  }
 0x41f   : > { %p17_p4 = scmp.ge.s32.totalorder %s20_s13, 4  }
 0x421   :  { %19 = sbr.rel (!%p17_p4) target bundleno = 1 (0x1), region = 92 }

// kernel: tpu_custom_call.1
= control target key start
LH: loop header
LB: loop body
LE: loop exit
PB: predicated region body
PF: predicated region fallthrough
CT: control target
= control target key end

     0   :  { %s3320_s13 = smov 0   ;;  %s4588_s0 = inlined_call_operand.vmem [shape: bf16[2,256,16], index: 0, kind: input, shape index: {}]   ;;  %s4589_s1 = inlined_call_operand.vmem [shape: bf16[16,4], index: 1, kind: input, shape index: {}]   ;;  %s4590_s2 = inlined_call_operand.vmem [shape: f32[1,4], index: 2, kind: input, shape index: {}]   ;;  %s4591_s3 = inlined_call_operand.vmem [shape: f32[1,4], index: 3, kind: input, shape index: {}]   ;;  %s4592_s4 = inlined_call_operand.vmem [shape: bf16[36,4], index: 4, kind: input, shape index: {}]   ;;  %s4593_s5 = inlined_call_operand.vmem [shape: f32[1,4], index: 5, kind: input, shape index: {}]   ;;  %s4594_s6 = inlined_call_operand.vmem [shape: f32[1,4], index: 6, kind: input, shape index: {}]   ;;  %s4595_s7 = inlined_call_operand.vmem [shape: bf16[4,16], index: 7, kind: input, shape index: {}]   ;;  %s4596_s8 = inlined_call_operand.vmem [shape: f32[1,16], index: 8, kind: input, shape index: {}]   ;;  %s4597_s9 = inlined_call_operand.vmem [shape: f32[1,16], index: 9, kind: input, shape index: {}]   ;;  %s4598_s10 = inlined_call_operand.vmem [shape: bf16[2,256,16], index: 10, kind: output, shape index: {}]  }
   0x1 LB: > { %s2818_s14 = sadd.s32 4294967295, %s3254_s13   ;;  %p2822_p0 = scmp.ge.s32.totalorder %s3254_s13, 1  ;;  %s3254_s13 = sphi %s3320_s13, %s20_s13  }
   0x2   : > { %p312_p1 = scmp.lt.s32.totalorder %s3254_s13, 3 }
   0x4   : > { %p313_p2 = pnand %p2822_p0, %p312_p1 }
   0x5   : > { %v3228_v0 = vld [vmem:[%s4589_s1] sm:$0xff] (!%p313_p2)   ;;  %p350_p3 = scmp.lt.s32.totalorder (!%p313_p2), %s2818_s14, 1  ;;  %vm481_vm0 = vcmask (!%p313_p2), 130048   ;;  %vm821_vm1 = vcmask (!%p313_p2), 286720   ;;  %vm822_vm2 = vsmask.f32 (!%p313_p2), 256 }
   0x6   : > { %316 = sbr.rel (%p313_p2) target bundleno = 1054 (0x41e), region = 60  ;;  %3101 = vmatprep.subr.bf16.mxu0 (!%p313_p2), %v3228_v0  ;;  %3207 = vmatprep.subr.bf16.mxu1 (!%p313_p2), %v3228_v0  ;;  %vm872_vm3 = vcmask (!%p313_p2), 293895   ;;  %vm873_vm4 = vsmask.f32 (!%p313_p2), 7966  ;;  %vm3373_vm5 = vmand (!%p313_p2), %vm821_vm1, %vm822_vm2  ;;  %v830_v18 = vld [vmem:[#allocation2 + $0x10] sm:$0x1] (!%p313_p2) }
   0x7   : > { %3102 = vmatpush3.bf16.msra.mxu0 (!%p313_p2), %v3228_v0  ;;  %3208 = vmatpush3.bf16.msra.mxu1 (!%p313_p2), %v3228_v0  ;;  %v881_v19 = vld [vmem:[#allocation2 + $0x10] sm:$0x80] (!%p313_p2)  ;;  %v831_v20 = vsel (!%p313_p2), %vm3373_vm5, 0, %v830_v18  ;;  %vm3379_vm6 = vmand (!%p313_p2), %vm872_vm3, %vm873_vm4  ;;  %v854_v23 = vld [vmem:[#allocation2 + $0x50] sm:$0x1] (!%p313_p2)  ;;  %vm1044_vm7 = vcmask (!%p313_p2), 31744  }
   0x8   : > { %832 = vst [vmem:[#allocation2 + $0x10] sm:$0x1] (!%p313_p2), %v831_v20  ;;  %v882_v22 = vsel (!%p313_p2), %vm3379_vm6, 0, %v881_v19  ;;  %v905_v24 = vld [vmem:[#allocation2 + $0x50] sm:$0x80] (!%p313_p2)  ;;  %v855_v25 = vsel (!%p313_p2), %vm3373_vm5, 0, %v854_v23 }
   0x9   : > { %883 = vst [vmem:[#allocation2 + $0x10] sm:$0x80] (!%p313_p2), %v882_v22  ;;  %v906_v26 = vsel (!%p313_p2), %vm3379_vm6, 0, %v905_v24  ;;  %856 = vst [vmem:[#allocation2 + $0x50] sm:$0x1] (!%p313_p2), %v855_v25  ;;  %s3256_s25 = smov (!%p313_p2), 16  }
   0xa   : > { %907 = vst [vmem:[#allocation2 + $0x50] sm:$0x80] (!%p313_p2), %v906_v26  ;;  %v827_v27 = vld [vmem:[#allocation2 + $0x8] sm:$0x1] (!%p313_p2)  ;;  %v878_v29 = vld [vmem:[#allocation2 + $0x8] sm:$0x80] (!%p313_p2) }
   0xb   : > { %v828_v28 = vsel (!%p313_p2), %vm3373_vm5, 0, %v827_v27  ;;  %v879_v30 = vsel (!%p313_p2), %vm3379_vm6, 0, %v878_v29  ;;  %v851_v31 = vld [vmem:[#allocation2 + $0x48] sm:$0x1] (!%p313_p2)  ;;  %v902_v32 = vld [vmem:[#allocation2 + $0x48] sm:$0x80] (!%p313_p2) }
   0xc   : > { %829 = vst [vmem:[#allocation2 + $0x8] sm:$0x1] (!%p313_p2), %v828_v28  ;;  %880 = vst [vmem:[#allocation2 + $0x8] sm:$0x80] (!%p313_p2), %v879_v30  ;;  %v852_v33 = vsel (!%p313_p2), %vm3373_vm5, 0, %v851_v31  ;;  %v903_v34 = vsel (!%p313_p2), %vm3379_vm6, 0, %v902_v32 }
   0xd   : > { %s4616_s14 = smov (!%p350_p3, %s2818_s14), 1  ;;  %853 = vst [vmem:[#allocation2 + $0x48] sm:$0x1] %v852_v33  ;;  %904 = vst [vmem:[#allocation2 + $0x48] sm:$0x80] %v903_v34  ;;  %s3257_s26 = smov 4  }
   0xe   : > { %s2935_s17 = sshll.u32 %s4616_s14, 7  ;;  %v860_v35 = vld [vmem:[#allocation2 + $0x60] sm:$0x1]  ;;  %v911_v36 = vld [vmem:[#allocation2 + $0x60] sm:$0x80]  ;;  %s3258_s27 = smov 28  }
   0xf   : > { %s3339_s20 = scalar_lea.vmem %s4588_s0, %s2935_s17  ;;  %v857_v37 = vld [vmem:[#allocation2 + $0x58] sm:$0x1]  ;;  %v861_v38 = vsel %vm3373_vm5, 0, %v860_v35  ;;  %v912_v39 = vsel %vm3379_vm6, 0, %v911_v36  ;;  %v908_v41 = vld [vmem:[#allocation2 + $0x58] sm:$0x80]  ;;  %s4449_s18 = scalar_lea.vmem %s4598_s10, %s2935_s17 }
  0x10   : > { %v3229_v1 = vld [vmem:[%s3339_s20] sm:$0xff]   ;;  %v3230_v2 = vld [vmem:[%s3339_s20 + $0x8] sm:$0xff]   ;;  %v3233_v5 = vld [vmem:[%s3339_s20 + $0x50] sm:$0xff]   ;;  %v858_v40 = vsel %vm3373_vm5, 0, %v857_v37  ;;  %862 = vst [vmem:[#allocation2 + $0x60] sm:$0x1] %v861_v38 }
  0x11   : > { %3103 = vmatprep.mubr.msk.bf16.mxu0 %vm481_vm0, %v3229_v1  ;;  %v3231_v3 = vld [vmem:[%s3339_s20 + $0x40] sm:$0xff]   ;;  %v3232_v4 = vld [vmem:[%s3339_s20 + $0x48] sm:$0xff]   ;;  %v3235_v6 = vld [vmem:[%s3339_s20 + $0x10] sm:$0xff]   ;;  %913 = vst [vmem:[#allocation2 + $0x60] sm:$0x80] %v912_v39  ;;  %v909_v42 = vsel %vm3379_vm6, 0, %v908_v41 }
  0x12   : > { %3104 = vmatmul.mubr.msk.bf16.vlgmr.msra.gmra.mrb[0].mxu0 %vm481_vm0, %v3230_v2  ;;  %3119 = vmatprep.mubr.msk.bf16.mxu1 %vm481_vm0, %v3231_v3  ;;  %v3236_v7 = vld [vmem:[%s3339_s20 + $0x18] sm:$0xff]   ;;  %v3237_v8 = vld [vmem:[%s3339_s20 + $0x20] sm:$0xff]   ;;  %v3238_v11 = vld [vmem:[%s3339_s20 + $0x28] sm:$0xff]   ;;  %859 = vst [vmem:[#allocation2 + $0x58] sm:$0x1] %v858_v40  ;;  %s3259_s28 = smov 8  }
  0x13   : > { %3120 = vmatmul.mubr.msk.bf16.vlgmr.msra.gmra.mrb[0].mxu1 %vm481_vm0, %v3232_v4  ;;  %3107 = vmatprep.mubr.msk.bf16.mxu0 %vm481_vm0, %v3235_v6  ;;  %v3234_v9 = vld [vmem:[%s3339_s20 + $0x58] sm:$0xff]   ;;  %v3239_v10 = vld [vmem:[%s3339_s20 + $0x60] sm:$0xff]   ;;  %v3241_v12 = vld [vmem:[%s3339_s20 + $0x30] sm:$0xff]   ;;  %910 = vst [vmem:[#allocation2 + $0x58] sm:$0x80] %v909_v42  ;;  %s3260_s29 = smov 12  }
  0x14   : > { %3123 = vmatprep.mubr.msk.bf16.mxu1 %vm481_vm0, %v3233_v5  ;;  %v3240_v13 = vld [vmem:[%s3339_s20 + $0x68] sm:$0xff]   ;;  %v3243_v14 = vld [vmem:[%s3339_s20 + $0x70] sm:$0xff]   ;;  %v3242_v15 = vld [vmem:[%s3339_s20 + $0x38] sm:$0xff]   ;;  %vm1045_vm8 = vsmask.f32 7938  ;;  %s3261_s30 = smov 20  }
  0x15   : > { %v3244_v16 = vld [vmem:[%s3339_s20 + $0x78] sm:$0xff]   ;;  %v836_v43 = vld [vmem:[#allocation2 + $0x20] sm:$0x1]  ;;  %v887_v44 = vld [vmem:[#allocation2 + $0x20] sm:$0x80]  ;;  %s3262_s11 = smov 32  }
  0x16   : > { %v833_v45 = vld [vmem:[#allocation2 + $0x18] sm:$0x1]  ;;  %v837_v46 = vsel %vm3373_vm5, 0, %v836_v43  ;;  %v888_v47 = vsel %vm3379_vm6, 0, %v887_v44  ;;  %v884_v49 = vld [vmem:[#allocation2 + $0x18] sm:$0x80]  ;;  %vm3470_vm9 = vmand %vm1044_vm7, %vm1045_vm8 }
  0x17   : > { %v834_v48 = vsel %vm3373_vm5, 0, %v833_v45  ;;  %838 = vst [vmem:[#allocation2 + $0x20] sm:$0x1] %v837_v46  ;;  %889 = vst [vmem:[#allocation2 + $0x20] sm:$0x80] %v888_v47  ;;  %v885_v50 = vsel %vm3379_vm6, 0, %v884_v49 }
  0x18   : > { %835 = vst [vmem:[#allocation2 + $0x18] sm:$0x1] %v834_v48  ;;  %886 = vst [vmem:[#allocation2 + $0x18] sm:$0x80] %v885_v50  ;;  %v842_v51 = vld [vmem:[#allocation2 + $0x30] sm:$0x1] }
  0x19   : > { %v893_v52 = vld [vmem:[#allocation2 + $0x30] sm:$0x80]  ;;  %v839_v53 = vld [vmem:[#allocation2 + $0x28] sm:$0x1]  ;;  %v843_v54 = vsel %vm3373_vm5, 0, %v842_v51  ;;  %s3263_s12 = smov 24  }
  0x1a   : > { %3108 = vmatmul.mubr.msk.bf16.gmra.mrb[4].mxu0 %vm481_vm0, %v3236_v7  ;;  %v894_v55 = vsel %vm3379_vm6, 0, %v893_v52  ;;  %v840_v56 = vsel %vm3373_vm5, 0, %v839_v53  ;;  %v890_v57 = vld [vmem:[#allocation2 + $0x28] sm:$0x80]  ;;  %844 = vst [vmem:[#allocation2 + $0x30] sm:$0x1] %v843_v54 }
  0x1b   : > { %3111 = vmatprep.mubr.msk.bf16.mxu0 %vm481_vm0, %v3237_v8  ;;  %3124 = vmatmul.mubr.msk.bf16.gmra.mrb[4].mxu1 %vm481_vm0, %v3234_v9  ;;  %895 = vst [vmem:[#allocation2 + $0x30] sm:$0x80] %v894_v55  ;;  %841 = vst [vmem:[#allocation2 + $0x28] sm:$0x1] %v840_v56  ;;  %v891_v58 = vsel %vm3379_vm6, 0, %v890_v57  ;;  %vm817_vm10 = vcmask 293888  }
  0x1c   : > { %3127 = vmatprep.mubr.msk.bf16.mxu1 %vm481_vm0, %v3239_v10  ;;  %892 = vst [vmem:[#allocation2 + $0x28] sm:$0x80] %v891_v58  ;;  %v866_v59 = vld [vmem:[#allocation2 + $0x70] sm:$0x1]  ;;  %v917_v60 = vld [vmem:[#allocation2 + $0x70] sm:$0x80] }
  0x1d   : > { %v863_v61 = vld [vmem:[#allocation2 + $0x68] sm:$0x1]  ;;  %v867_v62 = vsel %vm3373_vm5, 0, %v866_v59  ;;  %v918_v63 = vsel %vm3379_vm6, 0, %v917_v60  ;;  %v914_v1 = vld [vmem:[#allocation2 + $0x68] sm:$0x80] }
  0x1e   : > { %v864_v0 = vsel %vm3373_vm5, 0, %v863_v61  ;;  %868 = vst [vmem:[#allocation2 + $0x70] sm:$0x1] %v867_v62  ;;  %919 = vst [vmem:[#allocation2 + $0x70] sm:$0x80] %v918_v63  ;;  %v915_v2 = vsel %vm3379_vm6, 0, %v914_v1 }
  0x1f   : > { %865 = vst [vmem:[#allocation2 + $0x68] sm:$0x1] %v864_v0  ;;  %916 = vst [vmem:[#allocation2 + $0x68] sm:$0x80] %v915_v2  ;;  %v3432_v3 = vld [vmem:[%s4590_s2] ss:$0 sm:$0xff] }
  0x20   : > { %v3437_v5 = vld [vmem:[%s4591_s3] ss:$0 sm:$0xff]  ;;  %v1050_v61 = vld [vmem:[#allocation2 + $0x10] sm:$0xff]  ;;  %vm1891_vm11 = vcmask 1041408   ;;  %vm1152_vm12 = vcmask 64544   ;;  %vm1346_vm13 = vcmask 130144  }
  0x21   : > { %v3245_v60 = vld [vmem:[%s4592_s4] sm:$0xff]   ;;  %vm1243_vm14 = vcmask 97344   ;;  %vm1244_vm15 = vsmask.f32 7424  ;;  %vm1445_vm2 = vcmask 162944   ;;  %vm1607_vm3 = vcmask 228544  }
  0x22   : > { %3112 = vmatmul.mubr.msk.bf16.gmra.mrb[8].mxu0 %vm481_vm0, %v3238_v11  ;;  %3135 = vmatprep.subr.bf16.mxu1 %v3245_v60  ;;  %vm3920_vm1 = vmand %vm1243_vm14, %vm1244_vm15  ;;  %vm1512_vm4 = vcmask 195744  }
  0x23   : > { %3115 = vmatprep.mubr.msk.bf16.mxu0 %vm481_vm0, %v3241_v12  ;;  %3128 = vmatmul.mubr.msk.bf16.gmra.mrb[8].mxu1 %vm481_vm0, %v3240_v13 }
  0x24   : > { %3131 = vmatprep.mubr.msk.bf16.mxu1 %vm481_vm0, %v3243_v14  ;;  %3136 = vmatpush3.bf16.msra.mxu1 %v3245_v60 }
  0x2a   : > { %3116 = vmatmul.mubr.msk.bf16.gmra.mrb[12].mxu0 %vm481_vm0, %v3242_v15 }
  0x2b   : > { %3132 = vmatmul.mubr.msk.bf16.gmra.mrb[12].mxu1 %vm481_vm0, %v3244_v16  ;;  %vm3915_vm0 = vmand %vm1346_vm13, %vm1045_vm8 }
  0xe5   : > { %v3105_v4 = vpop.f32.mrb[0].mxu0 }
  0xe6   : > { %v700_v6 = vmul.f32 %v3105_v4, %v3432_v3  ;;  %v564_v7 = vpop.f32.mrb[1].mxu0  ;;  %v3121_v10 = vpop.f32.mrb[0].mxu1 }
  0xe7   : > { %v698_v8 = vmul.f32 %v3432_v3, %v564_v7  ;;  %v3106_v9 = vpop.f32.mrb[2].mxu0  ;;  %v716_v13 = vmul.f32 %v3121_v10, %v3432_v3  ;;  %v628_v15 = vpop.f32.mrb[1].mxu1 }
  0xe8   : > { %v739_v11 = vadd.f32 %v3437_v5, %v700_v6  ;;  %v701_v12 = vmul.f32 %v3106_v9, %v3432_v3  ;;  %v567_v14 = vpop.f32.mrb[3].mxu0  ;;  %v714_v19 = vmul.f32 %v3432_v3, %v628_v15  ;;  %v3122_v20 = vpop.f32.mrb[2].mxu1  ;;  %v1074_v9 = vld [vmem:[#allocation2 + $0x50] sm:$0xff] }
  0xe9   : > { %v737_v16 = vadd.f32 %v3437_v5, %v698_v8  ;;  %v699_v18 = vmul.f32 %v3432_v3, %v567_v14  ;;  %v755_v23 = vadd.f32 %v3437_v5, %v716_v13  ;;  %v717_v24 = vmul.f32 %v3122_v20, %v3432_v3  ;;  %v631_v25 = vpop.f32.mrb[3].mxu1 }
  0xea   : > { %v740_v22 = vadd.f32 %v3437_v5, %v701_v12  ;;  %v753_v27 = vadd.f32 %v3437_v5, %v714_v19  ;;  %v715_v28 = vmul.f32 %v3432_v3, %v631_v25  ;;  %v771_v29 = vmax.f32 %v739_v11, 0.0 }
  0xeb   : > { %v738_v26 = vadd.f32 %v3437_v5, %v699_v18  ;;  %v787_v31 = vmax.f32 %v755_v23, 0.0  ;;  %v756_v32 = vadd.f32 %v3437_v5, %v717_v24  ;;  %v769_v33 = vmax.f32 %v737_v16, 0.0 }
  0xec   : > { %v772_v30 = vmax.f32 %v740_v22, 0.0  ;;  %v785_v35 = vmax.f32 %v753_v27, 0.0  ;;  %v754_v36 = vadd.f32 %v3437_v5, %v715_v28 }
  0xed   : > { %v770_v34 = vmax.f32 %v738_v26, 0.0  ;;  %v3109_v37 = vpop.f32.mrb[4].mxu0  ;;  %v788_v39 = vmax.f32 %v756_v32, 0.0 }
  0xee   : > { %v802_v38 = vpack.c.bf16 %v772_v30, %v771_v29  ;;  %v580_v40 = vpop.f32.mrb[5].mxu0  ;;  %v786_v42 = vmax.f32 %v754_v36, 0.0  ;;  %v3125_v43 = vpop.f32.mrb[4].mxu1  ;;  %v704_v58 = vmul.f32 %v3109_v37, %v3432_v3 }
  0xef   : > { %v3455_v41 = vpack.c.bf16 %v770_v34, %v769_v33  ;;  %v3110_v44 = vpop.f32.mrb[6].mxu0  ;;  %v3457_v45 = vpack.c.bf16 %v788_v39, %v787_v31  ;;  %v720_v48 = vmul.f32 %v3125_v43, %v3432_v3  ;;  %v644_v49 = vpop.f32.mrb[5].mxu1  ;;  %v702_v1 = vmul.f32 %v3432_v3, %v580_v40 }
  0xf0   : > { %1399 = vrot.lane.b32.xlu1 %v802_v38, %s3256_s25  ;;  %1109 = vrot.lane.b32.xlu0 %v802_v38, %s3257_s26  ;;  %v931_v46 = vshrl.u32 %v802_v38, 16  ;;  %v934_v47 = vshll.u32 %v802_v38, 16  ;;  %v583_v50 = vpop.f32.mrb[7].mxu0  ;;  %v3462_v51 = vpack.c.bf16 %v786_v42, %v785_v35  ;;  %v718_v53 = vmul.f32 %v3432_v3, %v644_v49  ;;  %v3126_v54 = vpop.f32.mrb[6].mxu1  ;;  %v1071_v49 = vld [vmem:[#allocation2 + $0x48] sm:$0xff] }
  0xf1   : > { %v927_v52 = vshll.u32 %v3455_v41, 16  ;;  %v987_v57 = vshrl.u32 %v3457_v45, 16  ;;  %v647_v59 = vpop.f32.mrb[7].mxu1  ;;  %v759_v62 = vadd.f32 %v3437_v5, %v720_v48  ;;  %v721_v0 = vmul.f32 %v3126_v54, %v3432_v3  ;;  %v1047_v48 = vld [vmem:[#allocation2 + $0x8] sm:$0xff] }
  0xf2   : > { %v1170_v55 = vrot.slane %v934_v47, 1  ;;  %v933_v56 = vrot.slane %v931_v46, 7  ;;  %v757_v63 = vadd.f32 %v3437_v5, %v718_v53  ;;  %v990_v4 = vshll.u32 %v3457_v45, 16 }
  0xf3   : > { %v989_v6 = vrot.slane %v987_v57, 7  ;;  %v924_v7 = vshrl.u32 %v3455_v41, 16  ;;  %v791_v10 = vmax.f32 %v759_v62, 0.0  ;;  %v1168_v11 = vrot.slane %v927_v52, 1 }
  0xf4   : > { %1668 = vrot.lane.b32.xlu1 %v3462_v51, %s3258_s27  ;;  %1654 = vrot.lane.b32.xlu0 %v802_v38, %s3258_s27  ;;  %v3481_v2 = vor.u32 %v934_v47, %v933_v56  ;;  %v3487_v8 = vor.u32 %v1170_v55, %v931_v46  ;;  %v760_v12 = vadd.f32 %v3437_v5, %v721_v0  ;;  %v789_v16 = vmax.f32 %v757_v63, 0.0 }
  0xf5   : > { %v3113_v13 = vpop.f32.mrb[8].mxu0  ;;  %v3495_v15 = vor.u32 %v990_v4, %v989_v6  ;;  %v743_v18 = vadd.f32 %v3437_v5, %v704_v58  ;;  %v719_v22 = vmul.f32 %v3432_v3, %v647_v59  ;;  %v741_v23 = vadd.f32 %v3437_v5, %v702_v1 }
  0xf6   : > { %v1051_v14 = vsel %vm3470_vm9, %v3481_v2, %v1050_v61  ;;  %v596_v19 = vpop.f32.mrb[9].mxu0  ;;  %v792_v20 = vmax.f32 %v760_v12, 0.0  ;;  %v705_v24 = vmul.f32 %v3110_v44, %v3432_v3  ;;  %v3501_v26 = vpop.f32.mrb[8].mxu1  ;;  %v703_v29 = vmul.f32 %v3432_v3, %v583_v50 }
  0xf7   : > { %1052 = vst [vmem:[#allocation2 + $0x10] sm:$0xff] %v1051_v14  ;;  %v3114_v25 = vpop.f32.mrb[10].mxu0  ;;  %v1075_v27 = vsel %vm3470_vm9, %v3495_v15, %v1074_v9  ;;  %v775_v28 = vmax.f32 %v743_v18, 0.0  ;;  %v980_v30 = vshrl.u32 %v3462_v51, 16  ;;  %v3512_v32 = vpop.f32.mrb[9].mxu1  ;;  %v758_v34 = vadd.f32 %v3437_v5, %v719_v22  ;;  %v1056_v22 = vld [vmem:[#allocation2 + $0x20] sm:$0xff] }
  0xf8   : > { %1125 = vrot.lane.b32.xlu0 %v3457_v45, %s3257_s26  ;;  %1200 = vrot.lane.b32.xlu1 %v3487_v8, %s3259_s28  ;;  %v599_v31 = vpop.f32.mrb[11].mxu0  ;;  %1076 = vst [vmem:[#allocation2 + $0x50] sm:$0xff] %v1075_v27  ;;  %v3514_v33 = vpack.c.bf16 %v792_v20, %v791_v10  ;;  %v773_v35 = vmax.f32 %v741_v23, 0.0  ;;  %v744_v36 = vadd.f32 %v3437_v5, %v705_v24  ;;  %v3518_v37 = vpop.f32.mrb[10].mxu1  ;;  %v983_v39 = vshll.u32 %v3462_v51, 16 }
  0xf9   : > { %v742_v38 = vadd.f32 %v3437_v5, %v703_v29  ;;  %v926_v40 = vrot.slane %v924_v7, 7  ;;  %v982_v42 = vrot.slane %v980_v30, 7  ;;  %v3524_v43 = vpop.f32.mrb[11].mxu1  ;;  %v1186_v44 = vrot.slane %v990_v4, 1 }
  0xfa   : > { %v790_v46 = vmax.f32 %v758_v34, 0.0  ;;  %v776_v47 = vmax.f32 %v744_v36, 0.0  ;;  %v3536_v55 = vor.u32 %v1168_v11, %v924_v7  ;;  %v708_v59 = vmul.f32 %v3113_v13, %v3432_v3  ;;  %v1080_v34 = vld [vmem:[#allocation2 + $0x60] sm:$0xff] }
  0xfb   : > { %v774_v50 = vmax.f32 %v742_v38, 0.0  ;;  %v3532_v53 = vor.u32 %v927_v52, %v926_v40  ;;  %v3534_v54 = vor.u32 %v983_v39, %v982_v42  ;;  %v1001_v0 = vshrl.u32 %v3514_v33, 16  ;;  %v1053_v40 = vld [vmem:[#allocation2 + $0x18] sm:$0xff] }
  0xfc   : > { %1415 = vrot.lane.b32.xlu0 %v3457_v45, %s3256_s25  ;;  %1300 = vrot.lane.b32.xlu1 %v3481_v2, %s3260_s29  ;;  %v3538_v56 = vpack.c.bf16 %v790_v46, %v789_v16  ;;  %v3540_v58 = vpack.c.bf16 %v776_v47, %v775_v28  ;;  %v3558_v4 = vor.u32 %v1186_v44, %v987_v57  ;;  %v1004_v7 = vshll.u32 %v3514_v33, 16 }
  0xfd   : > { %v3543_v61 = vpop.f32.mrb[12].mxu0  ;;  %v3545_v62 = vpack.c.bf16 %v774_v50, %v773_v35  ;;  %v1048_v63 = vsel %vm3470_vm9, %v3532_v53, %v1047_v48  ;;  %v1072_v52 = vsel %vm3470_vm9, %v3534_v54, %v1071_v49  ;;  %v747_v9 = vadd.f32 %v3437_v5, %v708_v59 }
  0xfe   : > { %v3554_v1 = vpop.f32.mrb[13].mxu0  ;;  %1049 = vst [vmem:[#allocation2 + $0x8] sm:$0xff] %v1048_v63  ;;  %1073 = vst [vmem:[#allocation2 + $0x48] sm:$0xff] %v1072_v52  ;;  %v945_v6 = vshrl.u32 %v3540_v58, 16  ;;  %v706_v12 = vmul.f32 %v3432_v3, %v596_v19  ;;  %v709_v13 = vmul.f32 %v3114_v25, %v3432_v3  ;;  %v948_v16 = vshll.u32 %v3540_v58, 16 }
  0xff   : > { %v3563_v10 = vpop.f32.mrb[14].mxu0  ;;  %v938_v57 = vshrl.u32 %v3545_v62, 16  ;;  %v941_v11 = vshll.u32 %v3545_v62, 16  ;;  %v707_v20 = vmul.f32 %v3432_v3, %v599_v31  ;;  %v1003_v19 = vrot.slane %v1001_v0, 7 }
 0x100   : > { %1670 = vrot.lane.b32.xlu0 %v3457_v45, %s3258_s27  ;;  %1466 = vrot.lane.b32.xlu1 %v3487_v8, %s3261_s30  ;;  %v3573_v14 = vpop.f32.mrb[15].mxu0  ;;  %v947_v18 = vrot.slane %v945_v6, 7  ;;  %v779_v45 = vmax.f32 %v747_v9, 0.0  ;;  %v745_v24 = vadd.f32 %v3437_v5, %v706_v12  ;;  %v748_v27 = vadd.f32 %v3437_v5, %v709_v13 }
 0x101   : > { %v1172_v23 = vrot.slane %v941_v11, 1  ;;  %v3583_v25 = vrot.slane %v983_v39, 1  ;;  %v746_v29 = vadd.f32 %v3437_v5, %v707_v20  ;;  %v940_v35 = vrot.slane %v938_v57, 7 }
 0x102   : > { %v3587_v28 = vor.u32 %v948_v16, %v947_v18  ;;  %v777_v36 = vmax.f32 %v745_v24, 0.0  ;;  %v780_v38 = vmax.f32 %v748_v27, 0.0  ;;  %v3598_v39 = vor.u32 %v1004_v7, %v1003_v19 }
 0x103   : > { %v3594_v31 = vor.u32 %v1172_v23, %v938_v57  ;;  %v778_v44 = vmax.f32 %v746_v29, 0.0  ;;  %v3603_v46 = vor.u32 %v941_v11, %v940_v35  ;;  %v722_v49 = vmul.f32 %v3432_v3, %v3512_v32  ;;  %v1077_v23 = vld [vmem:[#allocation2 + $0x58] sm:$0xff] }
 0x104   : > { %1715 = vrot.lane.b32.xlu1 %v3487_v8, %s3262_s11  ;;  %1107 = vrot.lane.b32.xlu0 %v3455_v41, %s3257_s26  ;;  %v1057_v42 = vsel %vm3470_vm9, %v3587_v28, %v1056_v22  ;;  %v724_v8 = vmul.f32 %v3501_v26, %v3432_v3  ;;  %v3607_v47 = vpack.c.bf16 %v780_v38, %v779_v45  ;;  %v994_v9 = vshrl.u32 %v3538_v56, 16 }
 0x105   : > { %1058 = vst [vmem:[#allocation2 + $0x20] sm:$0xff] %v1057_v42  ;;  %v1081_v48 = vsel %vm3470_vm9, %v3598_v39, %v1080_v34  ;;  %v725_v50 = vmul.f32 %v3518_v37, %v3432_v3  ;;  %v3616_v59 = vpack.c.bf16 %v778_v44, %v777_v36  ;;  %v1054_v26 = vsel %vm3470_vm9, %v3603_v46, %v1053_v40  ;;  %v1062_v36 = vld [vmem:[#allocation2 + $0x30] sm:$0xff] }
 0x106   : > { %1082 = vst [vmem:[#allocation2 + $0x60] sm:$0xff] %v1081_v48  ;;  %v763_v63 = vadd.f32 %v3437_v5, %v724_v8  ;;  %v723_v52 = vmul.f32 %v3432_v3, %v3524_v43  ;;  %1055 = vst [vmem:[#allocation2 + $0x18] sm:$0xff] %v1054_v26  ;;  %v761_v32 = vadd.f32 %v3437_v5, %v722_v49  ;;  %v997_v57 = vshll.u32 %v3538_v56, 16 }
 0x107   : > { %v764_v37 = vadd.f32 %v3437_v5, %v725_v50  ;;  %v959_v43 = vshrl.u32 %v3607_v47, 16  ;;  %v962_v13 = vshll.u32 %v3607_v47, 16  ;;  %v952_v19 = vshrl.u32 %v3616_v59, 16 }
 0x108   : > { %1216 = vrot.lane.b32.xlu1 %v3558_v4, %s3259_s28  ;;  %1397 = vrot.lane.b32.xlu0 %v3455_v41, %s3256_s25  ;;  %v795_v11 = vmax.f32 %v763_v63, 0.0  ;;  %v762_v12 = vadd.f32 %v3437_v5, %v723_v52  ;;  %v793_v18 = vmax.f32 %v761_v32, 0.0  ;;  %v1188_v20 = vrot.slane %v997_v57, 1 }
 0x109   : > { %v796_v45 = vmax.f32 %v764_v37, 0.0  ;;  %v996_v41 = vrot.slane %v994_v9, 7  ;;  %v1178_v24 = vrot.slane %v962_v13, 1  ;;  %v961_v27 = vrot.slane %v959_v43, 7 }
 0x10a   : > { %v794_v22 = vmax.f32 %v762_v12, 0.0  ;;  %v3642_v34 = vor.u32 %v1188_v20, %v994_v9  ;;  %v955_v38 = vshll.u32 %v3616_v59, 16  ;;  %v712_v8 = vmul.f32 %v3543_v61, %v3432_v3  ;;  %v1086_v12 = vld [vmem:[#allocation2 + $0x70] sm:$0xff] }
 0x10b   : > { %v3640_v29 = vpack.c.bf16 %v796_v45, %v795_v11  ;;  %v3644_v35 = vor.u32 %v997_v57, %v996_v41  ;;  %v3649_v42 = vor.u32 %v1178_v24, %v959_v43  ;;  %v3651_v44 = vor.u32 %v962_v13, %v961_v27 }
 0x10c   : > { %1316 = vrot.lane.b32.xlu1 %v3495_v15, %s3260_s29  ;;  %1123 = vrot.lane.b32.xlu0 %v3462_v51, %s3257_s26  ;;  %v3647_v40 = vpack.c.bf16 %v794_v22, %v793_v18  ;;  %v1176_v26 = vrot.slane %v955_v38, 1  ;;  %v751_v52 = vadd.f32 %v3437_v5, %v712_v8  ;;  %v710_v32 = vmul.f32 %v3432_v3, %v3554_v1  ;;  %v848_v18 = vld [vmem:[#allocation2 + $0x40] sm:$0x1] }
 0x10d   : > { %v1078_v48 = vsel %vm3470_vm9, %v3644_v35, %v1077_v23  ;;  %v1015_v49 = vshrl.u32 %v3640_v29, 16  ;;  %v1018_v50 = vshll.u32 %v3640_v29, 16  ;;  %v1063_v63 = vsel %vm3470_vm9, %v3651_v44, %v1062_v36  ;;  %v899_v23 = vld [vmem:[#allocation2 + $0x40] sm:$0x80] }
 0x10e   : > { %1079 = vst [vmem:[#allocation2 + $0x58] sm:$0xff] %v1078_v48  ;;  %v713_v61 = vmul.f32 %v3563_v10, %v3432_v3  ;;  %1064 = vst [vmem:[#allocation2 + $0x30] sm:$0xff] %v1063_v63  ;;  %v3672_v57 = vor.u32 %v1176_v26, %v952_v19  ;;  %v711_v11 = vmul.f32 %v3432_v3, %v3573_v14  ;;  %v783_v43 = vmax.f32 %v751_v52, 0.0  ;;  %v1059_v14 = vld [vmem:[#allocation2 + $0x28] sm:$0xff] }
 0x10f   : > { %v1194_v37 = vrot.slane %v1018_v50, 1  ;;  %v1017_v9 = vrot.slane %v1015_v49, 7  ;;  %v749_v1 = vadd.f32 %v3437_v5, %v710_v32  ;;  %v954_v13 = vrot.slane %v952_v19, 7  ;;  %v1083_v26 = vld [vmem:[#allocation2 + $0x68] sm:$0xff] }
 0x110   : > { %1413 = vrot.lane.b32.xlu0 %v3462_v51, %s3256_s25  ;;  %1198 = vrot.lane.b32.xlu1 %v3536_v55, %s3259_s28  ;;  %v752_v10 = vadd.f32 %v3437_v5, %v713_v61  ;;  %v3681_v45 = vor.u32 %v3583_v25, %v980_v30  ;;  %v750_v22 = vadd.f32 %v3437_v5, %v711_v11  ;;  %v1008_v19 = vshrl.u32 %v3647_v40, 16 }
 0x111   : > { %v3683_v20 = vor.u32 %v1194_v37, %v1015_v49  ;;  %v3685_v41 = vor.u32 %v1018_v50, %v1017_v9  ;;  %v781_v24 = vmax.f32 %v749_v1, 0.0  ;;  %v3688_v36 = vor.u32 %v955_v38, %v954_v13  ;;  %v845_v37 = vld [vmem:[#allocation2 + $0x38] sm:$0x1]  ;;  %v896_v9 = vld [vmem:[#allocation2 + $0x38] sm:$0x80] }
 0x112   : > { %v784_v27 = vmax.f32 %v752_v10, 0.0  ;;  %v782_v30 = vmax.f32 %v750_v22, 0.0  ;;  %v1011_v25 = vshll.u32 %v3647_v40, 16  ;;  %v849_v38 = vsel %vm3373_vm5, 0, %v848_v18 }
 0x113   : > { %v1087_v51 = vsel %vm3470_vm9, %v3685_v41, %v1086_v12  ;;  %v1010_v48 = vrot.slane %v1008_v19, 7  ;;  %850 = vst [vmem:[#allocation2 + $0x40] sm:$0x1] %v849_v38  ;;  %v3264_v61 = vmov 0   ;;  %v846_v18 = vsel %vm3373_vm5, 0, %v845_v37 }
 0x114   : > { %1562 = vrot.lane.b32.xlu0 %v3481_v2, %s3263_s12  ;;  %1464 = vrot.lane.b32.xlu1 %v3536_v55, %s3261_s30  ;;  %1088 = vst [vmem:[#allocation2 + $0x70] sm:$0xff] %v1087_v51  ;;  %v3701_v8 = vpack.c.bf16 %v784_v27, %v783_v43  ;;  %v1060_v2 = vsel %vm3470_vm9, %v3688_v36, %v1059_v14  ;;  %v900_v55 = vsel %vm3379_vm6, 0, %v899_v23  ;;  %v1192_v50 = vrot.slane %v1011_v25, 1 }
 0x115   : > { %v3708_v49 = vpack.c.bf16 %v782_v30, %v781_v24  ;;  %1061 = vst [vmem:[#allocation2 + $0x28] sm:$0xff] %v1060_v2  ;;  %901 = vst [vmem:[#allocation2 + $0x40] sm:$0x80] %v900_v55  ;;  %v3710_v63 = vor.u32 %v1011_v25, %v1010_v48  ;;  %v897_v22 = vsel %vm3379_vm6, 0, %v896_v9  ;;  %v3133_v55 = vpop.f32.mrb[12].mxu1 }
 0x116   : > { %v973_v52 = vshrl.u32 %v3701_v8, 16  ;;  %v976_v32 = vshll.u32 %v3701_v8, 16  ;;  %818 = vst.msk [vmem:[#allocation2] sm:$0xff] %vm817_vm10, %v3264_v61  ;;  %820 = vst.msk [vmem:[#allocation2 + $0x78] sm:$0xff] %vm817_vm10, %v3264_v61  ;;  %v3720_v11 = vor.u32 %v1192_v50, %v1008_v19  ;;  %v728_v37 = vmul.f32 %v3133_v55, %v3432_v3 }
 0x117   : > { %v1084_v12 = vsel %vm3470_vm9, %v3710_v63, %v1083_v26  ;;  %v966_v10 = vshrl.u32 %v3708_v49, 16  ;;  %v969_v13 = vshll.u32 %v3708_v49, 16  ;;  %847 = vst [vmem:[#allocation2 + $0x38] sm:$0x1] %v846_v18  ;;  %898 = vst [vmem:[#allocation2 + $0x38] sm:$0x80] %v897_v22 }
 0x118   : > { %1482 = vrot.lane.b32.xlu0 %v3558_v4, %s3261_s30  ;;  %1214 = vrot.lane.b32.xlu1 %v3681_v45, %s3259_s28  ;;  %v1182_v43 = vrot.slane %v976_v32, 1  ;;  %v975_v1 = vrot.slane %v973_v52, 7  ;;  %1085 = vst [vmem:[#allocation2 + $0x68] sm:$0xff] %v1084_v12  ;;  %v676_v26 = vpop.f32.mrb[13].mxu1 }
 0x119   : > { %v1180_v24 = vrot.slane %v969_v13, 1  ;;  %v968_v27 = vrot.slane %v966_v10, 7  ;;  %v726_v9 = vmul.f32 %v3432_v3, %v676_v26 }
 0x11a   : > { %v3731_v14 = vor.u32 %v1182_v43, %v973_v52  ;;  %v3733_v23 = vor.u32 %v976_v32, %v975_v1  ;;  %v3134_v32 = vpop.f32.mrb[14].mxu1  ;;  %v767_v1 = vadd.f32 %v3437_v5, %v728_v37 }
 0x11b   : > { %v3742_v38 = vor.u32 %v1180_v24, %v966_v10  ;;  %v3748_v48 = vor.u32 %v969_v13, %v968_v27  ;;  %v679_v61 = vpop.f32.mrb[15].mxu1  ;;  %v729_v12 = vmul.f32 %v3134_v32, %v3432_v3  ;;  %v765_v10 = vadd.f32 %v3437_v5, %v726_v9 }
 0x11c   : > { %1578 = vrot.lane.b32.xlu0 %v3495_v15, %s3263_s12  ;;  %1419 = vrot.lane.b32.xlu1 %v3514_v33, %s3256_s25  ;;  %v1068_v19 = vld [vmem:[#allocation2 + $0x40] sm:$0xff]  ;;  %v727_v43 = vmul.f32 %v3432_v3, %v679_v61  ;;  %v799_v22 = vmax.f32 %v767_v1, 0.0 }
 0x11d   : > { %v1069_v51 = vsel %vm3470_vm9, %v3733_v23, %v1068_v19  ;;  %v824_v30 = vld [vmem:[#allocation2] sm:$0x1]  ;;  %v875_v25 = vld [vmem:[#allocation2] sm:$0x80]  ;;  %v797_v24 = vmax.f32 %v765_v10, 0.0 }
 0x11e   : > { %1070 = vst [vmem:[#allocation2 + $0x40] sm:$0xff] %v1069_v51  ;;  %v825_v2 = vsel %vm3373_vm5, 0, %v824_v30  ;;  %v876_v15 = vsel %vm3379_vm6, 0, %v875_v25  ;;  %v1065_v50 = vld [vmem:[#allocation2 + $0x38] sm:$0xff]  ;;  %v766_v13 = vadd.f32 %v3437_v5, %v727_v43 }
 0x11f   : > { %826 = vst [vmem:[#allocation2] sm:$0x1] %v825_v2  ;;  %877 = vst [vmem:[#allocation2] sm:$0x80] %v876_v15  ;;  %v1066_v52 = vsel %vm3470_vm9, %v3748_v48, %v1065_v50  ;;  %v869_v27 = vld [vmem:[#allocation2 + $0x78] sm:$0x1] }
 0x120   : > { %1298 = vrot.lane.b32.xlu0 %v3532_v53, %s3260_s29  ;;  %1111 = vrot.lane.b32.xlu1 %v3545_v62, %s3257_s26  ;;  %1067 = vst [vmem:[#allocation2 + $0x38] sm:$0xff] %v1066_v52  ;;  %v1174_v53 = vrot.slane %v948_v16, 1  ;;  %v768_v16 = vadd.f32 %v3437_v5, %v729_v12  ;;  %v798_v19 = vmax.f32 %v766_v13, 0.0  ;;  %v870_v51 = vsel %vm3373_vm5, 0, %v869_v27  ;;  %v920_v30 = vld [vmem:[#allocation2 + $0x78] sm:$0x80]  ;;  %vm3979_vm5 = vmand %vm1607_vm3, %vm1045_vm8 }
 0x121   : > { %871 = vst [vmem:[#allocation2 + $0x78] sm:$0x1] %v870_v51  ;;  %v921_v5 = vsel %vm3379_vm6, 0, %v920_v30  ;;  %v1190_v52 = vrot.slane %v1004_v7, 1  ;;  %vm3984_vm6 = vmand %vm1512_vm4, %vm1244_vm15  ;;  %vm1760_vm8 = vcmask 294144  }
 0x122   : > { %v1175_v18 = vor.u32 %v1174_v53, %v945_v6  ;;  %v800_v3 = vmax.f32 %v768_v16, 0.0  ;;  %v3786_v6 = vpack.c.bf16 %v798_v19, %v797_v24  ;;  %922 = vst [vmem:[#allocation2 + $0x78] sm:$0x80] %v921_v5  ;;  %vm4012_vm13 = vmand %vm1760_vm8, %vm1244_vm15 }
 0x123   : > { %v3811_v32 = vor.u32 %v1190_v52, %v1001_v0 }
 0x124   : > { %1314 = vrot.lane.b32.xlu0 %v3534_v54, %s3260_s29  ;;  %1656 = vrot.lane.b32.xlu1 %v3545_v62, %s3258_s27  ;;  %v3782_v25 = vpack.c.bf16 %v800_v3, %v799_v22  ;;  %v1022_v2 = vshrl.u32 %v3786_v6, 16  ;;  %v1025_v17 = vshll.u32 %v3786_v6, 16 }
 0x126   : > { %v1196_v15 = vrot.slane %v1025_v17, 1 }
 0x128   : > { %1480 = vrot.lane.b32.xlu0 %v3681_v45, %s3261_s30  ;;  %1417 = vrot.lane.b32.xlu1 %v3538_v56, %s3256_s25  ;;  %v3796_v50 = vor.u32 %v1196_v15, %v1022_v2 }
 0x129   : > { %v1089_v21 = vld [vmem:[#allocation2 + $0x78] sm:$0xff] }
 0x12c   : > { %1576 = vrot.lane.b32.xlu0 %v3534_v54, %s3263_s12  ;;  %1204 = vrot.lane.b32.xlu1 %v1175_v18, %s3259_s28  ;;  %v1024_v54 = vrot.slane %v1022_v2, 7 }
 0x12e   : > { %v3794_v55 = vor.u32 %v1025_v17, %v1024_v54  ;;  %v1348_v54 = vld [vmem:[#allocation2] sm:$0xff] }
 0x130   : > { %1113 = vrot.lane.b32.xlu0 %v3540_v58, %s3257_s26  ;;  %1304 = vrot.lane.b32.xlu1 %v3587_v28, %s3260_s29  ;;  %v1090_v26 = vsel %vm3470_vm9, %v3794_v55, %v1089_v21  ;;  %vm1699_vm9 = vcmask 261344  }
 0x131   : > { %1091 = vst [vmem:[#allocation2 + $0x78] sm:$0xff] %v1090_v26 }
 0x134   : > { %1403 = vrot.lane.b32.xlu0 %v3540_v58, %s3256_s25  ;;  %1470 = vrot.lane.b32.xlu1 %v1175_v18, %s3261_s30 }
 0x138   : > { %1658 = vrot.lane.b32.xlu0 %v3540_v58, %s3258_s27  ;;  %1719 = vrot.lane.b32.xlu1 %v1175_v18, %s3262_s11  ;;  %v3246_v58 = vld [vmem:[%s4592_s4 + $0x8] sm:$0xff]  }
 0x139   : > { %3137 = vmatprep.subr.bf16.mxu1 %v3246_v58 }
 0x13a   : > { %3138 = vmatpush3.bf16.msra.mxu1 %v3246_v58 }
 0x13c   : > { %1129 = vrot.lane.b32.xlu0 %v3514_v33, %s3257_s26  ;;  %1220 = vrot.lane.b32.xlu1 %v3811_v32, %s3259_s28 }
 0x140   : > { %1401 = vrot.lane.b32.xlu0 %v3545_v62, %s3256_s25  ;;  %1486 = vrot.lane.b32.xlu1 %v3811_v32, %s3261_s30  ;;  %v3247_v62 = vld [vmem:[%s4592_s4 + $0x10] ss:$0 sps:$4 sm:$0x33]  }
 0x141   : > { %3209 = vmatprep.subr.msk.bf16.mxu1 %vm1891_vm11, %v3247_v62  ;;  %v1893_v0 = vsel %vm1891_vm11, %v3247_v62, 0 }
 0x142   : > { %3140 = vmatpush3.bf16.msra.mxu1 %v1893_v0 }
 0x144   : > { %1127 = vrot.lane.b32.xlu0 %v3538_v56, %s3257_s26  ;;  %1202 = vrot.lane.b32.xlu1 %v3594_v31, %s3259_s28 }
 0x148   : > { %1566 = vrot.lane.b32.xlu0 %v3587_v28, %s3263_s12  ;;  %1468 = vrot.lane.b32.xlu1 %v3594_v31, %s3261_s30 }
 0x14c   : > { %1320 = vrot.lane.b32.xlu0 %v3598_v39, %s3260_s29  ;;  %1564 = vrot.lane.b32.xlu1 %v3603_v46, %s3263_s12 }
 0x150   : > { %1717 = vrot.lane.b32.xlu1 %v3594_v31, %s3262_s11  ;;  %1302 = vrot.lane.b32.xlu0 %v3603_v46, %s3260_s29 }
 0x154   : > { %1218 = vrot.lane.b32.xlu1 %v3642_v34, %s3259_s28  ;;  %1117 = vrot.lane.b32.xlu0 %v3607_v47, %s3257_s26 }
 0x158   : > { %1318 = vrot.lane.b32.xlu1 %v3644_v35, %s3260_s29  ;;  %1407 = vrot.lane.b32.xlu0 %v3607_v47, %s3256_s25 }
 0x15c   : > { %1484 = vrot.lane.b32.xlu1 %v3642_v34, %s3261_s30  ;;  %1662 = vrot.lane.b32.xlu0 %v3607_v47, %s3258_s27 }
 0x160   : > { %1580 = vrot.lane.b32.xlu1 %v3644_v35, %s3263_s12  ;;  %1133 = vrot.lane.b32.xlu0 %v3640_v29, %s3257_s26 }
 0x162   : > { %v1400_v7 = vpop.permute.xlu1 %1399  ;;  %v1110_v28 = vpop.permute.xlu0 %1109 }
 0x163   : > { %1154 = vst.msk [vmem:[#allocation2 + $0x10] sm:$0xff] %vm1152_vm12, %v1110_v28 }
 0x164   : > { %1423 = vrot.lane.b32.xlu0 %v3640_v29, %s3256_s25  ;;  %1208 = vrot.lane.b32.xlu1 %v3649_v42, %s3259_s28 }
 0x166   : > { %v3869_v31 = vpop.permute.xlu1 %1668  ;;  %v3871_v46 = vpop.permute.xlu0 %1654 }
 0x168   : > { %1308 = vrot.lane.b32.xlu1 %v3651_v44, %s3260_s29  ;;  %1115 = vrot.lane.b32.xlu0 %v3616_v59, %s3257_s26 }
 0x16a   : > { %v1126_v47 = vpop.permute.xlu0 %1125  ;;  %v3877_v35 = vpop.permute.xlu1 %1200 }
 0x16b   : > { %1162 = vst.msk [vmem:[#allocation2 + $0x50] sm:$0xff] %vm1152_vm12, %v1126_v47 }
 0x16c   : > { %1474 = vrot.lane.b32.xlu1 %v3649_v42, %s3261_s30  ;;  %1405 = vrot.lane.b32.xlu0 %v3616_v59, %s3256_s25 }
 0x16e   : > { %v1416_v53 = vpop.permute.xlu0 %1415  ;;  %v1301_v61 = vpop.permute.xlu1 %1300 }
 0x170   : > { %1224 = vrot.lane.b32.xlu1 %v3683_v20, %s3259_s28  ;;  %1660 = vrot.lane.b32.xlu0 %v3616_v59, %s3258_s27 }
 0x172   : > { %v3888_v37 = vpop.permute.xlu0 %1670  ;;  %v3890_v9 = vpop.permute.xlu1 %1466 }
 0x174   : > { %1324 = vrot.lane.b32.xlu1 %v3685_v41, %s3260_s29  ;;  %1131 = vrot.lane.b32.xlu0 %v3647_v40, %s3257_s26 }
 0x176   : > { %v3896_v12 = vpop.permute.xlu1 %1715  ;;  %v1108_v43 = vpop.permute.xlu0 %1107 }
 0x177   : > { %1153 = vst.msk [vmem:[#allocation2 + $0x8] sm:$0xff] %vm1152_vm12, %v1108_v43 }
 0x178   : > { %1421 = vrot.lane.b32.xlu0 %v3647_v40, %s3256_s25  ;;  %1206 = vrot.lane.b32.xlu1 %v3672_v57, %s3259_s28 }
 0x17a   : > { %v3903_v59 = vpop.permute.xlu1 %1216  ;;  %v1398_v1 = vpop.permute.xlu0 %1397 }
 0x17c   : > { %1570 = vrot.lane.b32.xlu0 %v3651_v44, %s3263_s12  ;;  %1472 = vrot.lane.b32.xlu1 %v3672_v57, %s3261_s30 }
 0x17e   : > { %v1317_v10 = vpop.permute.xlu1 %1316  ;;  %v1124_v16 = vpop.permute.xlu0 %1123  ;;  %v1246_v24 = vld [vmem:[#allocation2 + $0x8] sm:$0xff] }
 0x17f   : > { %1161 = vst.msk [vmem:[#allocation2 + $0x48] sm:$0xff] %vm1152_vm12, %v1124_v16 }
 0x180   : > { %1723 = vrot.lane.b32.xlu0 %v3649_v42, %s3262_s11  ;;  %1568 = vrot.lane.b32.xlu1 %v3688_v36, %s3263_s12 }
 0x182   : > { %v3924_v18 = vpop.permute.xlu0 %1413  ;;  %v1199_v22 = vpop.permute.xlu1 %1198 }
 0x183   : > { %v1247_v42 = vsel %vm3920_vm1, %v1199_v22, %v1246_v24 }
 0x184   : > { %v1352_v3 = vsel %vm3915_vm0, %v1301_v61, %v1247_v42  ;;  %1721 = vrot.lane.b32.xlu1 %v3672_v57, %s3262_s11  ;;  %1306 = vrot.lane.b32.xlu0 %v3688_v36, %s3260_s29 }
 0x185   : > { %1353 = vst [vmem:[#allocation2 + $0x8] sm:$0xff] %v1352_v3 }
 0x186   : > { %v1563_v27 = vpop.permute.xlu0 %1562  ;;  %v1465_v19 = vpop.permute.xlu1 %1464  ;;  %1447 = vst.msk [vmem:[#allocation2 + $0x8] sm:$0xff] %vm1445_vm2, %v1400_v7  ;;  %v1270_v30 = vld [vmem:[#allocation2 + $0x48] sm:$0xff] }
 0x188   : > { %1222 = vrot.lane.b32.xlu0 %v3720_v11, %s3259_s28  ;;  %1666 = vrot.lane.b32.xlu1 %v3701_v8, %s3258_s27 }
 0x18a   : > { %v3939_v51 = vpop.permute.xlu0 %1482  ;;  %v1215_v5 = vpop.permute.xlu1 %1214 }
 0x18b   : > { %v1271_v57 = vsel %vm3920_vm1, %v1215_v5, %v1270_v30 }
 0x18c   : > { %v1376_v36 = vsel %vm3915_vm0, %v1317_v10, %v1271_v57  ;;  %1322 = vrot.lane.b32.xlu0 %v3710_v63, %s3260_s29  ;;  %1212 = vrot.lane.b32.xlu1 %v3731_v14, %s3259_s28 }
 0x18d   : > { %1377 = vst [vmem:[#allocation2 + $0x48] sm:$0xff] %v1376_v36  ;;  %v1517_v5 = vld [vmem:[#allocation2 + $0x8] sm:$0xff] }
 0x18e   : > { %v3949_v2 = vpop.permute.xlu0 %1578  ;;  %v3951_v17 = vpop.permute.xlu1 %1419  ;;  %1455 = vst.msk [vmem:[#allocation2 + $0x48] sm:$0xff] %vm1445_vm2, %v1416_v53 }
 0x190   : > { %1121 = vrot.lane.b32.xlu0 %v3701_v8, %s3257_s26  ;;  %1312 = vrot.lane.b32.xlu1 %v3733_v23, %s3260_s29 }
 0x192   : > { %v1299_v15 = vpop.permute.xlu0 %1298  ;;  %v1112_v21 = vpop.permute.xlu1 %1111 }
 0x193   : > { %v1349_v26 = vsel %vm3915_vm0, %v1299_v15, %v1348_v54  ;;  %1155 = vst.msk [vmem:[#allocation2 + $0x18] sm:$0xff] %vm1152_vm12, %v1112_v21  ;;  %v1249_v54 = vld [vmem:[#allocation2 + $0x10] sm:$0xff] }
 0x194   : > { %1350 = vst [vmem:[#allocation2] sm:$0xff] %v1349_v26  ;;  %1411 = vrot.lane.b32.xlu0 %v3701_v8, %s3256_s25  ;;  %1478 = vrot.lane.b32.xlu1 %v3731_v14, %s3261_s30 }
 0x195   : > { %1446 = vst.msk [vmem:[#allocation2] sm:$0xff] %vm1445_vm2, %v1398_v1 }
 0x196   : > { %v3966_v52 = vpop.permute.xlu0 %1314  ;;  %v3968_v60 = vpop.permute.xlu1 %1656 }
 0x198   : > { %1574 = vrot.lane.b32.xlu1 %v3733_v23, %s3263_s12  ;;  %1119 = vrot.lane.b32.xlu0 %v3708_v49, %s3257_s26 }
 0x19a   : > { %v3974_v58 = vpop.permute.xlu0 %1480  ;;  %v3976_v8 = vpop.permute.xlu1 %1417 }
 0x19c   : > { %v1514_v7 = vld [vmem:[#allocation2] sm:$0xff]  ;;  %1409 = vrot.lane.b32.xlu0 %v3708_v49, %s3256_s25  ;;  %1210 = vrot.lane.b32.xlu1 %v3742_v38, %s3259_s28 }
 0x19d   : > { %v1515_v23 = vsel %vm3984_vm6, %v1465_v19, %v1514_v7 }
 0x19e   : > { %v1610_v28 = vsel %vm3979_vm5, %v1563_v27, %v1515_v23  ;;  %v3996_v47 = vpop.permute.xlu0 %1576  ;;  %v3998_v53 = vpop.permute.xlu1 %1204  ;;  %v1252_v27 = vld [vmem:[#allocation2 + $0x18] sm:$0xff] }
 0x19f   : > { %1611 = vst [vmem:[#allocation2] sm:$0xff] %v1610_v28 }
 0x1a0   : > { %1700 = vst.msk [vmem:[#allocation2] sm:$0xff] %vm1699_vm9, %v3871_v46  ;;  %1664 = vrot.lane.b32.xlu0 %v3708_v49, %s3258_s27  ;;  %1727 = vrot.lane.b32.xlu1 %v3731_v14, %s3262_s11 }
 0x1a2   : > { %v1114_v61 = vpop.permute.xlu0 %1113  ;;  %v1305_v43 = vpop.permute.xlu1 %1304 }
 0x1a3   : > { %1156 = vst.msk [vmem:[#allocation2 + $0x20] sm:$0xff] %vm1152_vm12, %v1114_v61 }
 0x1a4   : > { %1672 = vrot.lane.b32.xlu0 %v3538_v56, %s3258_s27  ;;  %1729 = vrot.lane.b32.xlu1 %v3681_v45, %s3262_s11 }
 0x1a6   : > { %v1404_v49 = vpop.permute.xlu0 %1403  ;;  %v4016_v1 = vpop.permute.xlu1 %1470 }
 0x1a7   : > { %v1762_v14 = vld [vmem:[#allocation2] sm:$0xff] }
 0x1a8   : > { %v1763_v10 = vsel %vm4012_vm13, %v3896_v12, %v1762_v14  ;;  %1425 = vrot.lane.b32.xlu1 %v3786_v6, %s3256_s25  ;;  %1310 = vrot.lane.b32.xlu0 %v3748_v48, %s3260_s29 }
 0x1a9   : > { %1764 = vst [vmem:[#allocation2] sm:$0xff] %v1763_v10  ;;  %3141 = vmatprep.mubr.msk.bf16.mxu1 %vm817_vm10, %v1763_v10 }
 0x1aa   : > { %v4026_v56 = vpop.permute.xlu0 %1658  ;;  %v4028_v45 = vpop.permute.xlu1 %1719 }
 0x1ac   : > { %1476 = vrot.lane.b32.xlu1 %v3742_v38, %s3261_s30  ;;  %1488 = vrot.lane.b32.xlu0 %v3720_v11, %s3261_s30 }
 0x1ae   : > { %v1130_v12 = vpop.permute.xlu0 %1129  ;;  %v4034_v16 = vpop.permute.xlu1 %1220 }
 0x1af   : > { %1164 = vst.msk [vmem:[#allocation2 + $0x60] sm:$0xff] %vm1152_vm12, %v1130_v12  ;;  %v1541_v12 = vld [vmem:[#allocation2 + $0x48] sm:$0xff] }
 0x1b0   : > { %1572 = vrot.lane.b32.xlu1 %v3748_v48, %s3263_s12  ;;  %1490 = vrot.lane.b32.xlu0 %v3683_v20, %s3261_s30 }
 0x1b2   : > { %v1402_v22 = vpop.permute.xlu0 %1401  ;;  %v4041_v24 = vpop.permute.xlu1 %1486 }
 0x1b4   : > { %1135 = vrot.lane.b32.xlu1 %v3786_v6, %s3257_s26  ;;  %1584 = vrot.lane.b32.xlu0 %v3710_v63, %s3263_s12 }
 0x1b6   : > { %v1128_v42 = vpop.permute.xlu0 %1127  ;;  %v1203_v3 = vpop.permute.xlu1 %1202 }
 0x1b7   : > { %1163 = vst.msk [vmem:[#allocation2 + $0x58] sm:$0xff] %vm1152_vm12, %v1128_v42  ;;  %v1253_v48 = vsel %vm3920_vm1, %v1203_v3, %v1252_v27 }
 0x1b8   : > { %v1358_v19 = vsel %vm3915_vm0, %v1305_v43, %v1253_v48  ;;  %1582 = vrot.lane.b32.xlu1 %v3598_v39, %s3263_s12  ;;  %1731 = vrot.lane.b32.xlu0 %v3558_v4, %s3262_s11  ;;  %v1518_v39 = vsel %vm3984_vm6, %v3890_v9, %v1517_v5 }
 0x1b9   : > { %1359 = vst [vmem:[#allocation2 + $0x18] sm:$0xff] %v1358_v19 }
 0x1ba   : > { %1449 = vst.msk [vmem:[#allocation2 + $0x18] sm:$0xff] %vm1445_vm2, %v1404_v49  ;;  %v1567_v63 = vpop.permute.xlu0 %1566  ;;  %v1469_v30 = vpop.permute.xlu1 %1468 }
 0x1bc   : > { %1674 = vrot.lane.b32.xlu1 %v3514_v33, %s3258_s27  ;;  %1733 = vrot.lane.b32.xlu0 %v3642_v34, %s3262_s11  ;;  %v1250_v33 = vsel %vm3920_vm1, %v3877_v35, %v1249_v54 }
 0x1be   : > { %v1321_v57 = vpop.permute.xlu0 %1320  ;;  %v1565_v36 = vpop.permute.xlu1 %1564 }
 0x1bf   : > { %v1613_v4 = vsel %vm3979_vm5, %v1565_v36, %v1518_v39 }
 0x1c0   : > { %1614 = vst [vmem:[#allocation2 + $0x8] sm:$0xff] %v1613_v4  ;;  %1676 = vrot.lane.b32.xlu1 %v3647_v40, %s3258_s27  ;;  %1725 = vrot.lane.b32.xlu0 %v3742_v38, %s3262_s11  ;;  %v1276_v40 = vld [vmem:[#allocation2 + $0x58] sm:$0xff] }
 0x1c1   : > { %1701 = vst.msk [vmem:[#allocation2 + $0x8] sm:$0xff] %vm1699_vm9, %v3968_v60 }
 0x1c2   : > { %v1718_v34 = vpop.permute.xlu1 %1717  ;;  %v1303_v9 = vpop.permute.xlu0 %1302 }
 0x1c3   : > { %v1355_v15 = vsel %vm3915_vm0, %v1303_v9, %v1250_v33 }
 0x1c4   : > { %1356 = vst [vmem:[#allocation2 + $0x10] sm:$0xff] %v1355_v15  ;;  %1586 = vrot.lane.b32.xlu1 %v3685_v41, %s3263_s12  ;;  %1735 = vrot.lane.b32.xlu0 %v3811_v32, %s3262_s11  ;;  %v1273_v41 = vld [vmem:[#allocation2 + $0x50] sm:$0xff]  ;;  %v1523_v15 = vld [vmem:[#allocation2 + $0x18] sm:$0xff] }
 0x1c5   : > { %1448 = vst.msk [vmem:[#allocation2 + $0x10] sm:$0xff] %vm1445_vm2, %v1402_v22  ;;  %v1274_v7 = vsel %vm3920_vm1, %v3903_v59, %v1273_v41 }
 0x1c6   : > { %v1219_v38 = vpop.permute.xlu1 %1218  ;;  %v1118_v21 = vpop.permute.xlu0 %1117 }
 0x1c7   : > { %v1277_v35 = vsel %vm3920_vm1, %v1219_v38, %v1276_v40  ;;  %1158 = vst.msk [vmem:[#allocation2 + $0x30] sm:$0xff] %vm1152_vm12, %v1118_v21  ;;  %v1524_v38 = vsel %vm3984_vm6, %v4016_v1, %v1523_v15 }
 0x1c8   : > { %v1765_v26 = vld [vmem:[#allocation2 + $0x8] sm:$0xff]  ;;  %v1382_v60 = vsel %vm3915_vm0, %v1321_v57, %v1277_v35  ;;  %1678 = vrot.lane.b32.xlu1 %v3640_v29, %s3258_s27  ;;  %1326 = vrot.lane.b32.xlu0 %v3794_v55, %s3260_s29  ;;  %v1292_v29 = vshrl.u32 %v3782_v25, 16  ;;  %v1255_v35 = vld [vmem:[#allocation2 + $0x20] sm:$0xff] }
 0x1c9   : > { %v1766_v32 = vsel %vm4012_vm13, %v1718_v34, %v1765_v26  ;;  %1383 = vst [vmem:[#allocation2 + $0x58] sm:$0xff] %v1382_v60  ;;  %v1256_v60 = vsel %vm3920_vm1, %v3998_v53, %v1255_v35 }
 0x1ca   : > { %1767 = vst [vmem:[#allocation2 + $0x8] sm:$0xff] %v1766_v32  ;;  %1457 = vst.msk [vmem:[#allocation2 + $0x58] sm:$0xff] %vm1445_vm2, %v3951_v17  ;;  %v1319_v23 = vpop.permute.xlu1 %1318  ;;  %v1408_v28 = vpop.permute.xlu0 %1407  ;;  %3142 = vmatmul.mubr.msk.bf16.vlgmr.msra.gmra.mrb[16].mxu1 %vm817_vm10, %v1766_v32  ;;  %v1294_v10 = vrot.slane %v1292_v29, 7 }
 0x1cb   : > { %v1379_v61 = vsel %vm3915_vm0, %v1319_v23, %v1274_v7 }
 0x1cc   : > { %v1520_v43 = vld [vmem:[#allocation2 + $0x10] sm:$0xff]  ;;  %1380 = vst [vmem:[#allocation2 + $0x50] sm:$0xff] %v1379_v61  ;;  %1680 = vrot.lane.b32.xlu1 %v3786_v6, %s3258_s27  ;;  %1737 = vrot.lane.b32.xlu0 %v3720_v11, %s3262_s11  ;;  %v1295_v11 = vshll.u32 %v3782_v25, 16  ;;  %v1542_v6 = vsel %vm3984_vm6, %v3939_v51, %v1541_v12 }
 0x1cd   : > { %v1521_v59 = vsel %vm3984_vm6, %v1469_v30, %v1520_v43  ;;  %1456 = vst.msk [vmem:[#allocation2 + $0x50] sm:$0xff] %vm1445_vm2, %v3976_v8 }
 0x1ce   : > { %v1616_v17 = vsel %vm3979_vm5, %v1567_v63, %v1521_v59  ;;  %v4112_v49 = vpop.permute.xlu1 %1484  ;;  %v4114_v14 = vpop.permute.xlu0 %1662  ;;  %v1297_v42 = vor.u32 %v1295_v11, %v1294_v10  ;;  %v1462_v30 = vrot.slane %v1295_v11, 1 }
 0x1cf   : > { %1617 = vst [vmem:[#allocation2 + $0x10] sm:$0xff] %v1616_v17 }
 0x1d0   : > { %1702 = vst.msk [vmem:[#allocation2 + $0x10] sm:$0xff] %vm1699_vm9, %v4026_v56  ;;  %1492 = vrot.lane.b32.xlu1 %v3796_v50, %s3261_s30  ;;  %1226 = vrot.lane.b32.xlu0 %v3796_v50, %s3259_s28  ;;  %v1463_v5 = vor.u32 %v1462_v30, %v1292_v29  ;;  %v1279_v29 = vld [vmem:[#allocation2 + $0x60] sm:$0xff] }
 0x1d1   : > { %v1280_v17 = vsel %vm3920_vm1, %v4034_v16, %v1279_v29 }
 0x1d2   : > { %v1581_v8 = vpop.permute.xlu1 %1580  ;;  %v1134_v22 = vpop.permute.xlu0 %1133 }
 0x1d3   : > { %v1637_v3 = vsel %vm3979_vm5, %v1581_v8, %v1542_v6  ;;  %1166 = vst.msk [vmem:[#allocation2 + $0x70] sm:$0xff] %vm1152_vm12, %v1134_v22 }
 0x1d4   : > { %1638 = vst [vmem:[#allocation2 + $0x48] sm:$0xff] %v1637_v3  ;;  %1590 = vrot.lane.b32.xlu1 %v1297_v42, %s3263_s12  ;;  %1588 = vrot.lane.b32.xlu0 %v3794_v55, %s3263_s12 }
 0x1d6   : > { %v1424_v56 = vpop.permute.xlu0 %1423  ;;  %v4132_v27 = vpop.permute.xlu1 %1208 }
 0x1d7   : > { %v1768_v48 = vld [vmem:[#allocation2 + $0x10] sm:$0xff] }
 0x1d8   : > { %v1769_v51 = vsel %vm4012_vm13, %v4028_v45, %v1768_v48  ;;  %1682 = vrot.lane.b32.xlu1 %v3782_v25, %s3258_s27  ;;  %1328 = vrot.lane.b32.xlu0 %v1297_v42, %s3260_s29 }
 0x1d9   : > { %1770 = vst [vmem:[#allocation2 + $0x10] sm:$0xff] %v1769_v51  ;;  %3145 = vmatprep.mubr.msk.bf16.mxu1 %vm817_vm10, %v1769_v51 }
 0x1da   : > { %v1309_v19 = vpop.permute.xlu1 %1308  ;;  %v1116_v63 = vpop.permute.xlu0 %1115 }
 0x1db   : > { %1157 = vst.msk [vmem:[#allocation2 + $0x28] sm:$0xff] %vm1152_vm12, %v1116_v63 }
 0x1dc   : > { %1427 = vrot.lane.b32.xlu1 %v3782_v25, %s3256_s25  ;;  %1739 = vrot.lane.b32.xlu0 %v3683_v20, %s3262_s11 }
 0x1de   : > { %v4146_v55 = vpop.permute.xlu1 %1474  ;;  %v1406_v45 = vpop.permute.xlu0 %1405 }
 0x1e0   : > { %1743 = vrot.lane.b32.xlu1 %v1463_v5, %s3262_s11  ;;  %1741 = vrot.lane.b32.xlu0 %v3796_v50, %s3262_s11 }
 0x1e2   : > { %v4151_v57 = vpop.permute.xlu1 %1224  ;;  %v1661_v39 = vpop.permute.xlu0 %1660  ;;  %v1258_v4 = vld [vmem:[#allocation2 + $0x28] sm:$0xff] }
 0x1e4   : > { %1494 = vrot.lane.b32.xlu0 %v1463_v5, %s3261_s30 }
 0x1e6   : > { %v1325_v36 = vpop.permute.xlu1 %1324  ;;  %v1132_v54 = vpop.permute.xlu0 %1131 }
 0x1e7   : > { %1165 = vst.msk [vmem:[#allocation2 + $0x68] sm:$0xff] %vm1152_vm12, %v1132_v54 }
 0x1ea   : > { %v1422_v25 = vpop.permute.xlu0 %1421  ;;  %v1207_v20 = vpop.permute.xlu1 %1206 }
 0x1eb   : > { %v1259_v33 = vsel %vm3920_vm1, %v1207_v20, %v1258_v4 }
 0x1ec   : > { %v1364_v34 = vsel %vm3915_vm0, %v1309_v19, %v1259_v33 }
 0x1ed   : > { %1365 = vst [vmem:[#allocation2 + $0x28] sm:$0xff] %v1364_v34 }
 0x1ee   : > { %1451 = vst.msk [vmem:[#allocation2 + $0x28] sm:$0xff] %vm1445_vm2, %v1408_v28  ;;  %v1571_v50 = vpop.permute.xlu0 %1570  ;;  %v1473_v9 = vpop.permute.xlu1 %1472  ;;  %v1282_v1 = vld [vmem:[#allocation2 + $0x68] sm:$0xff] }
 0x1f2   : > { %v1724_v40 = vpop.permute.xlu0 %1723  ;;  %v1569_v21 = vpop.permute.xlu1 %1568 }
 0x1f3   : > { %v1619_v26 = vsel %vm3979_vm5, %v1569_v21, %v1524_v38 }
 0x1f4   : > { %1620 = vst [vmem:[#allocation2 + $0x18] sm:$0xff] %v1619_v26 }
 0x1f5   : > { %1703 = vst.msk [vmem:[#allocation2 + $0x18] sm:$0xff] %vm1699_vm9, %v1661_v39 }
 0x1f6   : > { %v1722_v41 = vpop.permute.xlu1 %1721  ;;  %v1307_v32 = vpop.permute.xlu0 %1306 }
 0x1f7   : > { %v1361_v7 = vsel %vm3915_vm0, %v1307_v32, %v1256_v60 }
 0x1f8   : > { %1362 = vst [vmem:[#allocation2 + $0x20] sm:$0xff] %v1361_v7 }
 0x1f9   : > { %1450 = vst.msk [vmem:[#allocation2 + $0x20] sm:$0xff] %vm1445_vm2, %v1406_v45 }
 0x1fa   : > { %v1223_v23 = vpop.permute.xlu0 %1222  ;;  %v4172_v28 = vpop.permute.xlu1 %1666 }
 0x1fb   : > { %v1283_v61 = vsel %vm3920_vm1, %v1223_v23, %v1282_v1  ;;  %v1547_v1 = vld [vmem:[#allocation2 + $0x58] sm:$0xff] }
 0x1fc   : > { %v1771_v43 = vld [vmem:[#allocation2 + $0x18] sm:$0xff]  ;;  %v1388_v53 = vsel %vm3915_vm0, %v1325_v36, %v1283_v61 }
 0x1fd   : > { %v1772_v59 = vsel %vm4012_vm13, %v1722_v41, %v1771_v43  ;;  %1389 = vst [vmem:[#allocation2 + $0x68] sm:$0xff] %v1388_v53  ;;  %v1544_v43 = vld [vmem:[#allocation2 + $0x50] sm:$0xff] }
 0x1fe   : > { %1773 = vst [vmem:[#allocation2 + $0x18] sm:$0xff] %v1772_v59  ;;  %1459 = vst.msk [vmem:[#allocation2 + $0x68] sm:$0xff] %vm1445_vm2, %v1424_v56  ;;  %v1323_v10 = vpop.permute.xlu0 %1322  ;;  %v1213_v12 = vpop.permute.xlu1 %1212  ;;  %3146 = vmatmul.mubr.msk.bf16.gmra.mrb[20].mxu1 %vm817_vm10, %v1772_v59  ;;  %v2182_v59 = vld [vmem:[%s4595_s7] sm:$0x3] }
 0x1ff   : > { %v1385_v11 = vsel %vm3915_vm0, %v1323_v10, %v1280_v17  ;;  %3210 = vmatprep.subr.msk.bf16.mxu0 %vm1891_vm11, %v2182_v59 }
 0x200   : > { %v1526_v6 = vld [vmem:[#allocation2 + $0x20] sm:$0xff]  ;;  %1386 = vst [vmem:[#allocation2 + $0x60] sm:$0xff] %v1385_v11 }
 0x201   : > { %v1527_v8 = vsel %vm3984_vm6, %v1473_v9, %v1526_v6  ;;  %1458 = vst.msk [vmem:[#allocation2 + $0x60] sm:$0xff] %vm1445_vm2, %v1422_v25  ;;  %v1261_v9 = vld [vmem:[#allocation2 + $0x30] sm:$0xff] }
 0x202   : > { %v1622_v16 = vsel %vm3979_vm5, %v1571_v50, %v1527_v8  ;;  %v1122_v22 = vpop.permute.xlu0 %1121  ;;  %v1313_v42 = vpop.permute.xlu1 %1312  ;;  %v1262_v15 = vsel %vm3920_vm1, %v4132_v27, %v1261_v9  ;;  %v1529_v27 = vld [vmem:[#allocation2 + $0x28] sm:$0xff] }
 0x203   : > { %1623 = vst [vmem:[#allocation2 + $0x20] sm:$0xff] %v1622_v16  ;;  %1160 = vst.msk [vmem:[#allocation2 + $0x40] sm:$0xff] %vm1152_vm12, %v1122_v22  ;;  %v1530_v60 = vsel %vm3984_vm6, %v4146_v55, %v1529_v27  ;;  %v1548_v55 = vsel %vm3984_vm6, %v4041_v24, %v1547_v1  ;;  %v2233_v24 = vsel %vm1891_vm11, %v2182_v59, 0 }
 0x204   : > { %1704 = vst.msk [vmem:[#allocation2 + $0x20] sm:$0xff] %vm1699_vm9, %v4114_v14  ;;  %3174 = vmatpush3.bf16.msra.mxu0 %v2233_v24  ;;  %v4337_v24 = vld [vmem:[%s4593_s5] ss:$0 sm:$0xff] }
 0x206   : > { %v1412_v3 = vpop.permute.xlu0 %1411  ;;  %v1479_v56 = vpop.permute.xlu1 %1478 }
 0x20a   : > { %v1267_v48 = vld [vmem:[#allocation2 + $0x40] sm:$0xff]  ;;  %v1575_v51 = vpop.permute.xlu1 %1574  ;;  %v1120_v19 = vpop.permute.xlu0 %1119 }
 0x20b   : > { %v1774_v63 = vld [vmem:[#allocation2 + $0x20] sm:$0xff]  ;;  %v1268_v30 = vsel %vm3920_vm1, %v1213_v12, %v1267_v48  ;;  %1159 = vst.msk [vmem:[#allocation2 + $0x38] sm:$0xff] %vm1152_vm12, %v1120_v19  ;;  %v1545_v12 = vsel %vm3984_vm6, %v4112_v49, %v1544_v43 }
 0x20c   : > { %v1775_v45 = vsel %vm4012_vm13, %v1724_v40, %v1774_v63  ;;  %v1373_v5 = vsel %vm3915_vm0, %v3966_v52, %v1268_v30 }
 0x20d   : > { %1776 = vst [vmem:[#allocation2 + $0x20] sm:$0xff] %v1775_v45  ;;  %1374 = vst [vmem:[#allocation2 + $0x40] sm:$0xff] %v1373_v5  ;;  %3149 = vmatprep.mubr.msk.bf16.mxu1 %vm817_vm10, %v1775_v45  ;;  %v1550_v45 = vld [vmem:[#allocation2 + $0x60] sm:$0xff] }
 0x20e   : > { %1454 = vst.msk [vmem:[#allocation2 + $0x40] sm:$0xff] %vm1445_vm2, %v3924_v18  ;;  %v1410_v14 = vpop.permute.xlu0 %1409  ;;  %v1211_v39 = vpop.permute.xlu1 %1210 }
 0x212   : > { %v1264_v36 = vld [vmem:[#allocation2 + $0x38] sm:$0xff]  ;;  %v1665_v54 = vpop.permute.xlu0 %1664  ;;  %v4206_v25 = vpop.permute.xlu1 %1727 }
 0x213   : > { %v1265_v20 = vsel %vm3920_vm1, %v1211_v39, %v1264_v36 }
 0x214   : > { %v1370_v4 = vsel %vm3915_vm0, %v1313_v42, %v1265_v20  ;;  %v1285_v20 = vld [vmem:[#allocation2 + $0x70] sm:$0xff] }
 0x215   : > { %1371 = vst [vmem:[#allocation2 + $0x38] sm:$0xff] %v1370_v4  ;;  %v1538_v52 = vld [vmem:[#allocation2 + $0x40] sm:$0xff]  ;;  %v1286_v4 = vsel %vm3920_vm1, %v4151_v57, %v1285_v20 }
 0x216   : > { %1453 = vst.msk [vmem:[#allocation2 + $0x38] sm:$0xff] %vm1445_vm2, %v1412_v3  ;;  %v1673_v33 = vpop.permute.xlu0 %1672  ;;  %v1730_v34 = vpop.permute.xlu1 %1729  ;;  %v1539_v18 = vsel %vm3984_vm6, %v3974_v58, %v1538_v52 }
 0x217   : > { %1709 = vst.msk [vmem:[#allocation2 + $0x48] sm:$0xff] %vm1699_vm9, %v1673_v33  ;;  %v1634_v50 = vsel %vm3979_vm5, %v3949_v2, %v1539_v18 }
 0x218   : > { %1635 = vst [vmem:[#allocation2 + $0x40] sm:$0xff] %v1634_v50 }
 0x219   : > { %1708 = vst.msk [vmem:[#allocation2 + $0x40] sm:$0xff] %vm1699_vm9, %v3888_v37 }
 0x21a   : > { %v4225_v40 = vpop.permute.xlu1 %1425  ;;  %v1311_v38 = vpop.permute.xlu0 %1310 }
 0x21b   : > { %v1367_v58 = vsel %vm3915_vm0, %v1311_v38, %v1262_v15 }
 0x21c   : > { %1368 = vst [vmem:[#allocation2 + $0x30] sm:$0xff] %v1367_v58 }
 0x21d   : > { %v1535_v21 = vld [vmem:[#allocation2 + $0x38] sm:$0xff]  ;;  %1452 = vst.msk [vmem:[#allocation2 + $0x30] sm:$0xff] %vm1445_vm2, %v1410_v14 }
 0x21e   : > { %v1536_v2 = vsel %vm3984_vm6, %v1479_v56, %v1535_v21  ;;  %v1477_v35 = vpop.permute.xlu1 %1476  ;;  %v4232_v26 = vpop.permute.xlu0 %1488  ;;  %v1789_v42 = vld [vmem:[#allocation2 + $0x48] sm:$0xff] }
 0x21f   : > { %v1631_v37 = vsel %vm3979_vm5, %v3996_v47, %v1536_v2  ;;  %v1551_v5 = vsel %vm3984_vm6, %v4232_v26, %v1550_v45  ;;  %v1553_v21 = vld [vmem:[#allocation2 + $0x68] sm:$0xff] }
 0x220   : > { %1632 = vst [vmem:[#allocation2 + $0x38] sm:$0xff] %v1631_v37  ;;  %v1786_v6 = vld [vmem:[#allocation2 + $0x40] sm:$0xff] }
 0x221   : > { %1707 = vst.msk [vmem:[#allocation2 + $0x38] sm:$0xff] %vm1699_vm9, %v3869_v31 }
 0x222   : > { %v1573_v41 = vpop.permute.xlu1 %1572  ;;  %v4242_v32 = vpop.permute.xlu0 %1490 }
 0x223   : > { %v1625_v7 = vsel %vm3979_vm5, %v1573_v41, %v1530_v60 }
 0x224   : > { %v1532_v23 = vld [vmem:[#allocation2 + $0x30] sm:$0xff]  ;;  %1626 = vst [vmem:[#allocation2 + $0x28] sm:$0xff] %v1625_v7 }
 0x225   : > { %v1533_v47 = vsel %vm3984_vm6, %v1477_v35, %v1532_v23  ;;  %1705 = vst.msk [vmem:[#allocation2 + $0x28] sm:$0xff] %vm1699_vm9, %v1665_v54 }
 0x226   : > { %v1628_v31 = vsel %vm3979_vm5, %v1575_v51, %v1533_v47  ;;  %v1136_v29 = vpop.permute.xlu1 %1135  ;;  %v1585_v61 = vpop.permute.xlu0 %1584 }
 0x227   : > { %1629 = vst [vmem:[#allocation2 + $0x30] sm:$0xff] %v1628_v31  ;;  %1167 = vst.msk [vmem:[#allocation2 + $0x78] sm:$0xff] %vm1152_vm12, %v1136_v29  ;;  %v1643_v53 = vsel %vm3979_vm5, %v1585_v61, %v1548_v55 }
 0x228   : > { %v1783_v17 = vld [vmem:[#allocation2 + $0x38] sm:$0xff]  ;;  %1706 = vst.msk [vmem:[#allocation2 + $0x30] sm:$0xff] %vm1699_vm9, %v4172_v28  ;;  %1644 = vst [vmem:[#allocation2 + $0x58] sm:$0xff] %v1643_v53 }
 0x229   : > { %v1784_v10 = vsel %vm4012_vm13, %v1730_v34, %v1783_v17 }
 0x22a   : > { %1785 = vst [vmem:[#allocation2 + $0x38] sm:$0xff] %v1784_v10  ;;  %v1583_v11 = vpop.permute.xlu1 %1582  ;;  %v1732_v8 = vpop.permute.xlu0 %1731 }
 0x22b   : > { %v1640_v28 = vsel %vm3979_vm5, %v1583_v11, %v1545_v12  ;;  %v1787_v16 = vsel %vm4012_vm13, %v1732_v8, %v1786_v6 }
 0x22c   : > { %1641 = vst [vmem:[#allocation2 + $0x50] sm:$0xff] %v1640_v28  ;;  %1788 = vst [vmem:[#allocation2 + $0x40] sm:$0xff] %v1787_v16  ;;  %v1777_v19 = vld [vmem:[#allocation2 + $0x28] sm:$0xff] }
 0x22e   : > { %v1675_v22 = vpop.permute.xlu1 %1674  ;;  %v1734_v3 = vpop.permute.xlu0 %1733  ;;  %v1288_v60 = vld [vmem:[#allocation2 + $0x78] sm:$0xff] }
 0x22f   : > { %v1780_v56 = vld [vmem:[#allocation2 + $0x30] sm:$0xff]  ;;  %1710 = vst.msk [vmem:[#allocation2 + $0x50] sm:$0xff] %vm1699_vm9, %v1675_v22  ;;  %v1790_v49 = vsel %vm4012_vm13, %v1734_v3, %v1789_v42 }
 0x230   : > { %v1781_v48 = vsel %vm4012_vm13, %v4206_v25, %v1780_v56  ;;  %1791 = vst [vmem:[#allocation2 + $0x48] sm:$0xff] %v1790_v49 }
 0x231   : > { %1782 = vst [vmem:[#allocation2 + $0x30] sm:$0xff] %v1781_v48 }
 0x232   : > { %v1677_v51 = vpop.permute.xlu1 %1676  ;;  %v1726_v63 = vpop.permute.xlu0 %1725 }
 0x233   : > { %1711 = vst.msk [vmem:[#allocation2 + $0x58] sm:$0xff] %vm1699_vm9, %v1677_v51  ;;  %v1778_v30 = vsel %vm4012_vm13, %v1726_v63, %v1777_v19 }
 0x234   : > { %1779 = vst [vmem:[#allocation2 + $0x28] sm:$0xff] %v1778_v30  ;;  %3150 = vmatmul.mubr.msk.bf16.gmra.mrb[24].mxu1 %vm817_vm10, %v1778_v30 }
 0x235   : > { %3153 = vmatprep.mubr.msk.bf16.mxu1 %vm817_vm10, %v1781_v48 }
 0x236   : > { %v1587_v14 = vpop.permute.xlu1 %1586  ;;  %v1792_v39 = vld [vmem:[#allocation2 + $0x50] sm:$0xff]  ;;  %v1736_v36 = vpop.permute.xlu0 %1735 }
 0x237   : > { %v1646_v54 = vsel %vm3979_vm5, %v1587_v14, %v1551_v5  ;;  %v1793_v25 = vsel %vm4012_vm13, %v1736_v36, %v1792_v39 }
 0x238   : > { %1647 = vst [vmem:[#allocation2 + $0x60] sm:$0xff] %v1646_v54  ;;  %1794 = vst [vmem:[#allocation2 + $0x50] sm:$0xff] %v1793_v25 }
 0x23a   : > { %v1679_v52 = vpop.permute.xlu1 %1678  ;;  %v1327_v33 = vpop.permute.xlu0 %1326  ;;  %v1795_v50 = vld [vmem:[#allocation2 + $0x58] sm:$0xff] }
 0x23b   : > { %1712 = vst.msk [vmem:[#allocation2 + $0x60] sm:$0xff] %vm1699_vm9, %v1679_v52  ;;  %v1391_v34 = vsel %vm3915_vm0, %v1327_v33, %v1286_v4 }
 0x23c   : > { %1392 = vst [vmem:[#allocation2 + $0x70] sm:$0xff] %v1391_v34  ;;  %3154 = vmatmul.mubr.msk.bf16.gmra.mrb[28].mxu1 %vm817_vm10, %v1784_v10  ;;  %v4342_v10 = vld [vmem:[%s4594_s6] ss:$0 sm:$0xff] }
 0x23d   : > { %1460 = vst.msk [vmem:[#allocation2 + $0x70] sm:$0xff] %vm1445_vm2, %v4225_v40  ;;  %3157 = vmatprep.mubr.msk.bf16.mxu1 %vm817_vm10, %v1787_v16  ;;  %v1554_v40 = vsel %vm3984_vm6, %v4242_v32, %v1553_v21 }
 0x23e   : > { %v1681_v18 = vpop.permute.xlu1 %1680  ;;  %v1738_v9 = vpop.permute.xlu0 %1737 }
 0x23f   : > { %v1796_v57 = vsel %vm4012_vm13, %v1738_v9, %v1795_v50 }
 0x240   : > { %1797 = vst [vmem:[#allocation2 + $0x58] sm:$0xff] %v1796_v57 }
 0x242   : > { %v1493_v15 = vpop.permute.xlu1 %1492  ;;  %v1227_v38 = vpop.permute.xlu0 %1226  ;;  %v1798_v23 = vld [vmem:[#allocation2 + $0x60] sm:$0xff] }
 0x243   : > { %v1289_v41 = vsel %vm3920_vm1, %v1227_v38, %v1288_v60 }
 0x244   : > { %v1556_v58 = vld [vmem:[#allocation2 + $0x70] sm:$0xff]  ;;  %3158 = vmatmul.mubr.msk.bf16.gmra.mrb[32].mxu1 %vm817_vm10, %v1790_v49 }
 0x245   : > { %v1557_v2 = vsel %vm3984_vm6, %v1493_v15, %v1556_v58  ;;  %3161 = vmatprep.mubr.msk.bf16.mxu1 %vm817_vm10, %v1793_v25 }
 0x246   : > { %v1591_v35 = vpop.permute.xlu1 %1590  ;;  %v1589_v26 = vpop.permute.xlu0 %1588 }
 0x247   : > { %v1652_v37 = vsel %vm3979_vm5, %v1591_v35, %v1557_v2  ;;  %v1649_v27 = vsel %vm3979_vm5, %v1589_v26, %v1554_v40 }
 0x248   : > { %1653 = vst [vmem:[#allocation2 + $0x70] sm:$0xff] %v1652_v37  ;;  %1650 = vst [vmem:[#allocation2 + $0x68] sm:$0xff] %v1649_v27 }
 0x249   : > { %1713 = vst.msk [vmem:[#allocation2 + $0x68] sm:$0xff] %vm1699_vm9, %v1681_v18 }
 0x24a   : > { %v1683_v7 = vpop.permute.xlu1 %1682  ;;  %v1329_v1 = vpop.permute.xlu0 %1328 }
 0x24b   : > { %1714 = vst.msk [vmem:[#allocation2 + $0x70] sm:$0xff] %vm1699_vm9, %v1683_v7  ;;  %v1394_v32 = vsel %vm3915_vm0, %v1329_v1, %v1289_v41 }
 0x24c   : > { %1395 = vst [vmem:[#allocation2 + $0x78] sm:$0xff] %v1394_v32  ;;  %3162 = vmatmul.mubr.msk.bf16.gmra.mrb[36].mxu1 %vm817_vm10, %v1796_v57 }
 0x24e   : > { %v1428_v62 = vpop.permute.xlu1 %1427  ;;  %v1740_v47 = vpop.permute.xlu0 %1739 }
 0x24f   : > { %1461 = vst.msk [vmem:[#allocation2 + $0x78] sm:$0xff] %vm1445_vm2, %v1428_v62  ;;  %v1799_v31 = vsel %vm4012_vm13, %v1740_v47, %v1798_v23 }
 0x250   : > { %1800 = vst [vmem:[#allocation2 + $0x60] sm:$0xff] %v1799_v31  ;;  %3165 = vmatprep.mubr.msk.bf16.mxu1 %vm817_vm10, %v1799_v31  ;;  %v1801_v55 = vld [vmem:[#allocation2 + $0x68] sm:$0xff] }
 0x252   : > { %v1744_v44 = vpop.permute.xlu1 %1743  ;;  %v1804_v29 = vld [vmem:[#allocation2 + $0x70] sm:$0xff]  ;;  %v1742_v61 = vpop.permute.xlu0 %1741 }
 0x253   : > { %v1805_v13 = vsel %vm4012_vm13, %v1744_v44, %v1804_v29  ;;  %v1802_v43 = vsel %vm4012_vm13, %v1742_v61, %v1801_v55 }
 0x254   : > { %1806 = vst [vmem:[#allocation2 + $0x70] sm:$0xff] %v1805_v13  ;;  %1803 = vst [vmem:[#allocation2 + $0x68] sm:$0xff] %v1802_v43  ;;  %3166 = vmatmul.mubr.msk.bf16.gmra.mrb[40].mxu1 %vm817_vm10, %v1802_v43 }
 0x255   : > { %3169 = vmatprep.mubr.msk.bf16.mxu1 %vm817_vm10, %v1805_v13 }
 0x256   : > { %v1559_v53 = vld [vmem:[#allocation2 + $0x78] sm:$0xff]  ;;  %v1495_v59 = vpop.permute.xlu0 %1494 }
 0x257   : > { %v1560_v17 = vsel %vm3984_vm6, %v1495_v59, %v1559_v53 }
 0x258   : > { %1561 = vst [vmem:[#allocation2 + $0x78] sm:$0xff] %v1560_v17 }
 0x25c   : > { %3170 = vmatmul.mubr.msk.bf16.gmra.mrb[44].mxu1 %vm817_vm10, %v1560_v17 }
 0x29d   : > { %v3143_v46 = vpop.f32.mrb[16].mxu1 }
 0x29e   : > { %v2065_v12 = vmul.f32 %v3143_v46, %v4337_v24  ;;  %v1929_v11 = vpop.f32.mrb[17].mxu1 }
 0x29f   : > { %v2063_v0 = vmul.f32 %v4337_v24, %v1929_v11  ;;  %v3144_v6 = vpop.f32.mrb[18].mxu1 }
 0x2a0   : > { %v2104_v8 = vadd.f32 %v4342_v10, %v2065_v12  ;;  %v2066_v28 = vmul.f32 %v3144_v6, %v4337_v24  ;;  %v1932_v16 = vpop.f32.mrb[19].mxu1 }
 0x2a1   : > { %v2102_v22 = vadd.f32 %v4342_v10, %v2063_v0  ;;  %v2064_v42 = vmul.f32 %v4337_v24, %v1932_v16 }
 0x2a2   : > { %v2105_v3 = vadd.f32 %v4342_v10, %v2066_v28  ;;  %v2136_v49 = vmax.f32 %v2104_v8, 0.0 }
 0x2a3   : > { %v2103_v56 = vadd.f32 %v4342_v10, %v2064_v42  ;;  %v2134_v51 = vmax.f32 %v2102_v22, 0.0 }
 0x2a4   : > { %v2137_v48 = vmax.f32 %v2105_v3, 0.0 }
 0x2a5   : > { %v2135_v19 = vmax.f32 %v2103_v56, 0.0 }
 0x2a6   : > { %v2167_v63 = vpack.c.bf16 %v2137_v48, %v2136_v49 }
 0x2a7   : > { %v2166_v30 = vpack.c.bf16 %v2135_v19, %v2134_v51 }
 0x2a9   : > { %3175 = vmatprep.mubr.msk.bf16.mxu0 %vm1044_vm7, %v2166_v30 }
 0x2aa   : > { %3176 = vmatmul.mubr.msk.bf16.vlgmr.msra.gmra.mrb[16].mxu0 %vm1044_vm7, %v2167_v63 }
 0x2d1   : > { %v3147_v45 = vpop.f32.mrb[20].mxu1 }
 0x2d2   : > { %v2069_v5 = vmul.f32 %v3147_v45, %v4337_v24  ;;  %v1945_v14 = vpop.f32.mrb[21].mxu1 }
 0x2d3   : > { %v2067_v39 = vmul.f32 %v4337_v24, %v1945_v14  ;;  %v3148_v36 = vpop.f32.mrb[22].mxu1 }
 0x2d4   : > { %v2108_v54 = vadd.f32 %v4342_v10, %v2069_v5  ;;  %v2070_v25 = vmul.f32 %v3148_v36, %v4337_v24  ;;  %v1948_v20 = vpop.f32.mrb[23].mxu1 }
 0x2d5   : > { %v2106_v4 = vadd.f32 %v4342_v10, %v2067_v39  ;;  %v2068_v52 = vmul.f32 %v4337_v24, %v1948_v20 }
 0x2d6   : > { %v2109_v33 = vadd.f32 %v4342_v10, %v2070_v25  ;;  %v2140_v18 = vmax.f32 %v2108_v54, 0.0 }
 0x2d7   : > { %v2107_v34 = vadd.f32 %v4342_v10, %v2068_v52  ;;  %v2138_v9 = vmax.f32 %v2106_v4, 0.0 }
 0x2d8   : > { %v2141_v50 = vmax.f32 %v2109_v33, 0.0 }
 0x2d9   : > { %v2139_v57 = vmax.f32 %v2107_v34, 0.0 }
 0x2da   : > { %v2169_v15 = vpack.c.bf16 %v2141_v50, %v2140_v18 }
 0x2db   : > { %v2168_v38 = vpack.c.bf16 %v2139_v57, %v2138_v9 }
 0x2dd   : > { %3179 = vmatprep.mubr.msk.bf16.mxu0 %vm1044_vm7, %v2168_v38 }
 0x2de   : > { %3180 = vmatmul.mubr.msk.bf16.gmra.mrb[20].mxu0 %vm1044_vm7, %v2169_v15 }
 0x307   : > { %v3151_v58 = vpop.f32.mrb[24].mxu1 }
 0x308   : > { %v2073_v21 = vmul.f32 %v3151_v58, %v4337_v24  ;;  %v1961_v2 = vpop.f32.mrb[25].mxu1 }
 0x309   : > { %v2071_v40 = vmul.f32 %v4337_v24, %v1961_v2  ;;  %v3152_v35 = vpop.f32.mrb[26].mxu1 }
 0x30a   : > { %v2112_v26 = vadd.f32 %v4342_v10, %v2073_v21  ;;  %v2074_v37 = vmul.f32 %v3152_v35, %v4337_v24  ;;  %v1964_v27 = vpop.f32.mrb[27].mxu1 }
 0x30b   : > { %v2110_v60 = vadd.f32 %v4342_v10, %v2071_v40  ;;  %v2072_v41 = vmul.f32 %v4337_v24, %v1964_v27 }
 0x30c   : > { %v2113_v7 = vadd.f32 %v4342_v10, %v2074_v37  ;;  %v2144_v32 = vmax.f32 %v2112_v26, 0.0 }
 0x30d   : > { %v2111_v1 = vadd.f32 %v4342_v10, %v2072_v41  ;;  %v2142_v23 = vmax.f32 %v2110_v60, 0.0 }
 0x30e   : > { %v2145_v62 = vmax.f32 %v2113_v7, 0.0 }
 0x30f   : > { %v2143_v47 = vmax.f32 %v2111_v1, 0.0  ;;  %v3155_v31 = vpop.f32.mrb[28].mxu1 }
 0x310   : > { %v2171_v44 = vpack.c.bf16 %v2145_v62, %v2144_v32  ;;  %v2077_v29 = vmul.f32 %v3155_v31, %v4337_v24  ;;  %v1977_v55 = vpop.f32.mrb[29].mxu1 }
 0x311   : > { %v2170_v61 = vpack.c.bf16 %v2143_v47, %v2142_v23  ;;  %v2075_v13 = vmul.f32 %v4337_v24, %v1977_v55  ;;  %v3156_v43 = vpop.f32.mrb[30].mxu1 }
 0x312   : > { %v2116_v53 = vadd.f32 %v4342_v10, %v2077_v29  ;;  %v2078_v59 = vmul.f32 %v3156_v43, %v4337_v24  ;;  %v1980_v17 = vpop.f32.mrb[31].mxu1 }
 0x313   : > { %v2114_v46 = vadd.f32 %v4342_v10, %v2075_v13  ;;  %v2076_v12 = vmul.f32 %v4337_v24, %v1980_v17  ;;  %3183 = vmatprep.mubr.msk.bf16.mxu0 %vm1044_vm7, %v2170_v61 }
 0x314   : > { %v2117_v11 = vadd.f32 %v4342_v10, %v2078_v59  ;;  %3184 = vmatmul.mubr.msk.bf16.gmra.mrb[24].mxu0 %vm1044_vm7, %v2171_v44  ;;  %v2148_v6 = vmax.f32 %v2116_v53, 0.0 }
 0x315   : > { %v2115_v0 = vadd.f32 %v4342_v10, %v2076_v12  ;;  %v2146_v28 = vmax.f32 %v2114_v46, 0.0 }
 0x316   : > { %v2149_v8 = vmax.f32 %v2117_v11, 0.0 }
 0x317   : > { %v2147_v16 = vmax.f32 %v2115_v0, 0.0  ;;  %v3159_v22 = vpop.f32.mrb[32].mxu1 }
 0x318   : > { %v2173_v42 = vpack.c.bf16 %v2149_v8, %v2148_v6  ;;  %v2081_v3 = vmul.f32 %v3159_v22, %v4337_v24  ;;  %v1993_v56 = vpop.f32.mrb[33].mxu1 }
 0x319   : > { %v2172_v49 = vpack.c.bf16 %v2147_v16, %v2146_v28  ;;  %v2079_v48 = vmul.f32 %v4337_v24, %v1993_v56  ;;  %v3160_v51 = vpop.f32.mrb[34].mxu1 }
 0x31a   : > { %v2120_v19 = vadd.f32 %v4342_v10, %v2081_v3  ;;  %v2082_v63 = vmul.f32 %v3160_v51, %v4337_v24  ;;  %v1996_v30 = vpop.f32.mrb[35].mxu1 }
 0x31b   : > { %v2118_v45 = vadd.f32 %v4342_v10, %v2079_v48  ;;  %v2080_v5 = vmul.f32 %v4337_v24, %v1996_v30  ;;  %3187 = vmatprep.mubr.msk.bf16.mxu0 %vm1044_vm7, %v2172_v49 }
 0x31c   : > { %v2121_v14 = vadd.f32 %v4342_v10, %v2082_v63  ;;  %3188 = vmatmul.mubr.msk.bf16.gmra.mrb[28].mxu0 %vm1044_vm7, %v2173_v42  ;;  %v2152_v36 = vmax.f32 %v2120_v19, 0.0 }
 0x31d   : > { %v2119_v39 = vadd.f32 %v4342_v10, %v2080_v5  ;;  %v2150_v25 = vmax.f32 %v2118_v45, 0.0 }
 0x31e   : > { %v2153_v54 = vmax.f32 %v2121_v14, 0.0  ;;  %v3033_v14 = vld [vmem:[%s3339_s20 + $0x8] sm:$0xff]  }
 0x31f   : > { %v2151_v20 = vmax.f32 %v2119_v39, 0.0  ;;  %v3163_v4 = vpop.f32.mrb[36].mxu1  ;;  %v2970_v39 = vld [vmem:[%s3339_s20] sm:$0xff]  }
 0x320   : > { %v2175_v52 = vpack.c.bf16 %v2153_v54, %v2152_v36  ;;  %v2085_v33 = vmul.f32 %v3163_v4, %v4337_v24  ;;  %v2009_v34 = vpop.f32.mrb[37].mxu1 }
 0x321   : > { %v2174_v18 = vpack.c.bf16 %v2151_v20, %v2150_v25  ;;  %v2083_v50 = vmul.f32 %v4337_v24, %v2009_v34  ;;  %v3164_v9 = vpop.f32.mrb[38].mxu1  ;;  %v2975_v25 = vunpack.c.l.bf16 %v3033_v14 }
 0x322   : > { %v2124_v57 = vadd.f32 %v4342_v10, %v2085_v33  ;;  %v2086_v15 = vmul.f32 %v3164_v9, %v4337_v24  ;;  %v2012_v38 = vpop.f32.mrb[39].mxu1 }
 0x323   : > { %v2122_v58 = vadd.f32 %v4342_v10, %v2083_v50  ;;  %v2084_v21 = vmul.f32 %v4337_v24, %v2012_v38  ;;  %3191 = vmatprep.mubr.msk.bf16.mxu0 %vm1044_vm7, %v2174_v18  ;;  %v2976_v50 = vunpack.c.h.bf16 %v3033_v14  ;;  %v2972_v38 = vunpack.c.h.bf16 %v2970_v39 }
 0x324   : > { %v2125_v2 = vadd.f32 %v4342_v10, %v2086_v15  ;;  %3192 = vmatmul.mubr.msk.bf16.gmra.mrb[32].mxu0 %vm1044_vm7, %v2175_v52  ;;  %v2156_v35 = vmax.f32 %v2124_v57, 0.0  ;;  %v2971_v52 = vunpack.c.l.bf16 %v2970_v39 }
 0x325   : > { %v2123_v40 = vadd.f32 %v4342_v10, %v2084_v21  ;;  %v2154_v37 = vmax.f32 %v2122_v58, 0.0 }
 0x326   : > { %v2157_v26 = vmax.f32 %v2125_v2, 0.0 }
 0x327   : > { %v2155_v27 = vmax.f32 %v2123_v40, 0.0  ;;  %v3167_v60 = vpop.f32.mrb[40].mxu1 }
 0x328   : > { %v2177_v41 = vpack.c.bf16 %v2157_v26, %v2156_v35  ;;  %v2089_v7 = vmul.f32 %v3167_v60, %v4337_v24  ;;  %v2025_v1 = vpop.f32.mrb[41].mxu1 }
 0x329   : > { %v2176_v32 = vpack.c.bf16 %v2155_v27, %v2154_v37  ;;  %v2087_v62 = vmul.f32 %v4337_v24, %v2025_v1  ;;  %v3168_v23 = vpop.f32.mrb[42].mxu1 }
 0x32a   : > { %v2128_v47 = vadd.f32 %v4342_v10, %v2089_v7  ;;  %v2090_v31 = vmul.f32 %v3168_v23, %v4337_v24  ;;  %v2028_v44 = vpop.f32.mrb[43].mxu1  ;;  %v3035_v23 = vld [vmem:[%s3339_s20 + $0x18] sm:$0xff]  }
 0x32b   : > { %v2126_v29 = vadd.f32 %v4342_v10, %v2087_v62  ;;  %v2088_v55 = vmul.f32 %v4337_v24, %v2028_v44  ;;  %3195 = vmatprep.mubr.msk.bf16.mxu0 %vm1044_vm7, %v2176_v32 }
 0x32c   : > { %v2129_v61 = vadd.f32 %v4342_v10, %v2090_v31  ;;  %3196 = vmatmul.mubr.msk.bf16.gmra.mrb[36].mxu0 %vm1044_vm7, %v2177_v41  ;;  %v2160_v43 = vmax.f32 %v2128_v47, 0.0  ;;  %v3034_v47 = vld [vmem:[%s3339_s20 + $0x10] sm:$0xff]  }
 0x32d   : > { %v2127_v13 = vadd.f32 %v4342_v10, %v2088_v55  ;;  %v2158_v59 = vmax.f32 %v2126_v29, 0.0  ;;  %v2983_v29 = vunpack.c.l.bf16 %v3035_v23 }
 0x32e   : > { %v2161_v53 = vmax.f32 %v2129_v61, 0.0 }
 0x32f   : > { %v2159_v17 = vmax.f32 %v2127_v13, 0.0  ;;  %v3171_v46 = vpop.f32.mrb[44].mxu1  ;;  %v2979_v13 = vunpack.c.l.bf16 %v3034_v47 }
 0x330   : > { %v2179_v12 = vpack.c.bf16 %v2161_v53, %v2160_v43  ;;  %v2093_v11 = vmul.f32 %v3171_v46, %v4337_v24  ;;  %v2041_v0 = vpop.f32.mrb[45].mxu1 }
 0x331   : > { %v2178_v6 = vpack.c.bf16 %v2159_v17, %v2158_v59  ;;  %v2091_v8 = vmul.f32 %v4337_v24, %v2041_v0  ;;  %v3172_v28 = vpop.f32.mrb[46].mxu1  ;;  %v2984_v17 = vunpack.c.h.bf16 %v3035_v23  ;;  %v2980_v0 = vunpack.c.h.bf16 %v3034_v47 }
 0x332   : > { %v2132_v16 = vadd.f32 %v4342_v10, %v2093_v11  ;;  %v2094_v22 = vmul.f32 %v3172_v28, %v4337_v24  ;;  %v2044_v42 = vpop.f32.mrb[47].mxu1 }
 0x333   : > { %v2130_v3 = vadd.f32 %v4342_v10, %v2091_v8  ;;  %v2092_v56 = vmul.f32 %v4337_v24, %v2044_v42  ;;  %3199 = vmatprep.mubr.msk.bf16.mxu0 %vm1044_vm7, %v2178_v6  ;;  %v4427_v24 = vld [vmem:[%s4596_s8] ss:$0 sm:$0xff] }
 0x334   : > { %v2133_v49 = vadd.f32 %v4342_v10, %v2094_v22  ;;  %3200 = vmatmul.mubr.msk.bf16.gmra.mrb[40].mxu0 %vm1044_vm7, %v2179_v12  ;;  %v2164_v51 = vmax.f32 %v2132_v16, 0.0 }
 0x335   : > { %v2131_v48 = vadd.f32 %v4342_v10, %v2092_v56  ;;  %v2162_v63 = vmax.f32 %v2130_v3, 0.0  ;;  %v4434_v10 = vld [vmem:[%s4597_s9] ss:$0 sm:$0xff] }
 0x336   : > { %v2165_v19 = vmax.f32 %v2133_v49, 0.0 }
 0x337   : > { %v2163_v30 = vmax.f32 %v2131_v48, 0.0 }
 0x338   : > { %v2181_v45 = vpack.c.bf16 %v2165_v19, %v2164_v51 }
 0x339   : > { %v2180_v5 = vpack.c.bf16 %v2163_v30, %v2162_v63 }
 0x33b   : > { %3203 = vmatprep.mubr.msk.bf16.mxu0 %vm1044_vm7, %v2180_v5  ;;  %v3036_v5 = vld [vmem:[%s3339_s20 + $0x20] sm:$0xff]  }
 0x33c   : > { %3204 = vmatmul.mubr.msk.bf16.gmra.mrb[44].mxu0 %vm1044_vm7, %v2181_v45  ;;  %vm2730_vm7 = vcmask 125952   ;;  %v3037_v45 = vld [vmem:[%s3339_s20 + $0x28] sm:$0xff]  }
 0x37d   : > { %v3177_v36 = vpop.f32.mrb[16].mxu0 }
 0x37e   : > { %v2405_v54 = vmul.f32 %v3177_v36, %v4427_v24  ;;  %v2269_v20 = vpop.f32.mrb[17].mxu0  ;;  %v2991_v36 = vunpack.c.l.bf16 %v3037_v45 }
 0x37f   : > { %v2403_v4 = vmul.f32 %v4427_v24, %v2269_v20  ;;  %v3178_v33 = vpop.f32.mrb[18].mxu0  ;;  %v2987_v20 = vunpack.c.l.bf16 %v3036_v5 }
 0x380   : > { %v2444_v34 = vadd.f32 %v4434_v10, %v2405_v54  ;;  %v2406_v18 = vmul.f32 %v3178_v33, %v4427_v24  ;;  %v2272_v9 = vpop.f32.mrb[19].mxu0 }
 0x381   : > { %v2442_v57 = vadd.f32 %v4434_v10, %v2403_v4  ;;  %v2404_v15 = vmul.f32 %v4427_v24, %v2272_v9 }
 0x382   : > { %v2540_v58 = vadd.f32 %v2975_v25, %v2444_v34  ;;  %v2445_v21 = vadd.f32 %v4434_v10, %v2406_v18  ;;  %v2992_v34 = vunpack.c.h.bf16 %v3037_v45 }
 0x383   : > { %v2538_v2 = vadd.f32 %v2971_v52, %v2442_v57  ;;  %v2443_v40 = vadd.f32 %v4434_v10, %v2404_v15  ;;  %v2988_v57 = vunpack.c.h.bf16 %v3036_v5 }
 0x384   : > { %v2572_v35 = vmax.f32 %v2540_v58, 0.0  ;;  %v2541_v26 = vadd.f32 %v2976_v50, %v2445_v21 }
 0x385   : > { %v2570_v37 = vmax.f32 %v2538_v2, 0.0  ;;  %v2539_v27 = vadd.f32 %v2972_v38, %v2443_v40  ;;  %v3039_v2 = vld [vmem:[%s3339_s20 + $0x38] sm:$0xff]  }
 0x386   : > { %v2939_v60 = vpack.c.bf16 %v2572_v35, %v2572_v35  ;;  %v2573_v41 = vmax.f32 %v2541_v26, 0.0  ;;  %v3038_v26 = vld [vmem:[%s3339_s20 + $0x30] sm:$0xff]  }
 0x387   : > { %v2937_v7 = vpack.c.bf16 %v2570_v37, %v2570_v37  ;;  %v2571_v1 = vmax.f32 %v2539_v27, 0.0 }
 0x388   : > { %2733 = vst.msk [vmem:[%s4449_s18 + $0x8] sm:$0xf] %vm2730_vm7, %v2939_v60  ;;  %v2940_v32 = vpack.c.bf16 %v2573_v41, %v2573_v41 }
 0x389   : > { %2731 = vst.msk [vmem:[%s4449_s18] sm:$0xf] %vm2730_vm7, %v2937_v7  ;;  %v2938_v62 = vpack.c.bf16 %v2571_v1, %v2571_v1 }
 0x38a   : > { %2734 = vst.msk [vmem:[%s4449_s18 + $0xc] sm:$0xf] %vm2730_vm7, %v2940_v32  ;;  %v2999_v32 = vunpack.c.l.bf16 %v3039_v2 }
 0x38b   : > { %2732 = vst.msk [vmem:[%s4449_s18 + $0x4] sm:$0xf] %vm2730_vm7, %v2938_v62 }
 0x3b1   : > { %v3181_v31 = vpop.f32.mrb[20].mxu0 }
 0x3b2   : > { %v2409_v44 = vmul.f32 %v3181_v31, %v4427_v24  ;;  %v2285_v55 = vpop.f32.mrb[21].mxu0 }
 0x3b3   : > { %v2407_v61 = vmul.f32 %v4427_v24, %v2285_v55  ;;  %v3182_v43 = vpop.f32.mrb[22].mxu0 }
 0x3b4   : > { %v2448_v53 = vadd.f32 %v4434_v10, %v2409_v44  ;;  %v2410_v59 = vmul.f32 %v3182_v43, %v4427_v24  ;;  %v2288_v46 = vpop.f32.mrb[23].mxu0  ;;  %v2995_v44 = vunpack.c.l.bf16 %v3038_v26  ;;  %v3000_v43 = vunpack.c.h.bf16 %v3039_v2 }
 0x3b5   : > { %v2446_v12 = vadd.f32 %v4434_v10, %v2407_v61  ;;  %v2408_v11 = vmul.f32 %v4427_v24, %v2288_v46 }
 0x3b6   : > { %v2544_v6 = vadd.f32 %v2983_v29, %v2448_v53  ;;  %v2449_v8 = vadd.f32 %v4434_v10, %v2410_v59 }
 0x3b7   : > { %v2542_v28 = vadd.f32 %v2979_v13, %v2446_v12  ;;  %v2447_v16 = vadd.f32 %v4434_v10, %v2408_v11  ;;  %v2996_v12 = vunpack.c.h.bf16 %v3038_v26 }
 0x3b8   : > { %v2576_v22 = vmax.f32 %v2544_v6, 0.0  ;;  %v2545_v42 = vadd.f32 %v2984_v17, %v2449_v8 }
 0x3b9   : > { %v2574_v3 = vmax.f32 %v2542_v28, 0.0  ;;  %v2543_v56 = vadd.f32 %v2980_v0, %v2447_v16  ;;  %v3041_v28 = vld [vmem:[%s3339_s20 + $0x48] sm:$0xff]  }
 0x3ba   : > { %v2943_v49 = vpack.c.bf16 %v2576_v22, %v2576_v22  ;;  %v2577_v48 = vmax.f32 %v2545_v42, 0.0  ;;  %v3040_v42 = vld [vmem:[%s3339_s20 + $0x40] sm:$0xff]  }
 0x3bb   : > { %v2941_v51 = vpack.c.bf16 %v2574_v3, %v2574_v3  ;;  %v2575_v19 = vmax.f32 %v2543_v56, 0.0 }
 0x3bc   : > { %2737 = vst.msk [vmem:[%s4449_s18 + $0x18] sm:$0xf] %vm2730_vm7, %v2943_v49  ;;  %v2944_v63 = vpack.c.bf16 %v2577_v48, %v2577_v48 }
 0x3bd   : > { %2735 = vst.msk [vmem:[%s4449_s18 + $0x10] sm:$0xf] %vm2730_vm7, %v2941_v51  ;;  %v2942_v30 = vpack.c.bf16 %v2575_v19, %v2575_v19 }
 0x3be   : > { %2738 = vst.msk [vmem:[%s4449_s18 + $0x1c] sm:$0xf] %vm2730_vm7, %v2944_v63  ;;  %v3007_v63 = vunpack.c.l.bf16 %v3041_v28 }
 0x3bf   : > { %2736 = vst.msk [vmem:[%s4449_s18 + $0x14] sm:$0xf] %vm2730_vm7, %v2942_v30 }
 0x3e7   : > { %v3185_v14 = vpop.f32.mrb[24].mxu0 }
 0x3e8   : > { %v2413_v39 = vmul.f32 %v3185_v14, %v4427_v24  ;;  %v2301_v54 = vpop.f32.mrb[25].mxu0 }
 0x3e9   : > { %v2411_v25 = vmul.f32 %v4427_v24, %v2301_v54  ;;  %v3186_v4 = vpop.f32.mrb[26].mxu0 }
 0x3ea   : > { %v2452_v52 = vadd.f32 %v4434_v10, %v2413_v39  ;;  %v2414_v33 = vmul.f32 %v3186_v4, %v4427_v24  ;;  %v2304_v18 = vpop.f32.mrb[27].mxu0  ;;  %v3003_v39 = vunpack.c.l.bf16 %v3040_v42  ;;  %v3008_v4 = vunpack.c.h.bf16 %v3041_v28 }
 0x3eb   : > { %v2450_v50 = vadd.f32 %v4434_v10, %v2411_v25  ;;  %v2412_v9 = vmul.f32 %v4427_v24, %v2304_v18 }
 0x3ec   : > { %v2548_v15 = vadd.f32 %v2991_v36, %v2452_v52  ;;  %v2453_v38 = vadd.f32 %v4434_v10, %v2414_v33 }
 0x3ed   : > { %v2546_v58 = vadd.f32 %v2987_v20, %v2450_v50  ;;  %v2451_v21 = vadd.f32 %v4434_v10, %v2412_v9  ;;  %v3004_v50 = vunpack.c.h.bf16 %v3040_v42 }
 0x3ee   : > { %v2580_v40 = vmax.f32 %v2548_v15, 0.0  ;;  %v2549_v35 = vadd.f32 %v2992_v34, %v2453_v38 }
 0x3ef   : > { %v2578_v37 = vmax.f32 %v2546_v58, 0.0  ;;  %v2547_v27 = vadd.f32 %v2988_v57, %v2451_v21  ;;  %v3189_v60 = vpop.f32.mrb[28].mxu0  ;;  %v3043_v58 = vld [vmem:[%s3339_s20 + $0x58] sm:$0xff]  }
 0x3f0   : > { %v2947_v41 = vpack.c.bf16 %v2580_v40, %v2580_v40  ;;  %v2581_v7 = vmax.f32 %v2549_v35, 0.0  ;;  %v2417_v1 = vmul.f32 %v3189_v60, %v4427_v24  ;;  %v2317_v62 = vpop.f32.mrb[29].mxu0  ;;  %v3042_v40 = vld [vmem:[%s3339_s20 + $0x50] sm:$0xff]  }
 0x3f1   : > { %v2945_v23 = vpack.c.bf16 %v2578_v37, %v2578_v37  ;;  %v2579_v47 = vmax.f32 %v2547_v27, 0.0  ;;  %v2415_v31 = vmul.f32 %v4427_v24, %v2317_v62  ;;  %v3190_v29 = vpop.f32.mrb[30].mxu0 }
 0x3f2   : > { %2741 = vst.msk [vmem:[%s4449_s18 + $0x28] sm:$0xf] %vm2730_vm7, %v2947_v41  ;;  %v2948_v55 = vpack.c.bf16 %v2581_v7, %v2581_v7  ;;  %v2456_v61 = vadd.f32 %v4434_v10, %v2417_v1  ;;  %v2418_v13 = vmul.f32 %v3190_v29, %v4427_v24  ;;  %v2320_v53 = vpop.f32.mrb[31].mxu0  ;;  %v3015_v7 = vunpack.c.l.bf16 %v3043_v58 }
 0x3f3   : > { %2739 = vst.msk [vmem:[%s4449_s18 + $0x20] sm:$0xf] %vm2730_vm7, %v2945_v23  ;;  %v2946_v59 = vpack.c.bf16 %v2579_v47, %v2579_v47  ;;  %v2454_v17 = vadd.f32 %v4434_v10, %v2415_v31  ;;  %v2416_v46 = vmul.f32 %v4427_v24, %v2320_v53  ;;  %v3011_v47 = vunpack.c.l.bf16 %v3042_v40 }
 0x3f4   : > { %2742 = vst.msk [vmem:[%s4449_s18 + $0x2c] sm:$0xf] %vm2730_vm7, %v2948_v55  ;;  %v2552_v11 = vadd.f32 %v2999_v32, %v2456_v61  ;;  %v2457_v0 = vadd.f32 %v4434_v10, %v2418_v13  ;;  %v3016_v61 = vunpack.c.h.bf16 %v3043_v58 }
 0x3f5   : > { %2740 = vst.msk [vmem:[%s4449_s18 + $0x24] sm:$0xf] %vm2730_vm7, %v2946_v59  ;;  %v2550_v6 = vadd.f32 %v2995_v44, %v2454_v17  ;;  %v2455_v8 = vadd.f32 %v4434_v10, %v2416_v46  ;;  %v3012_v17 = vunpack.c.h.bf16 %v3042_v40 }
 0x3f6   : > { %v2584_v16 = vmax.f32 %v2552_v11, 0.0  ;;  %v2553_v22 = vadd.f32 %v3000_v43, %v2457_v0 }
 0x3f7   : > { %v2582_v3 = vmax.f32 %v2550_v6, 0.0  ;;  %v2551_v56 = vadd.f32 %v2996_v12, %v2455_v8  ;;  %v3193_v49 = vpop.f32.mrb[32].mxu0  ;;  %v3045_v6 = vld [vmem:[%s3339_s20 + $0x68] sm:$0xff]  }
 0x3f8   : > { %v2951_v48 = vpack.c.bf16 %v2584_v16, %v2584_v16  ;;  %v2585_v51 = vmax.f32 %v2553_v22, 0.0  ;;  %v2421_v19 = vmul.f32 %v3193_v49, %v4427_v24  ;;  %v2333_v30 = vpop.f32.mrb[33].mxu0  ;;  %v3044_v16 = vld [vmem:[%s3339_s20 + $0x60] sm:$0xff]  }
 0x3f9   : > { %v2949_v45 = vpack.c.bf16 %v2582_v3, %v2582_v3  ;;  %v2583_v5 = vmax.f32 %v2551_v56, 0.0  ;;  %v2419_v14 = vmul.f32 %v4427_v24, %v2333_v30  ;;  %v3194_v36 = vpop.f32.mrb[34].mxu0 }
 0x3fa   : > { %2745 = vst.msk [vmem:[%s4449_s18 + $0x38] sm:$0xf] %vm2730_vm7, %v2951_v48  ;;  %v2952_v54 = vpack.c.bf16 %v2585_v51, %v2585_v51  ;;  %v2460_v25 = vadd.f32 %v4434_v10, %v2421_v19  ;;  %v2422_v20 = vmul.f32 %v3194_v36, %v4427_v24  ;;  %v2336_v52 = vpop.f32.mrb[35].mxu0  ;;  %v3023_v51 = vunpack.c.l.bf16 %v3045_v6 }
 0x3fb   : > { %2743 = vst.msk [vmem:[%s4449_s18 + $0x30] sm:$0xf] %vm2730_vm7, %v2949_v45  ;;  %v2950_v33 = vpack.c.bf16 %v2583_v5, %v2583_v5  ;;  %v2458_v34 = vadd.f32 %v4434_v10, %v2419_v14  ;;  %v2420_v18 = vmul.f32 %v4427_v24, %v2336_v52  ;;  %v3019_v5 = vunpack.c.l.bf16 %v3044_v16 }
 0x3fc   : > { %2746 = vst.msk [vmem:[%s4449_s18 + $0x3c] sm:$0xf] %vm2730_vm7, %v2952_v54  ;;  %v2556_v9 = vadd.f32 %v3007_v63, %v2460_v25  ;;  %v2461_v57 = vadd.f32 %v4434_v10, %v2422_v20  ;;  %v3024_v25 = vunpack.c.h.bf16 %v3045_v6 }
 0x3fd   : > { %2744 = vst.msk [vmem:[%s4449_s18 + $0x34] sm:$0xf] %vm2730_vm7, %v2950_v33  ;;  %v2554_v15 = vadd.f32 %v3003_v39, %v2458_v34  ;;  %v2459_v38 = vadd.f32 %v4434_v10, %v2420_v18  ;;  %v3020_v34 = vunpack.c.h.bf16 %v3044_v16 }
 0x3fe   : > { %v2588_v21 = vmax.f32 %v2556_v9, 0.0  ;;  %v2557_v2 = vadd.f32 %v3008_v4, %v2461_v57 }
 0x3ff   : > { %v2586_v35 = vmax.f32 %v2554_v15, 0.0  ;;  %v2555_v26 = vadd.f32 %v3004_v50, %v2459_v38  ;;  %v3197_v37 = vpop.f32.mrb[36].mxu0  ;;  %v3047_v15 = vld [vmem:[%s3339_s20 + $0x78] sm:$0xff]  }
 0x400   : > { %v2955_v27 = vpack.c.bf16 %v2588_v21, %v2588_v21  ;;  %v2589_v60 = vmax.f32 %v2557_v2, 0.0  ;;  %v2425_v41 = vmul.f32 %v3197_v37, %v4427_v24  ;;  %v2349_v1 = vpop.f32.mrb[37].mxu0  ;;  %v3046_v21 = vld [vmem:[%s3339_s20 + $0x70] sm:$0xff]  }
 0x401   : > { %v2953_v32 = vpack.c.bf16 %v2586_v35, %v2586_v35  ;;  %v2587_v62 = vmax.f32 %v2555_v26, 0.0  ;;  %v2423_v23 = vmul.f32 %v4427_v24, %v2349_v1  ;;  %v3198_v31 = vpop.f32.mrb[38].mxu0 }
 0x402   : > { %2749 = vst.msk [vmem:[%s4449_s18 + $0x48] sm:$0xf] %vm2730_vm7, %v2955_v27  ;;  %v2956_v44 = vpack.c.bf16 %v2589_v60, %v2589_v60  ;;  %v2464_v29 = vadd.f32 %v4434_v10, %v2425_v41  ;;  %v2426_v55 = vmul.f32 %v3198_v31, %v4427_v24  ;;  %v2352_v13 = vpop.f32.mrb[39].mxu0  ;;  %v3031_v60 = vunpack.c.l.bf16 %v3047_v15 }
 0x403   : > { %2747 = vst.msk [vmem:[%s4449_s18 + $0x40] sm:$0xf] %vm2730_vm7, %v2953_v32  ;;  %v2954_v43 = vpack.c.bf16 %v2587_v62, %v2587_v62  ;;  %v2462_v53 = vadd.f32 %v4434_v10, %v2423_v23  ;;  %v2424_v59 = vmul.f32 %v4427_v24, %v2352_v13  ;;  %v3027_v62 = vunpack.c.l.bf16 %v3046_v21 }
 0x404   : > { %2750 = vst.msk [vmem:[%s4449_s18 + $0x4c] sm:$0xf] %vm2730_vm7, %v2956_v44  ;;  %v2560_v46 = vadd.f32 %v3015_v7, %v2464_v29  ;;  %v2465_v12 = vadd.f32 %v4434_v10, %v2426_v55  ;;  %v3032_v29 = vunpack.c.h.bf16 %v3047_v15 }
 0x405   : > { %2748 = vst.msk [vmem:[%s4449_s18 + $0x44] sm:$0xf] %vm2730_vm7, %v2954_v43  ;;  %v2558_v11 = vadd.f32 %v3011_v47, %v2462_v53  ;;  %v2463_v0 = vadd.f32 %v4434_v10, %v2424_v59  ;;  %v3028_v53 = vunpack.c.h.bf16 %v3046_v21 }
 0x406   : > { %v2592_v8 = vmax.f32 %v2560_v46, 0.0  ;;  %v2561_v28 = vadd.f32 %v3016_v61, %v2465_v12 }
 0x407   : > { %v2590_v22 = vmax.f32 %v2558_v11, 0.0  ;;  %v2559_v42 = vadd.f32 %v3012_v17, %v2463_v0  ;;  %v3201_v3 = vpop.f32.mrb[40].mxu0 }
 0x408   : > { %v2959_v56 = vpack.c.bf16 %v2592_v8, %v2592_v8  ;;  %v2593_v49 = vmax.f32 %v2561_v28, 0.0  ;;  %v2429_v48 = vmul.f32 %v3201_v3, %v4427_v24  ;;  %v2365_v19 = vpop.f32.mrb[41].mxu0 }
 0x409   : > { %v2957_v63 = vpack.c.bf16 %v2590_v22, %v2590_v22  ;;  %v2591_v30 = vmax.f32 %v2559_v42, 0.0  ;;  %v2427_v45 = vmul.f32 %v4427_v24, %v2365_v19  ;;  %v3202_v14 = vpop.f32.mrb[42].mxu0 }
 0x40a   : > { %2753 = vst.msk [vmem:[%s4449_s18 + $0x58] sm:$0xf] %vm2730_vm7, %v2959_v56  ;;  %v2960_v39 = vpack.c.bf16 %v2593_v49, %v2593_v49  ;;  %v2468_v36 = vadd.f32 %v4434_v10, %v2429_v48  ;;  %v2430_v54 = vmul.f32 %v3202_v14, %v4427_v24  ;;  %v2368_v20 = vpop.f32.mrb[43].mxu0 }
 0x40b   : > { %2751 = vst.msk [vmem:[%s4449_s18 + $0x50] sm:$0xf] %vm2730_vm7, %v2957_v63  ;;  %v2958_v4 = vpack.c.bf16 %v2591_v30, %v2591_v30  ;;  %v2466_v52 = vadd.f32 %v4434_v10, %v2427_v45  ;;  %v2428_v33 = vmul.f32 %v4427_v24, %v2368_v20 }
 0x40c   : > { %2754 = vst.msk [vmem:[%s4449_s18 + $0x5c] sm:$0xf] %vm2730_vm7, %v2960_v39  ;;  %v2564_v18 = vadd.f32 %v3023_v51, %v2468_v36  ;;  %v2469_v50 = vadd.f32 %v4434_v10, %v2430_v54 }
 0x40d   : > { %2752 = vst.msk [vmem:[%s4449_s18 + $0x54] sm:$0xf] %vm2730_vm7, %v2958_v4  ;;  %v2562_v9 = vadd.f32 %v3019_v5, %v2466_v52  ;;  %v2467_v57 = vadd.f32 %v4434_v10, %v2428_v33 }
 0x40e   : > { %v2596_v38 = vmax.f32 %v2564_v18, 0.0  ;;  %v2565_v58 = vadd.f32 %v3024_v25, %v2469_v50 }
 0x40f   : > { %v2594_v2 = vmax.f32 %v2562_v9, 0.0  ;;  %v2563_v40 = vadd.f32 %v3020_v34, %v2467_v57  ;;  %v3205_v35 = vpop.f32.mrb[44].mxu0 }
 0x410   : > { %v2963_v26 = vpack.c.bf16 %v2596_v38, %v2596_v38  ;;  %v2597_v37 = vmax.f32 %v2565_v58, 0.0  ;;  %v2433_v27 = vmul.f32 %v3205_v35, %v4427_v24  ;;  %v2381_v41 = vpop.f32.mrb[45].mxu0 }
 0x411   : > { %v2961_v7 = vpack.c.bf16 %v2594_v2, %v2594_v2  ;;  %v2595_v1 = vmax.f32 %v2563_v40, 0.0  ;;  %v2431_v32 = vmul.f32 %v4427_v24, %v2381_v41  ;;  %v3206_v23 = vpop.f32.mrb[46].mxu0 }
 0x412   : > { %2757 = vst.msk [vmem:[%s4449_s18 + $0x68] sm:$0xf] %vm2730_vm7, %v2963_v26  ;;  %v2964_v47 = vpack.c.bf16 %v2597_v37, %v2597_v37  ;;  %v2472_v31 = vadd.f32 %v4434_v10, %v2433_v27  ;;  %v2434_v44 = vmul.f32 %v3206_v23, %v4427_v24  ;;  %v2384_v55 = vpop.f32.mrb[47].mxu0 }
 0x413   : > { %2755 = vst.msk [vmem:[%s4449_s18 + $0x60] sm:$0xf] %vm2730_vm7, %v2961_v7  ;;  %v2962_v61 = vpack.c.bf16 %v2595_v1, %v2595_v1  ;;  %v2470_v13 = vadd.f32 %v4434_v10, %v2431_v32  ;;  %v2432_v43 = vmul.f32 %v4427_v24, %v2384_v55 }
 0x414   : > { %2758 = vst.msk [vmem:[%s4449_s18 + $0x6c] sm:$0xf] %vm2730_vm7, %v2964_v47  ;;  %v2568_v59 = vadd.f32 %v3031_v60, %v2472_v31  ;;  %v2473_v17 = vadd.f32 %v4434_v10, %v2434_v44 }
 0x415   : > { %2756 = vst.msk [vmem:[%s4449_s18 + $0x64] sm:$0xf] %vm2730_vm7, %v2962_v61  ;;  %v2566_v46 = vadd.f32 %v3027_v62, %v2470_v13  ;;  %v2471_v12 = vadd.f32 %v4434_v10, %v2432_v43 }
 0x416   : > { %v2600_v11 = vmax.f32 %v2568_v59, 0.0  ;;  %v2569_v0 = vadd.f32 %v3032_v29, %v2473_v17 }
 0x417   : > { %v2598_v6 = vmax.f32 %v2566_v46, 0.0  ;;  %v2567_v8 = vadd.f32 %v3028_v53, %v2471_v12 }
 0x418   : > { %v2967_v24 = vpack.c.bf16 %v2600_v11, %v2600_v11  ;;  %v2601_v28 = vmax.f32 %v2569_v0, 0.0 }
 0x419   : > { %v2965_v16 = vpack.c.bf16 %v2598_v6, %v2598_v6  ;;  %v2599_v22 = vmax.f32 %v2567_v8, 0.0 }
 0x41a   : > { %2761 = vst.msk [vmem:[%s4449_s18 + $0x78] sm:$0xf] %vm2730_vm7, %v2967_v24  ;;  %v2968_v42 = vpack.c.bf16 %v2601_v28, %v2601_v28 }
 0x41b   : > { %2759 = vst.msk [vmem:[%s4449_s18 + $0x70] sm:$0xf] %vm2730_vm7, %v2965_v16  ;;  %v2966_v3 = vpack.c.bf16 %v2599_v22, %v2599_v22 }
 0x41c   : > { %2762 = vst.msk [vmem:[%s4449_s18 + $0x7c] sm:$0xf] %vm2730_vm7, %v2968_v42 }
 0x41d   : > { %2760 = vst.msk [vmem:[%s4449_s18 + $0x74] sm:$0xf] %vm2730_vm7, %v2966_v3 }
 0x41e PF: > { %s20_s13 = sadd.s32 1, %s3254_s13  }
 0x41f   : > { %p17_p4 = scmp.ge.s32.totalorder %s20_s13, 4  }
 0x421   :  { %19 = sbr.rel (!%p17_p4) target bundleno = 1 (0x1), region = 92 }

</bundles_post_ra>
